<compile_context>
chip_gen: v5e
topology: v5e:2x2
jax: 0.10.0
libtpu: 0.0.40
codegen_flags: <defaults>
</compile_context>

<pallas_src>
import functools

import jax
import jax.numpy as jnp
from jax.experimental import pallas as pl
from jax.experimental.pallas import tpu as pltpu


def _net_kernel(x_ref, w1_ref, b1_ref, w2_ref, b2_ref, w3_ref, b3_ref, out_ref,
                *, num_valid):
    """Single-step fused MLP + per-user masked softmax.

    x_ref:  (B, D) f32           w1_ref: (D, 256) bf16    b1_ref: (1, 256) f32
    w2_ref: (256, 128) bf16      b2_ref: (1, 128) f32
    w3_ref: (U, 128, S_pad) bf16 (zero-padded satellite cols)
    b3_ref: (U, 1, S_pad) f32    (zero-padded satellite cols)
    out_ref: (B, U, S_pad) f32   (padded cols written as exact 0)
    """
    x = x_ref[...].astype(jnp.bfloat16)                                   # (B, D)
    h1 = jnp.dot(x, w1_ref[...], preferred_element_type=jnp.float32) + b1_ref[...]
    h1 = jnp.maximum(h1, 0.0).astype(jnp.bfloat16)                        # (B, 256)
    h2 = jnp.dot(h1, w2_ref[...], preferred_element_type=jnp.float32) + b2_ref[...]
    h2 = jnp.maximum(h2, 0.0).astype(jnp.bfloat16)                        # (B, 128)

    batch, num_users, s_pad = out_ref.shape
    # Validity mask over the padded satellite axis (hoisted out of the user loop).
    col = jax.lax.broadcasted_iota(jnp.int32, (batch, s_pad), 1)
    valid = col < num_valid

    for u in range(num_users):  # static unroll (U=10); same total MXU work as one big dot
        logits = jnp.dot(h2, w3_ref[u],
                         preferred_element_type=jnp.float32) + b3_ref[u]  # (B, S_pad)
        # Numerically stable softmax over the real satellites only: padded
        # columns are explicitly zeroed before the denominator sum.
        m = jnp.max(logits, axis=-1, keepdims=True)
        e = jnp.where(valid, jnp.exp(logits - m), 0.0)
        denom = jnp.sum(e, axis=-1, keepdims=True)
        out_ref[:, u, :] = e * (1.0 / denom)                              # (B, S_pad)


def prepare_params(params, num_users, num_satellites):
    """One-time relayout + dtype prep (hoisted out of the forward pass).

    Torch-style params (weights stored as (in, out)) -> kernel-ready params:
      w1, w2, w3 -> bf16; w3 reshaped to (U, 128, S_pad) with zero-padded satellites;
      b3 reshaped to (U, 1, S_pad), zero-padded.
    """
    w1, b1, w2, b2, w3, b3 = params
    U, S = num_users, num_satellites
    H2 = w2.shape[1]
    s_pad = ((S + 127) // 128) * 128  # 301 -> 384

    w3_u = jnp.transpose(w3.reshape(H2, U, S), (1, 0, 2))                 # (U, H2, S)
    w3_u = jnp.pad(w3_u, ((0, 0), (0, 0), (0, s_pad - S)))                # zero pad
    b3_u = b3.reshape(U, 1, S)
    b3_u = jnp.pad(b3_u, ((0, 0), (0, 0), (0, s_pad - S)))                # zero pad

    return (w1.astype(jnp.bfloat16), b1.astype(jnp.float32),
            w2.astype(jnp.bfloat16), b2.astype(jnp.float32),
            w3_u.astype(jnp.bfloat16), b3_u.astype(jnp.float32))


def net_forward(state, prepared, num_users, num_satellites):
    """state: (B, state_dim) f32 -> (B, num_users, num_satellites) f32."""
    w1, b1, w2, b2, w3_u, b3_u = prepared
    B, D = state.shape
    U = num_users
    H1, H2 = w1.shape[1], w2.shape[1]
    s_pad = w3_u.shape[-1]

    kernel = functools.partial(_net_kernel, num_valid=num_satellites)

    out_pad = pl.pallas_call(
        kernel,
        out_shape=jax.ShapeDtypeStruct((B, U, s_pad), jnp.float32),
        grid=(1,),
        in_specs=[
            pl.BlockSpec((B, D), lambda i: (0, 0)),             # state
            pl.BlockSpec((D, H1), lambda i: (0, 0)),            # w1
            pl.BlockSpec((1, H1), lambda i: (0, 0)),            # b1
            pl.BlockSpec((H1, H2), lambda i: (0, 0)),           # w2
            pl.BlockSpec((1, H2), lambda i: (0, 0)),            # b2
            pl.BlockSpec((U, H2, s_pad), lambda i: (0, 0, 0)),  # w3 (per-user, padded)
            pl.BlockSpec((U, 1, s_pad), lambda i: (0, 0, 0)),   # b3 (per-user, padded)
        ],
        out_specs=pl.BlockSpec((B, U, s_pad), lambda i: (0, 0, 0)),
        compiler_params=pltpu.CompilerParams(
            dimension_semantics=("arbitrary",)),
    )(state, w1, b1, w2, b2, w3_u, b3_u)

    # Tiny slice (2x10x384 f32 ~ 30 KB) to drop the padded satellite columns.
    return out_pad[..., :num_satellites]


def init_params(key, state_dim, num_users, num_satellites):
    """Deterministic synthetic parameters (Linear weights stored as (in, out))."""
    action_dim = num_users * num_satellites
    k1, k2, k3, k4, k5, k6 = jax.random.split(key, 6)
    w1 = jax.random.normal(k1, (state_dim, 256), jnp.float32) * 0.05
    b1 = jax.random.normal(k2, (1, 256), jnp.float32) * 0.05
    w2 = jax.random.normal(k3, (256, 128), jnp.float32) * 0.05
    b2 = jax.random.normal(k4, (1, 128), jnp.float32) * 0.05
    w3 = jax.random.normal(k5, (128, action_dim), jnp.float32) * 0.05
    b3 = jax.random.normal(k6, (action_dim,), jnp.float32) * 0.05
    return (w1, b1, w2, b2, w3, b3)


def net_forward_ref(state, params, num_users, num_satellites):
    """Plain-JAX f32 reference mirroring the PyTorch forward."""
    w1, b1, w2, b2, w3, b3 = params
    a = jnp.maximum(state @ w1 + b1, 0.0)
    a = jnp.maximum(a @ w2 + b2, 0.0)
    a = a @ w3 + b3
    a = a.reshape(-1, num_users, num_satellites)
    return jax.nn.softmax(a, axis=-1)


if __name__ == "__main__":
    B = 2
    state_dim = 32
    num_users = 10
    num_satellites = 301

    key = jax.random.PRNGKey(0)
    k_x, k_p = jax.random.split(key)
    state = jax.random.normal(k_x, (B, state_dim), jnp.float32)
    params = init_params(k_p, state_dim, num_users, num_satellites)

    # One-time weight relayout / bf16 cast (checkpoint-load time, not per call).
    prepared = prepare_params(params, num_users, num_satellites)

    fwd = jax.jit(net_forward, static_argnums=(2, 3))
    out = fwd(state, prepared, num_users, num_satellites)
    out = jax.block_until_ready(out)

    ref = net_forward_ref(state, params, num_users, num_satellites)
    assert out.shape == (B, num_users, num_satellites)
    assert bool(jnp.all(jnp.isfinite(out)))
    assert jnp.allclose(jnp.sum(out, axis=-1), 1.0, atol=1e-3)
    # bf16 weight streaming vs. pure f32 reference.
    assert jnp.allclose(out, ref, atol=2e-3, rtol=1e-2)

    print("KERNEL_OK")
</pallas_src>

<mosaic_0001>
module attributes {stable_mosaic.version = 11 : i64} {
  func.func @_net_kernel(%arg0: i32, %arg1: memref<2x32xf32, #tpu.memory_space<vmem>>, %arg2: memref<32x256xbf16, #tpu.memory_space<vmem>>, %arg3: memref<1x256xf32, #tpu.memory_space<vmem>>, %arg4: memref<256x128xbf16, #tpu.memory_space<vmem>>, %arg5: memref<1x128xf32, #tpu.memory_space<vmem>>, %arg6: memref<10x128x384xbf16, #tpu.memory_space<vmem>>, %arg7: memref<10x1x384xf32, #tpu.memory_space<vmem>>, %arg8: memref<2x10x384xf32, #tpu.memory_space<vmem>>) attributes {dimension_semantics = [#tpu.dimension_semantics<arbitrary>], iteration_bounds = array<i64: 1>, scalar_prefetch = 0 : i64, scratch_operands = 0 : i64, tpu.core_type = #tpu.core_type<tc>, window_params = [{pipeline_mode = #tpu.pipeline_mode<synchronous>, transform_indices = @transform_0, window_bounds = array<i64: 2, 32>}, {pipeline_mode = #tpu.pipeline_mode<synchronous>, transform_indices = @transform_1, window_bounds = array<i64: 32, 256>}, {pipeline_mode = #tpu.pipeline_mode<synchronous>, transform_indices = @transform_2, window_bounds = array<i64: 1, 256>}, {pipeline_mode = #tpu.pipeline_mode<synchronous>, transform_indices = @transform_3, window_bounds = array<i64: 256, 128>}, {pipeline_mode = #tpu.pipeline_mode<synchronous>, transform_indices = @transform_4, window_bounds = array<i64: 1, 128>}, {pipeline_mode = #tpu.pipeline_mode<synchronous>, transform_indices = @transform_5, window_bounds = array<i64: 10, 128, 384>}, {pipeline_mode = #tpu.pipeline_mode<synchronous>, transform_indices = @transform_6, window_bounds = array<i64: 10, 1, 384>}, {pipeline_mode = #tpu.pipeline_mode<synchronous>, transform_indices = @transform_7, window_bounds = array<i64: 2, 10, 384>}]} {
    %c0 = arith.constant 0 : index
    %c0_0 = arith.constant 0 : index
    %0 = vector.load %arg1[%c0, %c0_0] : memref<2x32xf32, #tpu.memory_space<vmem>>, vector<2x32xf32>
    %1 = arith.truncf %0 : vector<2x32xf32> to vector<2x32xbf16>
    %c0_1 = arith.constant 0 : index
    %c0_2 = arith.constant 0 : index
    %2 = vector.load %arg2[%c0_1, %c0_2] : memref<32x256xbf16, #tpu.memory_space<vmem>>, vector<32x256xbf16>
    %cst = arith.constant dense<0.000000e+00> : vector<2x256xf32>
    %3 = tpu.matmul %1, %2, %cst {dimension_numbers = #tpu.dot_dimension_numbers<[1], [0], [0], [1], [0, 0, 1, 1], [], []>} : vector<2x32xbf16>, vector<32x256xbf16>, vector<2x256xf32> -> vector<2x256xf32>
    %c0_3 = arith.constant 0 : index
    %c0_4 = arith.constant 0 : index
    %4 = vector.load %arg3[%c0_3, %c0_4] : memref<1x256xf32, #tpu.memory_space<vmem>>, vector<1x256xf32>
    %5 = vector.broadcast %4 : vector<1x256xf32> to vector<2x256xf32>
    %6 = arith.addf %3, %5 : vector<2x256xf32>
    %cst_5 = arith.constant 0.000000e+00 : f32
    %7 = vector.broadcast %cst_5 : f32 to vector<2x256xf32>
    %8 = arith.maximumf %6, %7 : vector<2x256xf32>
    %9 = arith.truncf %8 : vector<2x256xf32> to vector<2x256xbf16>
    %c0_6 = arith.constant 0 : index
    %c0_7 = arith.constant 0 : index
    %10 = vector.load %arg4[%c0_6, %c0_7] : memref<256x128xbf16, #tpu.memory_space<vmem>>, vector<256x128xbf16>
    %cst_8 = arith.constant dense<0.000000e+00> : vector<2x128xf32>
    %11 = tpu.matmul %9, %10, %cst_8 {dimension_numbers = #tpu.dot_dimension_numbers<[1], [0], [0], [1], [0, 0, 1, 1], [], []>} : vector<2x256xbf16>, vector<256x128xbf16>, vector<2x128xf32> -> vector<2x128xf32>
    %c0_9 = arith.constant 0 : index
    %c0_10 = arith.constant 0 : index
    %12 = vector.load %arg5[%c0_9, %c0_10] : memref<1x128xf32, #tpu.memory_space<vmem>>, vector<1x128xf32>
    %13 = vector.broadcast %12 : vector<1x128xf32> to vector<2x128xf32>
    %14 = arith.addf %11, %13 : vector<2x128xf32>
    %cst_11 = arith.constant 0.000000e+00 : f32
    %15 = vector.broadcast %cst_11 : f32 to vector<2x128xf32>
    %16 = arith.maximumf %14, %15 : vector<2x128xf32>
    %17 = arith.truncf %16 : vector<2x128xf32> to vector<2x128xbf16>
    %18 = tpu.iota {dimensions = array<i32: 1>} : vector<2x384xi32>
    %c301_i32 = arith.constant 301 : i32
    %19 = vector.broadcast %c301_i32 : i32 to vector<2x384xi32>
    %20 = arith.cmpi slt, %18, %19 : vector<2x384xi32>
    %c0_12 = arith.constant 0 : index
    %c0_13 = arith.constant 0 : index
    %c0_14 = arith.constant 0 : index
    %21 = vector.load %arg6[%c0_12, %c0_13, %c0_14] : memref<10x128x384xbf16, #tpu.memory_space<vmem>>, vector<1x128x384xbf16>
    %22 = vector.shape_cast %21 : vector<1x128x384xbf16> to vector<128x384xbf16>
    %cst_15 = arith.constant dense<0.000000e+00> : vector<2x384xf32>
    %23 = tpu.matmul %17, %22, %cst_15 {dimension_numbers = #tpu.dot_dimension_numbers<[1], [0], [0], [1], [0, 0, 1, 1], [], []>} : vector<2x128xbf16>, vector<128x384xbf16>, vector<2x384xf32> -> vector<2x384xf32>
    %c0_16 = arith.constant 0 : index
    %c0_17 = arith.constant 0 : index
    %c0_18 = arith.constant 0 : index
    %24 = vector.load %arg7[%c0_16, %c0_17, %c0_18] : memref<10x1x384xf32, #tpu.memory_space<vmem>>, vector<1x1x384xf32>
    %25 = vector.shape_cast %24 : vector<1x1x384xf32> to vector<1x384xf32>
    %26 = vector.broadcast %25 : vector<1x384xf32> to vector<2x384xf32>
    %27 = arith.addf %23, %26 : vector<2x384xf32>
    %cst_19 = arith.constant dense<0xFF800000> : vector<2xf32>
    %28 = vector.multi_reduction <maximumf>, %27, %cst_19 [1] : vector<2x384xf32> to vector<2xf32>
    %29 = vector.shape_cast %28 : vector<2xf32> to vector<2x1xf32>
    %30 = vector.broadcast %29 : vector<2x1xf32> to vector<2x384xf32>
    %31 = arith.subf %27, %30 : vector<2x384xf32>
    %32 = math.exp %31 : vector<2x384xf32>
    %cst_20 = arith.constant 0.000000e+00 : f32
    %33 = vector.broadcast %cst_20 : f32 to vector<2x384xf32>
    %34 = arith.select %20, %32, %33 : vector<2x384xi1>, vector<2x384xf32>
    %cst_21 = arith.constant dense<0.000000e+00> : vector<2xf32>
    %35 = vector.multi_reduction <add>, %34, %cst_21 [1] : vector<2x384xf32> to vector<2xf32>
    %36 = vector.shape_cast %35 : vector<2xf32> to vector<2x1xf32>
    %cst_22 = arith.constant 1.000000e+00 : f32
    %37 = vector.broadcast %cst_22 : f32 to vector<2x1xf32>
    %38 = arith.divf %37, %36 : vector<2x1xf32>
    %39 = vector.broadcast %38 : vector<2x1xf32> to vector<2x384xf32>
    %40 = arith.mulf %34, %39 : vector<2x384xf32>
    %c0_23 = arith.constant 0 : index
    %c0_24 = arith.constant 0 : index
    %c0_25 = arith.constant 0 : index
    %41 = vector.load %arg8[%c0_23, %c0_24, %c0_25] : memref<2x10x384xf32, #tpu.memory_space<vmem>>, vector<2x1x384xf32>
    %42 = vector.shape_cast %41 : vector<2x1x384xf32> to vector<2x384xf32>
    %43 = vector.shape_cast %40 : vector<2x384xf32> to vector<2x1x384xf32>
    tpu.vector_store %arg8[%c0_23, %c0_24, %c0_25], %43 {strides = array<i32>} : memref<2x10x384xf32, #tpu.memory_space<vmem>>, vector<2x1x384xf32>,
    %c1 = arith.constant 1 : index
    %c0_26 = arith.constant 0 : index
    %c0_27 = arith.constant 0 : index
    %44 = vector.load %arg6[%c1, %c0_26, %c0_27] : memref<10x128x384xbf16, #tpu.memory_space<vmem>>, vector<1x128x384xbf16>
    %45 = vector.shape_cast %44 : vector<1x128x384xbf16> to vector<128x384xbf16>
    %cst_28 = arith.constant dense<0.000000e+00> : vector<2x384xf32>
    %46 = tpu.matmul %17, %45, %cst_28 {dimension_numbers = #tpu.dot_dimension_numbers<[1], [0], [0], [1], [0, 0, 1, 1], [], []>} : vector<2x128xbf16>, vector<128x384xbf16>, vector<2x384xf32> -> vector<2x384xf32>
    %c1_29 = arith.constant 1 : index
    %c0_30 = arith.constant 0 : index
    %c0_31 = arith.constant 0 : index
    %47 = vector.load %arg7[%c1_29, %c0_30, %c0_31] : memref<10x1x384xf32, #tpu.memory_space<vmem>>, vector<1x1x384xf32>
    %48 = vector.shape_cast %47 : vector<1x1x384xf32> to vector<1x384xf32>
    %49 = vector.broadcast %48 : vector<1x384xf32> to vector<2x384xf32>
    %50 = arith.addf %46, %49 : vector<2x384xf32>
    %cst_32 = arith.constant dense<0xFF800000> : vector<2xf32>
    %51 = vector.multi_reduction <maximumf>, %50, %cst_32 [1] : vector<2x384xf32> to vector<2xf32>
    %52 = vector.shape_cast %51 : vector<2xf32> to vector<2x1xf32>
    %53 = vector.broadcast %52 : vector<2x1xf32> to vector<2x384xf32>
    %54 = arith.subf %50, %53 : vector<2x384xf32>
    %55 = math.exp %54 : vector<2x384xf32>
    %cst_33 = arith.constant 0.000000e+00 : f32
    %56 = vector.broadcast %cst_33 : f32 to vector<2x384xf32>
    %57 = arith.select %20, %55, %56 : vector<2x384xi1>, vector<2x384xf32>
    %cst_34 = arith.constant dense<0.000000e+00> : vector<2xf32>
    %58 = vector.multi_reduction <add>, %57, %cst_34 [1] : vector<2x384xf32> to vector<2xf32>
    %59 = vector.shape_cast %58 : vector<2xf32> to vector<2x1xf32>
    %cst_35 = arith.constant 1.000000e+00 : f32
    %60 = vector.broadcast %cst_35 : f32 to vector<2x1xf32>
    %61 = arith.divf %60, %59 : vector<2x1xf32>
    %62 = vector.broadcast %61 : vector<2x1xf32> to vector<2x384xf32>
    %63 = arith.mulf %57, %62 : vector<2x384xf32>
    %c0_36 = arith.constant 0 : index
    %c1_37 = arith.constant 1 : index
    %c0_38 = arith.constant 0 : index
    %64 = vector.load %arg8[%c0_36, %c1_37, %c0_38] : memref<2x10x384xf32, #tpu.memory_space<vmem>>, vector<2x1x384xf32>
    %65 = vector.shape_cast %64 : vector<2x1x384xf32> to vector<2x384xf32>
    %66 = vector.shape_cast %63 : vector<2x384xf32> to vector<2x1x384xf32>
    tpu.vector_store %arg8[%c0_36, %c1_37, %c0_38], %66 {strides = array<i32>} : memref<2x10x384xf32, #tpu.memory_space<vmem>>, vector<2x1x384xf32>,
    %c2 = arith.constant 2 : index
    %c0_39 = arith.constant 0 : index
    %c0_40 = arith.constant 0 : index
    %67 = vector.load %arg6[%c2, %c0_39, %c0_40] : memref<10x128x384xbf16, #tpu.memory_space<vmem>>, vector<1x128x384xbf16>
    %68 = vector.shape_cast %67 : vector<1x128x384xbf16> to vector<128x384xbf16>
    %cst_41 = arith.constant dense<0.000000e+00> : vector<2x384xf32>
    %69 = tpu.matmul %17, %68, %cst_41 {dimension_numbers = #tpu.dot_dimension_numbers<[1], [0], [0], [1], [0, 0, 1, 1], [], []>} : vector<2x128xbf16>, vector<128x384xbf16>, vector<2x384xf32> -> vector<2x384xf32>
    %c2_42 = arith.constant 2 : index
    %c0_43 = arith.constant 0 : index
    %c0_44 = arith.constant 0 : index
    %70 = vector.load %arg7[%c2_42, %c0_43, %c0_44] : memref<10x1x384xf32, #tpu.memory_space<vmem>>, vector<1x1x384xf32>
    %71 = vector.shape_cast %70 : vector<1x1x384xf32> to vector<1x384xf32>
    %72 = vector.broadcast %71 : vector<1x384xf32> to vector<2x384xf32>
    %73 = arith.addf %69, %72 : vector<2x384xf32>
    %cst_45 = arith.constant dense<0xFF800000> : vector<2xf32>
    %74 = vector.multi_reduction <maximumf>, %73, %cst_45 [1] : vector<2x384xf32> to vector<2xf32>
    %75 = vector.shape_cast %74 : vector<2xf32> to vector<2x1xf32>
    %76 = vector.broadcast %75 : vector<2x1xf32> to vector<2x384xf32>
    %77 = arith.subf %73, %76 : vector<2x384xf32>
    %78 = math.exp %77 : vector<2x384xf32>
    %cst_46 = arith.constant 0.000000e+00 : f32
    %79 = vector.broadcast %cst_46 : f32 to vector<2x384xf32>
    %80 = arith.select %20, %78, %79 : vector<2x384xi1>, vector<2x384xf32>
    %cst_47 = arith.constant dense<0.000000e+00> : vector<2xf32>
    %81 = vector.multi_reduction <add>, %80, %cst_47 [1] : vector<2x384xf32> to vector<2xf32>
    %82 = vector.shape_cast %81 : vector<2xf32> to vector<2x1xf32>
    %cst_48 = arith.constant 1.000000e+00 : f32
    %83 = vector.broadcast %cst_48 : f32 to vector<2x1xf32>
    %84 = arith.divf %83, %82 : vector<2x1xf32>
    %85 = vector.broadcast %84 : vector<2x1xf32> to vector<2x384xf32>
    %86 = arith.mulf %80, %85 : vector<2x384xf32>
    %c0_49 = arith.constant 0 : index
    %c2_50 = arith.constant 2 : index
    %c0_51 = arith.constant 0 : index
    %87 = vector.load %arg8[%c0_49, %c2_50, %c0_51] : memref<2x10x384xf32, #tpu.memory_space<vmem>>, vector<2x1x384xf32>
    %88 = vector.shape_cast %87 : vector<2x1x384xf32> to vector<2x384xf32>
    %89 = vector.shape_cast %86 : vector<2x384xf32> to vector<2x1x384xf32>
    tpu.vector_store %arg8[%c0_49, %c2_50, %c0_51], %89 {strides = array<i32>} : memref<2x10x384xf32, #tpu.memory_space<vmem>>, vector<2x1x384xf32>,
    %c3 = arith.constant 3 : index
    %c0_52 = arith.constant 0 : index
    %c0_53 = arith.constant 0 : index
    %90 = vector.load %arg6[%c3, %c0_52, %c0_53] : memref<10x128x384xbf16, #tpu.memory_space<vmem>>, vector<1x128x384xbf16>
    %91 = vector.shape_cast %90 : vector<1x128x384xbf16> to vector<128x384xbf16>
    %cst_54 = arith.constant dense<0.000000e+00> : vector<2x384xf32>
    %92 = tpu.matmul %17, %91, %cst_54 {dimension_numbers = #tpu.dot_dimension_numbers<[1], [0], [0], [1], [0, 0, 1, 1], [], []>} : vector<2x128xbf16>, vector<128x384xbf16>, vector<2x384xf32> -> vector<2x384xf32>
    %c3_55 = arith.constant 3 : index
    %c0_56 = arith.constant 0 : index
    %c0_57 = arith.constant 0 : index
    %93 = vector.load %arg7[%c3_55, %c0_56, %c0_57] : memref<10x1x384xf32, #tpu.memory_space<vmem>>, vector<1x1x384xf32>
    %94 = vector.shape_cast %93 : vector<1x1x384xf32> to vector<1x384xf32>
    %95 = vector.broadcast %94 : vector<1x384xf32> to vector<2x384xf32>
    %96 = arith.addf %92, %95 : vector<2x384xf32>
    %cst_58 = arith.constant dense<0xFF800000> : vector<2xf32>
    %97 = vector.multi_reduction <maximumf>, %96, %cst_58 [1] : vector<2x384xf32> to vector<2xf32>
    %98 = vector.shape_cast %97 : vector<2xf32> to vector<2x1xf32>
    %99 = vector.broadcast %98 : vector<2x1xf32> to vector<2x384xf32>
    %100 = arith.subf %96, %99 : vector<2x384xf32>
    %101 = math.exp %100 : vector<2x384xf32>
    %cst_59 = arith.constant 0.000000e+00 : f32
    %102 = vector.broadcast %cst_59 : f32 to vector<2x384xf32>
    %103 = arith.select %20, %101, %102 : vector<2x384xi1>, vector<2x384xf32>
    %cst_60 = arith.constant dense<0.000000e+00> : vector<2xf32>
    %104 = vector.multi_reduction <add>, %103, %cst_60 [1] : vector<2x384xf32> to vector<2xf32>
    %105 = vector.shape_cast %104 : vector<2xf32> to vector<2x1xf32>
    %cst_61 = arith.constant 1.000000e+00 : f32
    %106 = vector.broadcast %cst_61 : f32 to vector<2x1xf32>
    %107 = arith.divf %106, %105 : vector<2x1xf32>
    %108 = vector.broadcast %107 : vector<2x1xf32> to vector<2x384xf32>
    %109 = arith.mulf %103, %108 : vector<2x384xf32>
    %c0_62 = arith.constant 0 : index
    %c3_63 = arith.constant 3 : index
    %c0_64 = arith.constant 0 : index
    %110 = vector.load %arg8[%c0_62, %c3_63, %c0_64] : memref<2x10x384xf32, #tpu.memory_space<vmem>>, vector<2x1x384xf32>
    %111 = vector.shape_cast %110 : vector<2x1x384xf32> to vector<2x384xf32>
    %112 = vector.shape_cast %109 : vector<2x384xf32> to vector<2x1x384xf32>
    tpu.vector_store %arg8[%c0_62, %c3_63, %c0_64], %112 {strides = array<i32>} : memref<2x10x384xf32, #tpu.memory_space<vmem>>, vector<2x1x384xf32>,
    %c4 = arith.constant 4 : index
    %c0_65 = arith.constant 0 : index
    %c0_66 = arith.constant 0 : index
    %113 = vector.load %arg6[%c4, %c0_65, %c0_66] : memref<10x128x384xbf16, #tpu.memory_space<vmem>>, vector<1x128x384xbf16>
    %114 = vector.shape_cast %113 : vector<1x128x384xbf16> to vector<128x384xbf16>
    %cst_67 = arith.constant dense<0.000000e+00> : vector<2x384xf32>
    %115 = tpu.matmul %17, %114, %cst_67 {dimension_numbers = #tpu.dot_dimension_numbers<[1], [0], [0], [1], [0, 0, 1, 1], [], []>} : vector<2x128xbf16>, vector<128x384xbf16>, vector<2x384xf32> -> vector<2x384xf32>
    %c4_68 = arith.constant 4 : index
    %c0_69 = arith.constant 0 : index
    %c0_70 = arith.constant 0 : index
    %116 = vector.load %arg7[%c4_68, %c0_69, %c0_70] : memref<10x1x384xf32, #tpu.memory_space<vmem>>, vector<1x1x384xf32>
    %117 = vector.shape_cast %116 : vector<1x1x384xf32> to vector<1x384xf32>
    %118 = vector.broadcast %117 : vector<1x384xf32> to vector<2x384xf32>
    %119 = arith.addf %115, %118 : vector<2x384xf32>
    %cst_71 = arith.constant dense<0xFF800000> : vector<2xf32>
    %120 = vector.multi_reduction <maximumf>, %119, %cst_71 [1] : vector<2x384xf32> to vector<2xf32>
    %121 = vector.shape_cast %120 : vector<2xf32> to vector<2x1xf32>
    %122 = vector.broadcast %121 : vector<2x1xf32> to vector<2x384xf32>
    %123 = arith.subf %119, %122 : vector<2x384xf32>
    %124 = math.exp %123 : vector<2x384xf32>
    %cst_72 = arith.constant 0.000000e+00 : f32
    %125 = vector.broadcast %cst_72 : f32 to vector<2x384xf32>
    %126 = arith.select %20, %124, %125 : vector<2x384xi1>, vector<2x384xf32>
    %cst_73 = arith.constant dense<0.000000e+00> : vector<2xf32>
    %127 = vector.multi_reduction <add>, %126, %cst_73 [1] : vector<2x384xf32> to vector<2xf32>
    %128 = vector.shape_cast %127 : vector<2xf32> to vector<2x1xf32>
    %cst_74 = arith.constant 1.000000e+00 : f32
    %129 = vector.broadcast %cst_74 : f32 to vector<2x1xf32>
    %130 = arith.divf %129, %128 : vector<2x1xf32>
    %131 = vector.broadcast %130 : vector<2x1xf32> to vector<2x384xf32>
    %132 = arith.mulf %126, %131 : vector<2x384xf32>
    %c0_75 = arith.constant 0 : index
    %c4_76 = arith.constant 4 : index
    %c0_77 = arith.constant 0 : index
    %133 = vector.load %arg8[%c0_75, %c4_76, %c0_77] : memref<2x10x384xf32, #tpu.memory_space<vmem>>, vector<2x1x384xf32>
    %134 = vector.shape_cast %133 : vector<2x1x384xf32> to vector<2x384xf32>
    %135 = vector.shape_cast %132 : vector<2x384xf32> to vector<2x1x384xf32>
    tpu.vector_store %arg8[%c0_75, %c4_76, %c0_77], %135 {strides = array<i32>} : memref<2x10x384xf32, #tpu.memory_space<vmem>>, vector<2x1x384xf32>,
    %c5 = arith.constant 5 : index
    %c0_78 = arith.constant 0 : index
    %c0_79 = arith.constant 0 : index
    %136 = vector.load %arg6[%c5, %c0_78, %c0_79] : memref<10x128x384xbf16, #tpu.memory_space<vmem>>, vector<1x128x384xbf16>
    %137 = vector.shape_cast %136 : vector<1x128x384xbf16> to vector<128x384xbf16>
    %cst_80 = arith.constant dense<0.000000e+00> : vector<2x384xf32>
    %138 = tpu.matmul %17, %137, %cst_80 {dimension_numbers = #tpu.dot_dimension_numbers<[1], [0], [0], [1], [0, 0, 1, 1], [], []>} : vector<2x128xbf16>, vector<128x384xbf16>, vector<2x384xf32> -> vector<2x384xf32>
    %c5_81 = arith.constant 5 : index
    %c0_82 = arith.constant 0 : index
    %c0_83 = arith.constant 0 : index
    %139 = vector.load %arg7[%c5_81, %c0_82, %c0_83] : memref<10x1x384xf32, #tpu.memory_space<vmem>>, vector<1x1x384xf32>
    %140 = vector.shape_cast %139 : vector<1x1x384xf32> to vector<1x384xf32>
    %141 = vector.broadcast %140 : vector<1x384xf32> to vector<2x384xf32>
    %142 = arith.addf %138, %141 : vector<2x384xf32>
    %cst_84 = arith.constant dense<0xFF800000> : vector<2xf32>
    %143 = vector.multi_reduction <maximumf>, %142, %cst_84 [1] : vector<2x384xf32> to vector<2xf32>
    %144 = vector.shape_cast %143 : vector<2xf32> to vector<2x1xf32>
    %145 = vector.broadcast %144 : vector<2x1xf32> to vector<2x384xf32>
    %146 = arith.subf %142, %145 : vector<2x384xf32>
    %147 = math.exp %146 : vector<2x384xf32>
    %cst_85 = arith.constant 0.000000e+00 : f32
    %148 = vector.broadcast %cst_85 : f32 to vector<2x384xf32>
    %149 = arith.select %20, %147, %148 : vector<2x384xi1>, vector<2x384xf32>
    %cst_86 = arith.constant dense<0.000000e+00> : vector<2xf32>
    %150 = vector.multi_reduction <add>, %149, %cst_86 [1] : vector<2x384xf32> to vector<2xf32>
    %151 = vector.shape_cast %150 : vector<2xf32> to vector<2x1xf32>
    %cst_87 = arith.constant 1.000000e+00 : f32
    %152 = vector.broadcast %cst_87 : f32 to vector<2x1xf32>
    %153 = arith.divf %152, %151 : vector<2x1xf32>
    %154 = vector.broadcast %153 : vector<2x1xf32> to vector<2x384xf32>
    %155 = arith.mulf %149, %154 : vector<2x384xf32>
    %c0_88 = arith.constant 0 : index
    %c5_89 = arith.constant 5 : index
    %c0_90 = arith.constant 0 : index
    %156 = vector.load %arg8[%c0_88, %c5_89, %c0_90] : memref<2x10x384xf32, #tpu.memory_space<vmem>>, vector<2x1x384xf32>
    %157 = vector.shape_cast %156 : vector<2x1x384xf32> to vector<2x384xf32>
    %158 = vector.shape_cast %155 : vector<2x384xf32> to vector<2x1x384xf32>
    tpu.vector_store %arg8[%c0_88, %c5_89, %c0_90], %158 {strides = array<i32>} : memref<2x10x384xf32, #tpu.memory_space<vmem>>, vector<2x1x384xf32>,
    %c6 = arith.constant 6 : index
    %c0_91 = arith.constant 0 : index
    %c0_92 = arith.constant 0 : index
    %159 = vector.load %arg6[%c6, %c0_91, %c0_92] : memref<10x128x384xbf16, #tpu.memory_space<vmem>>, vector<1x128x384xbf16>
    %160 = vector.shape_cast %159 : vector<1x128x384xbf16> to vector<128x384xbf16>
    %cst_93 = arith.constant dense<0.000000e+00> : vector<2x384xf32>
    %161 = tpu.matmul %17, %160, %cst_93 {dimension_numbers = #tpu.dot_dimension_numbers<[1], [0], [0], [1], [0, 0, 1, 1], [], []>} : vector<2x128xbf16>, vector<128x384xbf16>, vector<2x384xf32> -> vector<2x384xf32>
    %c6_94 = arith.constant 6 : index
    %c0_95 = arith.constant 0 : index
    %c0_96 = arith.constant 0 : index
    %162 = vector.load %arg7[%c6_94, %c0_95, %c0_96] : memref<10x1x384xf32, #tpu.memory_space<vmem>>, vector<1x1x384xf32>
    %163 = vector.shape_cast %162 : vector<1x1x384xf32> to vector<1x384xf32>
    %164 = vector.broadcast %163 : vector<1x384xf32> to vector<2x384xf32>
    %165 = arith.addf %161, %164 : vector<2x384xf32>
    %cst_97 = arith.constant dense<0xFF800000> : vector<2xf32>
    %166 = vector.multi_reduction <maximumf>, %165, %cst_97 [1] : vector<2x384xf32> to vector<2xf32>
    %167 = vector.shape_cast %166 : vector<2xf32> to vector<2x1xf32>
    %168 = vector.broadcast %167 : vector<2x1xf32> to vector<2x384xf32>
    %169 = arith.subf %165, %168 : vector<2x384xf32>
    %170 = math.exp %169 : vector<2x384xf32>
    %cst_98 = arith.constant 0.000000e+00 : f32
    %171 = vector.broadcast %cst_98 : f32 to vector<2x384xf32>
    %172 = arith.select %20, %170, %171 : vector<2x384xi1>, vector<2x384xf32>
    %cst_99 = arith.constant dense<0.000000e+00> : vector<2xf32>
    %173 = vector.multi_reduction <add>, %172, %cst_99 [1] : vector<2x384xf32> to vector<2xf32>
    %174 = vector.shape_cast %173 : vector<2xf32> to vector<2x1xf32>
    %cst_100 = arith.constant 1.000000e+00 : f32
    %175 = vector.broadcast %cst_100 : f32 to vector<2x1xf32>
    %176 = arith.divf %175, %174 : vector<2x1xf32>
    %177 = vector.broadcast %176 : vector<2x1xf32> to vector<2x384xf32>
    %178 = arith.mulf %172, %177 : vector<2x384xf32>
    %c0_101 = arith.constant 0 : index
    %c6_102 = arith.constant 6 : index
    %c0_103 = arith.constant 0 : index
    %179 = vector.load %arg8[%c0_101, %c6_102, %c0_103] : memref<2x10x384xf32, #tpu.memory_space<vmem>>, vector<2x1x384xf32>
    %180 = vector.shape_cast %179 : vector<2x1x384xf32> to vector<2x384xf32>
    %181 = vector.shape_cast %178 : vector<2x384xf32> to vector<2x1x384xf32>
    tpu.vector_store %arg8[%c0_101, %c6_102, %c0_103], %181 {strides = array<i32>} : memref<2x10x384xf32, #tpu.memory_space<vmem>>, vector<2x1x384xf32>,
    %c7 = arith.constant 7 : index
    %c0_104 = arith.constant 0 : index
    %c0_105 = arith.constant 0 : index
    %182 = vector.load %arg6[%c7, %c0_104, %c0_105] : memref<10x128x384xbf16, #tpu.memory_space<vmem>>, vector<1x128x384xbf16>
    %183 = vector.shape_cast %182 : vector<1x128x384xbf16> to vector<128x384xbf16>
    %cst_106 = arith.constant dense<0.000000e+00> : vector<2x384xf32>
    %184 = tpu.matmul %17, %183, %cst_106 {dimension_numbers = #tpu.dot_dimension_numbers<[1], [0], [0], [1], [0, 0, 1, 1], [], []>} : vector<2x128xbf16>, vector<128x384xbf16>, vector<2x384xf32> -> vector<2x384xf32>
    %c7_107 = arith.constant 7 : index
    %c0_108 = arith.constant 0 : index
    %c0_109 = arith.constant 0 : index
    %185 = vector.load %arg7[%c7_107, %c0_108, %c0_109] : memref<10x1x384xf32, #tpu.memory_space<vmem>>, vector<1x1x384xf32>
    %186 = vector.shape_cast %185 : vector<1x1x384xf32> to vector<1x384xf32>
    %187 = vector.broadcast %186 : vector<1x384xf32> to vector<2x384xf32>
    %188 = arith.addf %184, %187 : vector<2x384xf32>
    %cst_110 = arith.constant dense<0xFF800000> : vector<2xf32>
    %189 = vector.multi_reduction <maximumf>, %188, %cst_110 [1] : vector<2x384xf32> to vector<2xf32>
    %190 = vector.shape_cast %189 : vector<2xf32> to vector<2x1xf32>
    %191 = vector.broadcast %190 : vector<2x1xf32> to vector<2x384xf32>
    %192 = arith.subf %188, %191 : vector<2x384xf32>
    %193 = math.exp %192 : vector<2x384xf32>
    %cst_111 = arith.constant 0.000000e+00 : f32
    %194 = vector.broadcast %cst_111 : f32 to vector<2x384xf32>
    %195 = arith.select %20, %193, %194 : vector<2x384xi1>, vector<2x384xf32>
    %cst_112 = arith.constant dense<0.000000e+00> : vector<2xf32>
    %196 = vector.multi_reduction <add>, %195, %cst_112 [1] : vector<2x384xf32> to vector<2xf32>
    %197 = vector.shape_cast %196 : vector<2xf32> to vector<2x1xf32>
    %cst_113 = arith.constant 1.000000e+00 : f32
    %198 = vector.broadcast %cst_113 : f32 to vector<2x1xf32>
    %199 = arith.divf %198, %197 : vector<2x1xf32>
    %200 = vector.broadcast %199 : vector<2x1xf32> to vector<2x384xf32>
    %201 = arith.mulf %195, %200 : vector<2x384xf32>
    %c0_114 = arith.constant 0 : index
    %c7_115 = arith.constant 7 : index
    %c0_116 = arith.constant 0 : index
    %202 = vector.load %arg8[%c0_114, %c7_115, %c0_116] : memref<2x10x384xf32, #tpu.memory_space<vmem>>, vector<2x1x384xf32>
    %203 = vector.shape_cast %202 : vector<2x1x384xf32> to vector<2x384xf32>
    %204 = vector.shape_cast %201 : vector<2x384xf32> to vector<2x1x384xf32>
    tpu.vector_store %arg8[%c0_114, %c7_115, %c0_116], %204 {strides = array<i32>} : memref<2x10x384xf32, #tpu.memory_space<vmem>>, vector<2x1x384xf32>,
    %c8 = arith.constant 8 : index
    %c0_117 = arith.constant 0 : index
    %c0_118 = arith.constant 0 : index
    %205 = vector.load %arg6[%c8, %c0_117, %c0_118] : memref<10x128x384xbf16, #tpu.memory_space<vmem>>, vector<1x128x384xbf16>
    %206 = vector.shape_cast %205 : vector<1x128x384xbf16> to vector<128x384xbf16>
    %cst_119 = arith.constant dense<0.000000e+00> : vector<2x384xf32>
    %207 = tpu.matmul %17, %206, %cst_119 {dimension_numbers = #tpu.dot_dimension_numbers<[1], [0], [0], [1], [0, 0, 1, 1], [], []>} : vector<2x128xbf16>, vector<128x384xbf16>, vector<2x384xf32> -> vector<2x384xf32>
    %c8_120 = arith.constant 8 : index
    %c0_121 = arith.constant 0 : index
    %c0_122 = arith.constant 0 : index
    %208 = vector.load %arg7[%c8_120, %c0_121, %c0_122] : memref<10x1x384xf32, #tpu.memory_space<vmem>>, vector<1x1x384xf32>
    %209 = vector.shape_cast %208 : vector<1x1x384xf32> to vector<1x384xf32>
    %210 = vector.broadcast %209 : vector<1x384xf32> to vector<2x384xf32>
    %211 = arith.addf %207, %210 : vector<2x384xf32>
    %cst_123 = arith.constant dense<0xFF800000> : vector<2xf32>
    %212 = vector.multi_reduction <maximumf>, %211, %cst_123 [1] : vector<2x384xf32> to vector<2xf32>
    %213 = vector.shape_cast %212 : vector<2xf32> to vector<2x1xf32>
    %214 = vector.broadcast %213 : vector<2x1xf32> to vector<2x384xf32>
    %215 = arith.subf %211, %214 : vector<2x384xf32>
    %216 = math.exp %215 : vector<2x384xf32>
    %cst_124 = arith.constant 0.000000e+00 : f32
    %217 = vector.broadcast %cst_124 : f32 to vector<2x384xf32>
    %218 = arith.select %20, %216, %217 : vector<2x384xi1>, vector<2x384xf32>
    %cst_125 = arith.constant dense<0.000000e+00> : vector<2xf32>
    %219 = vector.multi_reduction <add>, %218, %cst_125 [1] : vector<2x384xf32> to vector<2xf32>
    %220 = vector.shape_cast %219 : vector<2xf32> to vector<2x1xf32>
    %cst_126 = arith.constant 1.000000e+00 : f32
    %221 = vector.broadcast %cst_126 : f32 to vector<2x1xf32>
    %222 = arith.divf %221, %220 : vector<2x1xf32>
    %223 = vector.broadcast %222 : vector<2x1xf32> to vector<2x384xf32>
    %224 = arith.mulf %218, %223 : vector<2x384xf32>
    %c0_127 = arith.constant 0 : index
    %c8_128 = arith.constant 8 : index
    %c0_129 = arith.constant 0 : index
    %225 = vector.load %arg8[%c0_127, %c8_128, %c0_129] : memref<2x10x384xf32, #tpu.memory_space<vmem>>, vector<2x1x384xf32>
    %226 = vector.shape_cast %225 : vector<2x1x384xf32> to vector<2x384xf32>
    %227 = vector.shape_cast %224 : vector<2x384xf32> to vector<2x1x384xf32>
    tpu.vector_store %arg8[%c0_127, %c8_128, %c0_129], %227 {strides = array<i32>} : memref<2x10x384xf32, #tpu.memory_space<vmem>>, vector<2x1x384xf32>,
    %c9 = arith.constant 9 : index
    %c0_130 = arith.constant 0 : index
    %c0_131 = arith.constant 0 : index
    %228 = vector.load %arg6[%c9, %c0_130, %c0_131] : memref<10x128x384xbf16, #tpu.memory_space<vmem>>, vector<1x128x384xbf16>
    %229 = vector.shape_cast %228 : vector<1x128x384xbf16> to vector<128x384xbf16>
    %cst_132 = arith.constant dense<0.000000e+00> : vector<2x384xf32>
    %230 = tpu.matmul %17, %229, %cst_132 {dimension_numbers = #tpu.dot_dimension_numbers<[1], [0], [0], [1], [0, 0, 1, 1], [], []>} : vector<2x128xbf16>, vector<128x384xbf16>, vector<2x384xf32> -> vector<2x384xf32>
    %c9_133 = arith.constant 9 : index
    %c0_134 = arith.constant 0 : index
    %c0_135 = arith.constant 0 : index
    %231 = vector.load %arg7[%c9_133, %c0_134, %c0_135] : memref<10x1x384xf32, #tpu.memory_space<vmem>>, vector<1x1x384xf32>
    %232 = vector.shape_cast %231 : vector<1x1x384xf32> to vector<1x384xf32>
    %233 = vector.broadcast %232 : vector<1x384xf32> to vector<2x384xf32>
    %234 = arith.addf %230, %233 : vector<2x384xf32>
    %cst_136 = arith.constant dense<0xFF800000> : vector<2xf32>
    %235 = vector.multi_reduction <maximumf>, %234, %cst_136 [1] : vector<2x384xf32> to vector<2xf32>
    %236 = vector.shape_cast %235 : vector<2xf32> to vector<2x1xf32>
    %237 = vector.broadcast %236 : vector<2x1xf32> to vector<2x384xf32>
    %238 = arith.subf %234, %237 : vector<2x384xf32>
    %239 = math.exp %238 : vector<2x384xf32>
    %cst_137 = arith.constant 0.000000e+00 : f32
    %240 = vector.broadcast %cst_137 : f32 to vector<2x384xf32>
    %241 = arith.select %20, %239, %240 : vector<2x384xi1>, vector<2x384xf32>
    %cst_138 = arith.constant dense<0.000000e+00> : vector<2xf32>
    %242 = vector.multi_reduction <add>, %241, %cst_138 [1] : vector<2x384xf32> to vector<2xf32>
    %243 = vector.shape_cast %242 : vector<2xf32> to vector<2x1xf32>
    %cst_139 = arith.constant 1.000000e+00 : f32
    %244 = vector.broadcast %cst_139 : f32 to vector<2x1xf32>
    %245 = arith.divf %244, %243 : vector<2x1xf32>
    %246 = vector.broadcast %245 : vector<2x1xf32> to vector<2x384xf32>
    %247 = arith.mulf %241, %246 : vector<2x384xf32>
    %c0_140 = arith.constant 0 : index
    %c9_141 = arith.constant 9 : index
    %c0_142 = arith.constant 0 : index
    %248 = vector.load %arg8[%c0_140, %c9_141, %c0_142] : memref<2x10x384xf32, #tpu.memory_space<vmem>>, vector<2x1x384xf32>
    %249 = vector.shape_cast %248 : vector<2x1x384xf32> to vector<2x384xf32>
    %250 = vector.shape_cast %247 : vector<2x384xf32> to vector<2x1x384xf32>
    tpu.vector_store %arg8[%c0_140, %c9_141, %c0_142], %250 {strides = array<i32>} : memref<2x10x384xf32, #tpu.memory_space<vmem>>, vector<2x1x384xf32>,
    return
  }
  func.func @transform_0(%arg0: i32) -> (i32, i32) {
    %c0_i32 = arith.constant 0 : i32
    %c0_i32_0 = arith.constant 0 : i32
    %c0_i32_1 = arith.constant 0 : i32
    return %c0_i32, %c0_i32_0 : i32, i32
  }
  func.func @transform_1(%arg0: i32) -> (i32, i32) {
    %c0_i32 = arith.constant 0 : i32
    %c0_i32_0 = arith.constant 0 : i32
    %c0_i32_1 = arith.constant 0 : i32
    return %c0_i32, %c0_i32_0 : i32, i32
  }
  func.func @transform_2(%arg0: i32) -> (i32, i32) {
    %c0_i32 = arith.constant 0 : i32
    %c0_i32_0 = arith.constant 0 : i32
    %c0_i32_1 = arith.constant 0 : i32
    return %c0_i32, %c0_i32_0 : i32, i32
  }
  func.func @transform_3(%arg0: i32) -> (i32, i32) {
    %c0_i32 = arith.constant 0 : i32
    %c0_i32_0 = arith.constant 0 : i32
    %c0_i32_1 = arith.constant 0 : i32
    return %c0_i32, %c0_i32_0 : i32, i32
  }
  func.func @transform_4(%arg0: i32) -> (i32, i32) {
    %c0_i32 = arith.constant 0 : i32
    %c0_i32_0 = arith.constant 0 : i32
    %c0_i32_1 = arith.constant 0 : i32
    return %c0_i32, %c0_i32_0 : i32, i32
  }
  func.func @transform_5(%arg0: i32) -> (i32, i32, i32) {
    %c0_i32 = arith.constant 0 : i32
    %c0_i32_0 = arith.constant 0 : i32
    %c0_i32_1 = arith.constant 0 : i32
    %c0_i32_2 = arith.constant 0 : i32
    return %c0_i32, %c0_i32_0, %c0_i32_1 : i32, i32, i32
  }
  func.func @transform_6(%arg0: i32) -> (i32, i32, i32) {
    %c0_i32 = arith.constant 0 : i32
    %c0_i32_0 = arith.constant 0 : i32
    %c0_i32_1 = arith.constant 0 : i32
    %c0_i32_2 = arith.constant 0 : i32
    return %c0_i32, %c0_i32_0, %c0_i32_1 : i32, i32, i32
  }
  func.func @transform_7(%arg0: i32) -> (i32, i32, i32) {
    %c0_i32 = arith.constant 0 : i32
    %c0_i32_0 = arith.constant 0 : i32
    %c0_i32_1 = arith.constant 0 : i32
    %c0_i32_2 = arith.constant 0 : i32
    return %c0_i32, %c0_i32_0, %c0_i32_1 : i32, i32, i32
  }
}

</mosaic_0001>

<bundles_post_ra>
// kernel: net_forward.1
= control target key start
LH: loop header
LB: loop body
LE: loop exit
PB: predicated region body
PF: predicated region fallthrough
CT: control target
= control target key end

     0   :  { %12 = vsyncpa [#allocation3], 0  ;;  %s5228_s0 = inlined_call_operand.hbm [shape: f32[2,32], index: 0, kind: input, shape index: {}]   ;;  %s5229_s1 = inlined_call_operand.hbm [shape: bf16[32,256], index: 1, kind: input, shape index: {}]   ;;  %s5230_s2 = inlined_call_operand.hbm [shape: f32[1,256], index: 2, kind: input, shape index: {}]   ;;  %s5231_s3 = inlined_call_operand.hbm [shape: bf16[256,128], index: 3, kind: input, shape index: {}]   ;;  %s5232_s4 = inlined_call_operand.vmem [shape: f32[1,128], index: 4, kind: input, shape index: {}]   ;;  %s5233_s5 = inlined_call_operand.hbm [shape: bf16[10,128,384], index: 5, kind: input, shape index: {}]   ;;  %s5234_s6 = inlined_call_operand.hbm [shape: f32[10,1,384], index: 6, kind: input, shape index: {}]   ;;  %s5235_s7 = inlined_call_operand.vmem [shape: f32[2,10,384], index: 7, kind: output, shape index: {}]  }
   0x1   :  { %13 = vsyncpa [#allocation5], 0 }
   0x2   :  { %14 = vsyncpa [#allocation8], 0  ;;  %s31_s26 = sshll.u32 %s5229_s1, 4  ;;  %s32_s26 = int_to_ptr.hbm [resolvable:$true] %s31_s26 }
   0x3   :  { %15 = vsyncpa [#allocation11], 0  ;;  %s4641_s27 = smov [#allocation4]   ;;  %s55_s8 = sshll.u32 %s5231_s3, 4  ;;  %s56_s8 = int_to_ptr.hbm [resolvable:$true] %s55_s8 }
   0x4   :  { %s33_s28 = sshll.u32 %s4641_s27, 4  ;;  %s4642_s9 = smov 128   ;;  %s34_s28 = int_to_ptr.vmem [resolvable:$true] %s33_s28 }
   0x5   :  { %s4643_s10 = smov 8   ;;  %s4644_s11 = smov [#allocation7]  }
   0x6   :  { %39 = dma.hbm_to_vmem [thread:$0]  %s32_s26, 512, %s34_s28, [#allocation5], %s4642_s9, %s4642_s9, %s4643_s10  }
   0x7   :  { %s57_s12 = sshll.u32 %s4644_s11, 4  ;;  %s4645_s13 = smov 64   ;;  %s58_s12 = int_to_ptr.vmem [resolvable:$true] %s57_s12 }
   0x8   :  { %s4646_s14 = smov 4   ;;  %s21_s16 = sshll.u32 %s5228_s0, 4  ;;  %s22_s16 = int_to_ptr.hbm [resolvable:$true] %s21_s16 }
   0x9   :  { %63 = dma.hbm_to_vmem [thread:$0]  %s56_s8, 2048, %s58_s12, [#allocation8], %s4645_s13, %s4645_s13, %s4646_s14  }
   0xa   :  { %s4647_s17 = smov [#allocation2]   ;;  %s45_s20 = sshll.u32 %s5230_s2, 4  ;;  %s46_s20 = int_to_ptr.hbm [resolvable:$true] %s45_s20 }
   0xb   :  { %s23_s18 = sshll.u32 %s4647_s17, 4  ;;  %s4648_s21 = smov [#allocation6]   ;;  %s24_s18 = int_to_ptr.vmem [resolvable:$true] %s23_s18 }
   0xc   :  { %26 = dma.hbm_to_vmem [thread:$0]  %s22_s16, 32, %s24_s18, [#allocation3]  }
   0xd   :  { %s47_s22 = sshll.u32 %s4648_s21, 4  ;;  %s70_s25 = sshll.u32 %s5233_s5, 4  ;;  %s48_s22 = int_to_ptr.vmem [resolvable:$true] %s47_s22  ;;  %s71_s25 = int_to_ptr.hbm [resolvable:$true] %s70_s25 }
   0xe   :  { %50 = dma.hbm_to_vmem [thread:$0]  %s46_s20, 32, %s48_s22, [#allocation5]  }
   0xf   :  { %s4649_s0 = smov [#allocation9]   ;;  %s83_s29 = sshll.u32 %s5234_s6, 4  ;;  %s84_s29 = int_to_ptr.hbm [resolvable:$true] %s83_s29 }
  0x10   :  { %s72_s26 = sshll.u32 %s4649_s0, 4  ;;  %s4650_s30 = smov 192   ;;  %s73_s26 = int_to_ptr.vmem [resolvable:$true] %s72_s26 }
  0x11   :  { %s4651_s2 = smov 12   ;;  %s4652_s8 = smov [#allocation10]  }
  0x12   :  { %78 = dma.hbm_to_vmem [thread:$0]  %s71_s25, 30720, %s73_s26, [#allocation8], %s4650_s30, %s4650_s30, %s4651_s2  }
  0x13   :  { %s85_s9 = sshll.u32 %s4652_s8, 4  ;;  %s4653_s10 = smov 48   ;;  %s86_s9 = int_to_ptr.vmem [resolvable:$true] %s85_s9 }
  0x14   :  { %s4654_s11 = smov 3  }
  0x15   :  { %91 = dma.hbm_to_vmem [thread:$0]  %s84_s29, 480, %s86_s9, [#allocation11], %s4653_s10, %s4653_s10, %s4654_s11  }
  0x16   :  { %4633 = dma.done.wait [#allocation3], 32  }
  0x17   :  { %4634 = vsyncadd [#allocation3], 4294967264 }
  0x18   :  { %4635 = dma.done.wait [#allocation5], 544  }
  0x19   :  { %4636 = vsyncadd [#allocation5], 4294966752 }
  0x1a   :  { %4637 = dma.done.wait [#allocation8], 32768  }
  0x1b   :  { %4638 = vsyncadd [#allocation8], 4294934528 }
  0x1c   :  { %4639 = dma.done.wait [#allocation11], 480  }
  0x1d   :  { %4640 = vsyncadd [#allocation11], 4294966816  ;;  %v3083_v0 = vld [vmem:[#allocation4 + $0x10] sm:$0xf]  ;;  %v4137_v1 = vld [vmem:[#allocation4 + $0x14] sm:$0xf0] }
  0x1e   :  { %v4136_v2 = vld [vmem:[#allocation4 + $0x14] sm:$0xf]  ;;  %v3084_v3 = vor.u32 %v4137_v1, %v3083_v0  ;;  %v3085_v4 = vld [vmem:[#allocation4 + $0x18] sm:$0xf0]  ;;  %v3075_v5 = vld [vmem:[#allocation4] sm:$0xf] }
  0x1f   :  { %v4135_v6 = vld [vmem:[#allocation4 + $0x4] sm:$0xf0]  ;;  %v3088_v7 = vor.u32 %v4136_v2, %v3085_v4  ;;  %v4134_v8 = vld [vmem:[#allocation4 + $0x4] sm:$0xf]  ;;  %v3077_v9 = vld [vmem:[#allocation4 + $0x8] sm:$0xf0] }
  0x20   :  { %159 = vmatpush.bf16.msra.mxu0 %v3084_v3  ;;  %v3076_v10 = vor.u32 %v4135_v6, %v3075_v5  ;;  %v117_v11 = vld [vmem:[#allocation2] sm:$0x3]  ;;  %v3080_v14 = vor.u32 %v4134_v8, %v3077_v9  ;;  %v4144_v15 = vld [vmem:[#allocation7 + $0x30] sm:$0xff]  ;;  %vm149_vm0 = vcmask 261120   ;;  %v4143_v18 = vld [vmem:[#allocation7 + $0x28] sm:$0xff]  ;;  %vm557_vm1 = vcmask 1041408  }
  0x21   :  { %v4145_v12 = vld [vmem:[#allocation7 + $0x38] sm:$0xff]  ;;  %172 = vmatpush.bf16.msra.mxu1 %v3088_v7  ;;  %v4152_v16 = vld [vmem:[#allocation7 + $0x70] sm:$0xff]  ;;  %v118_v17 = vpack.c.bf16 %v117_v11, %v117_v11  ;;  %v4151_v19 = vld [vmem:[#allocation7 + $0x68] sm:$0xff]  ;;  %vm607_vm7 = vcmask 1040384   ;;  %vm610_vm8 = vcmask 1041409   ;;  %vm612_vm9 = vcmask 1042433  }
  0x22   :  { %v4153_v13 = vld [vmem:[#allocation7 + $0x78] sm:$0xff]  ;;  %315 = vmatpush.bf16.msra.mxu2 %v4145_v12  ;;  %v4142_v20 = vld [vmem:[#allocation7 + $0x20] sm:$0xff]  ;;  %v4140_v24 = vld [vmem:[#allocation7 + $0x10] sm:$0xff] }
  0x23   :  { %328 = vmatpush.bf16.msra.mxu3 %v4153_v13  ;;  %v4150_v21 = vld [vmem:[#allocation7 + $0x60] sm:$0xff]  ;;  %v4141_v22 = vld [vmem:[#allocation7 + $0x18] sm:$0xff]  ;;  %v4148_v25 = vld [vmem:[#allocation7 + $0x50] sm:$0xff] }
  0x24   :  { %160 = vmatpush.bf16.msra.mxu0 %v3076_v10  ;;  %v4149_v23 = vld [vmem:[#allocation7 + $0x58] sm:$0xff]  ;;  %v4139_v26 = vld [vmem:[#allocation7 + $0x8] sm:$0xff]  ;;  %v4138_v28 = vld [vmem:[#allocation7] sm:$0xff] }
  0x25   :  { %173 = vmatpush.bf16.msra.mxu1 %v3080_v14  ;;  %v4147_v27 = vld [vmem:[#allocation7 + $0x48] sm:$0xff]  ;;  %v4146_v29 = vld [vmem:[#allocation7 + $0x40] sm:$0xff]  ;;  %v4176_v31 = vld [vmem:[#allocation9 + $0xb0] sm:$0xf0] }
  0x26   :  { %316 = vmatpush.bf16.msra.mxu2 %v4144_v15  ;;  %v3241_v30 = vld [vmem:[#allocation9 + $0xa8] sm:$0xf]  ;;  %v4175_v32 = vld [vmem:[#allocation9 + $0xac] sm:$0xf]  ;;  %v3243_v34 = vld [vmem:[#allocation9 + $0xb4] sm:$0xf0] }
  0x27   :  { %329 = vmatpush.bf16.msra.mxu3 %v4152_v16  ;;  %3089 = vmatmul.msk.bf16.vlgmr.msra.gmra.mxu0 %vm149_vm0, %v118_v17  ;;  %v3242_v33 = vor.u32 %v4176_v31, %v3241_v30  ;;  %v3249_v35 = vld [vmem:[#allocation9 + $0xb0] sm:$0xf]  ;;  %v4177_v36 = vld [vmem:[#allocation9 + $0xb8] sm:$0xf0]  ;;  %v3246_v37 = vor.u32 %v4175_v32, %v3243_v34  ;;  %v3338_v39 = vld [vmem:[#allocation9 + $0x168] sm:$0xf] }
  0x28   :  { %3090 = vmatmul.msk.bf16.vlgmr.msra.gmra.mxu1 %vm149_vm0, %v118_v17  ;;  %v3250_v38 = vor.u32 %v4177_v36, %v3249_v35  ;;  %v4200_v40 = vld [vmem:[#allocation9 + $0x170] sm:$0xf0]  ;;  %v3229_v41 = vld [vmem:[#allocation9 + $0x90] sm:$0xf]  ;;  %v4173_v43 = vld [vmem:[#allocation9 + $0x98] sm:$0xf0] }
  0x29   :  { %518 = vmatpush.bf16.msrb.mxu0 %v3242_v33  ;;  %v3339_v42 = vor.u32 %v4200_v40, %v3338_v39  ;;  %v4172_v44 = vld [vmem:[#allocation9 + $0x94] sm:$0xf]  ;;  %v3231_v45 = vld [vmem:[#allocation9 + $0x9c] sm:$0xf0]  ;;  %531 = vmatpush.bf16.msrb.mxu1 %v3246_v37  ;;  %v3230_v46 = vor.u32 %v4173_v43, %v3229_v41  ;;  %v3237_v48 = vld [vmem:[#allocation9 + $0x98] sm:$0xf] }
  0x2a   :  { %317 = vmatpush.bf16.msra.mxu2 %v4143_v18  ;;  %v3234_v47 = vor.u32 %v4172_v44, %v3231_v45  ;;  %v4174_v49 = vld [vmem:[#allocation9 + $0xa0] sm:$0xf0]  ;;  %v3326_v50 = vld [vmem:[#allocation9 + $0x150] sm:$0xf]  ;;  %v4197_v52 = vld [vmem:[#allocation9 + $0x158] sm:$0xf0] }
  0x2b   :  { %330 = vmatpush.bf16.msra.mxu3 %v4151_v19  ;;  %v3238_v51 = vor.u32 %v4174_v49, %v3237_v48  ;;  %v3217_v53 = vld [vmem:[#allocation9 + $0x78] sm:$0xf]  ;;  %v4170_v54 = vld [vmem:[#allocation9 + $0x80] sm:$0xf0]  ;;  %v3327_v55 = vor.u32 %v4197_v52, %v3326_v50  ;;  %v4169_v56 = vld [vmem:[#allocation9 + $0x7c] sm:$0xf] }
  0x2c   :  { %v3219_v57 = vld [vmem:[#allocation9 + $0x84] sm:$0xf0]  ;;  %v3225_v58 = vld [vmem:[#allocation9 + $0x80] sm:$0xf]  ;;  %v3218_v59 = vor.u32 %v4170_v54, %v3217_v53  ;;  %v4171_v60 = vld [vmem:[#allocation9 + $0x88] sm:$0xf0] }
  0x2d   :  { %519 = vmatpush.bf16.msrb.mxu0 %v3230_v46  ;;  %v3314_v61 = vld [vmem:[#allocation9 + $0x138] sm:$0xf]  ;;  %v4194_v62 = vld [vmem:[#allocation9 + $0x140] sm:$0xf0]  ;;  %532 = vmatpush.bf16.msrb.mxu1 %v3234_v47  ;;  %v3222_v63 = vor.u32 %v4169_v56, %v3219_v57  ;;  %v3226_v0 = vor.u32 %v4171_v60, %v3225_v58  ;;  %v3205_v1 = vld [vmem:[#allocation9 + $0x60] sm:$0xf] }
  0x2e   :  { %318 = vmatpush.bf16.msra.mxu2 %v4142_v20  ;;  %v4167_v2 = vld [vmem:[#allocation9 + $0x68] sm:$0xf0]  ;;  %v4166_v3 = vld [vmem:[#allocation9 + $0x64] sm:$0xf]  ;;  %v3315_v4 = vor.u32 %v4194_v62, %v3314_v61  ;;  %v3207_v5 = vld [vmem:[#allocation9 + $0x6c] sm:$0xf0] }
  0x2f   :  { %331 = vmatpush.bf16.msra.mxu3 %v4150_v21  ;;  %v3213_v6 = vld [vmem:[#allocation9 + $0x68] sm:$0xf]  ;;  %v4168_v7 = vld [vmem:[#allocation9 + $0x70] sm:$0xf0]  ;;  %v3302_v8 = vld [vmem:[#allocation9 + $0x120] sm:$0xf]  ;;  %v3206_v10 = vor.u32 %v4167_v2, %v3205_v1  ;;  %v3210_v11 = vor.u32 %v4166_v3, %v3207_v5 }
  0x30   :  { %v4191_v9 = vld [vmem:[#allocation9 + $0x128] sm:$0xf0]  ;;  %v3214_v12 = vor.u32 %v4168_v7, %v3213_v6  ;;  %v3193_v13 = vld [vmem:[#allocation9 + $0x48] sm:$0xf]  ;;  %v4164_v14 = vld [vmem:[#allocation9 + $0x50] sm:$0xf0] }
  0x31   :  { %520 = vmatpush.bf16.msrb.mxu0 %v3218_v59  ;;  %533 = vmatpush.bf16.msrb.mxu1 %v3222_v63  ;;  %v4163_v15 = vld [vmem:[#allocation9 + $0x4c] sm:$0xf]  ;;  %v3303_v16 = vor.u32 %v4191_v9, %v3302_v8  ;;  %v3195_v17 = vld [vmem:[#allocation9 + $0x54] sm:$0xf0]  ;;  %v3201_v18 = vld [vmem:[#allocation9 + $0x50] sm:$0xf] }
  0x32   :  { %319 = vmatpush.bf16.msra.mxu2 %v4141_v22  ;;  %v4165_v19 = vld [vmem:[#allocation9 + $0x58] sm:$0xf0]  ;;  %v3290_v20 = vld [vmem:[#allocation9 + $0x108] sm:$0xf]  ;;  %v4188_v21 = vld [vmem:[#allocation9 + $0x110] sm:$0xf0] }
  0x33   :  { %332 = vmatpush.bf16.msra.mxu3 %v4149_v23  ;;  %v123_v22 = vld [vmem:[#allocation6] sm:$0x3]  ;;  %v3194_v23 = vor.u32 %v4164_v14, %v3193_v13  ;;  %v3183_v30 = vld [vmem:[#allocation9 + $0x3c] sm:$0xf0]  ;;  %v3189_v31 = vld [vmem:[#allocation9 + $0x38] sm:$0xf] }
  0x34   :  { %v4162_v32 = vld [vmem:[#allocation9 + $0x40] sm:$0xf0]  ;;  %v3278_v33 = vld [vmem:[#allocation9 + $0xf0] sm:$0xf]  ;;  %v4185_v34 = vld [vmem:[#allocation9 + $0xf8] sm:$0xf0] }
  0x35   :  { %521 = vmatpush.bf16.msrb.mxu0 %v3206_v10  ;;  %534 = vmatpush.bf16.msrb.mxu1 %v3210_v11  ;;  %v125_v35 = vperm.slane %v123_v22, 0  ;;  %v126_v36 = vperm.slane %v123_v22, 1  ;;  %v3190_v39 = vor.u32 %v4162_v32, %v3189_v31  ;;  %v3169_v40 = vld [vmem:[#allocation9 + $0x18] sm:$0xf]  ;;  %v4158_v41 = vld [vmem:[#allocation9 + $0x20] sm:$0xf0]  ;;  %v3279_v43 = vor.u32 %v4185_v34, %v3278_v33 }
  0x36   :  { %320 = vmatpush.bf16.msra.mxu2 %v4140_v24  ;;  %v3198_v24 = vor.u32 %v4163_v15, %v3195_v17  ;;  %v3171_v44 = vld [vmem:[#allocation9 + $0x24] sm:$0xf0]  ;;  %v3177_v45 = vld [vmem:[#allocation9 + $0x20] sm:$0xf]  ;;  %v4159_v46 = vld [vmem:[#allocation9 + $0x28] sm:$0xf0] }
  0x37   :  { %333 = vmatpush.bf16.msra.mxu3 %v4148_v25  ;;  %v3202_v25 = vor.u32 %v4165_v19, %v3201_v18  ;;  %v3266_v47 = vld [vmem:[#allocation9 + $0xd8] sm:$0xf]  ;;  %v4182_v48 = vld [vmem:[#allocation9 + $0xe0] sm:$0xf0]  ;;  %v3157_v49 = vld [vmem:[#allocation9] sm:$0xf]  ;;  %v3178_v58 = vor.u32 %v4159_v46, %v3177_v45 }
  0x38   :  { %v4155_v52 = vld [vmem:[#allocation9 + $0x8] sm:$0xf0]  ;;  %v4154_v53 = vld [vmem:[#allocation9 + $0x4] sm:$0xf]  ;;  %v3159_v54 = vld [vmem:[#allocation9 + $0xc] sm:$0xf0]  ;;  %v3267_v63 = vor.u32 %v4182_v48, %v3266_v47 }
  0x39   :  { %522 = vmatpush.bf16.msrb.mxu0 %v3194_v23  ;;  %535 = vmatpush.bf16.msrb.mxu1 %v3198_v24  ;;  %v3165_v59 = vld [vmem:[#allocation9 + $0x8] sm:$0xf]  ;;  %v4156_v60 = vld [vmem:[#allocation9 + $0x10] sm:$0xf0]  ;;  %v3254_v61 = vld [vmem:[#allocation9 + $0xc0] sm:$0xf]  ;;  %v3158_v7 = vor.u32 %v4155_v52, %v3157_v49  ;;  %v3162_v11 = vor.u32 %v4154_v53, %v3159_v54 }
  0x3a   :  { %321 = vmatpush.bf16.msra.mxu2 %v4139_v26  ;;  %v3181_v26 = vld [vmem:[#allocation9 + $0x30] sm:$0xf]  ;;  %v4199_v1 = vld [vmem:[#allocation9 + $0x16c] sm:$0xf]  ;;  %v3340_v2 = vld [vmem:[#allocation9 + $0x174] sm:$0xf0] }
  0x3b   :  { %334 = vmatpush.bf16.msra.mxu3 %v4147_v27  ;;  %v4161_v27 = vld [vmem:[#allocation9 + $0x38] sm:$0xf0]  ;;  %v3436_v8 = vld [vmem:[#allocation9 + $0x228] sm:$0xf]  ;;  %v4224_v9 = vld [vmem:[#allocation9 + $0x230] sm:$0xf0]  ;;  %v3343_v17 = vor.u32 %v4199_v1, %v3340_v2 }
  0x3c   :  { %v3182_v37 = vor.u32 %v4161_v27, %v3181_v26  ;;  %v4201_v5 = vld [vmem:[#allocation9 + $0x178] sm:$0xf0]  ;;  %v4223_v13 = vld [vmem:[#allocation9 + $0x22c] sm:$0xf]  ;;  %v3438_v14 = vld [vmem:[#allocation9 + $0x234] sm:$0xf0]  ;;  %v3437_v19 = vor.u32 %v4224_v9, %v3436_v8 }
  0x3d   :  { %v3334_v22 = vld [vmem:[#allocation9 + $0x158] sm:$0xf]  ;;  %v3441_v24 = vor.u32 %v4223_v13, %v3438_v14  ;;  %v3424_v26 = vld [vmem:[#allocation9 + $0x210] sm:$0xf]  ;;  %v4221_v27 = vld [vmem:[#allocation9 + $0x218] sm:$0xf0] }
  0x3e   :  { %322 = vmatpush.bf16.msra.mxu2 %v4138_v28  ;;  %v4160_v28 = vld [vmem:[#allocation9 + $0x34] sm:$0xf]  ;;  %523 = vmatpush.bf16.msrb.mxu0 %v3182_v37  ;;  %v3425_v33 = vor.u32 %v4221_v27, %v3424_v26  ;;  %v4193_v34 = vld [vmem:[#allocation9 + $0x13c] sm:$0xf]  ;;  %v4190_v46 = vld [vmem:[#allocation9 + $0x124] sm:$0xf] }
  0x3f   :  { %335 = vmatpush.bf16.msra.mxu3 %v4146_v29  ;;  %v3291_v29 = vor.u32 %v4188_v21, %v3290_v20  ;;  %v4196_v20 = vld [vmem:[#allocation9 + $0x154] sm:$0xf]  ;;  %v3328_v21 = vld [vmem:[#allocation9 + $0x15c] sm:$0xf0]  ;;  %v3304_v47 = vld [vmem:[#allocation9 + $0x12c] sm:$0xf0] }
  0x40   :  { %v3331_v31 = vor.u32 %v4196_v20, %v3328_v21  ;;  %v3310_v48 = vld [vmem:[#allocation9 + $0x128] sm:$0xf]  ;;  %v4215_v52 = vld [vmem:[#allocation9 + $0x1e8] sm:$0xf0]  ;;  %v4214_v53 = vld [vmem:[#allocation9 + $0x1e4] sm:$0xf] }
  0x41   :  { %v3402_v54 = vld [vmem:[#allocation9 + $0x1ec] sm:$0xf0]  ;;  %v4211_v1 = vld [vmem:[#allocation9 + $0x1cc] sm:$0xf]  ;;  %v3390_v2 = vld [vmem:[#allocation9 + $0x1d4] sm:$0xf0] }
  0x42   :  { %544 = vmatpush.bf16.msrb.mxu2 %v3250_v38  ;;  %v3186_v38 = vor.u32 %v4160_v28, %v3183_v30  ;;  %v3426_v30 = vld [vmem:[#allocation9 + $0x21c] sm:$0xf0]  ;;  %v3286_v9 = vld [vmem:[#allocation9 + $0xf8] sm:$0xf]  ;;  %v4209_v13 = vld [vmem:[#allocation9 + $0x1b8] sm:$0xf0] }
  0x43   :  { %796 = vmatpush.bf16.msrb.mxu3 %v3339_v42  ;;  %v4157_v42 = vld [vmem:[#allocation9 + $0x1c] sm:$0xf]  ;;  %v3280_v8 = vld [vmem:[#allocation9 + $0xfc] sm:$0xf0]  ;;  %v3268_v20 = vld [vmem:[#allocation9 + $0xe4] sm:$0xf0] }
  0x44   :  { %536 = vmatpush.bf16.msrb.mxu1 %v3186_v38  ;;  %v3174_v57 = vor.u32 %v4157_v42, %v3171_v44  ;;  %v4195_v38 = vld [vmem:[#allocation9 + $0x148] sm:$0xf0]  ;;  %v3414_v42 = vld [vmem:[#allocation9 + $0x204] sm:$0xf0]  ;;  %v3274_v21 = vld [vmem:[#allocation9 + $0xe0] sm:$0xf] }
  0x46   :  { %545 = vmatpush.bf16.msrb.mxu2 %v3238_v51  ;;  %v3170_v51 = vor.u32 %v4158_v41, %v3169_v40  ;;  %v4218_v40 = vld [vmem:[#allocation9 + $0x200] sm:$0xf0]  ;;  %v4217_v41 = vld [vmem:[#allocation9 + $0x1fc] sm:$0xf] }
  0x47   :  { %797 = vmatpush.bf16.msrb.mxu3 %v3327_v55  ;;  %v3417_v49 = vor.u32 %v4217_v41, %v3414_v42  ;;  %v3354_v41 = vld [vmem:[#allocation9 + $0x18c] sm:$0xf0] }
  0x48   :  { %524 = vmatpush.bf16.msrb.mxu0 %v3170_v51  ;;  %537 = vmatpush.bf16.msrb.mxu1 %v3174_v57  ;;  %v3400_v51 = vld [vmem:[#allocation9 + $0x1e0] sm:$0xf] }
  0x49   :  { %v3401_v57 = vor.u32 %v4215_v52, %v3400_v51  ;;  %v4248_v51 = vld [vmem:[#allocation9 + $0x2f0] sm:$0xf0]  ;;  %v4247_v52 = vld [vmem:[#allocation9 + $0x2ec] sm:$0xf] }
  0x4a   :  { %546 = vmatpush.bf16.msrb.mxu2 %v3226_v0  ;;  %v4179_v0 = vld [vmem:[#allocation9 + $0xc8] sm:$0xf0] }
  0x4b   :  { %798 = vmatpush.bf16.msrb.mxu3 %v3315_v4  ;;  %v3346_v4 = vld [vmem:[#allocation9 + $0x170] sm:$0xf] }
  0x4c   :  { %v3347_v18 = vor.u32 %v4201_v5, %v3346_v4  ;;  %525 = vmatpush.bf16.msrb.mxu0 %v3158_v7  ;;  %538 = vmatpush.bf16.msrb.mxu1 %v3162_v11  ;;  %v4184_v7 = vld [vmem:[#allocation9 + $0xf4] sm:$0xf]  ;;  %v4186_v11 = vld [vmem:[#allocation9 + $0x100] sm:$0xf0] }
  0x4d   :  { %v3287_v14 = vor.u32 %v4186_v11, %v3286_v9  ;;  %v4219_v11 = vld [vmem:[#allocation9 + $0x208] sm:$0xf0] }
  0x4e   :  { %547 = vmatpush.bf16.msrb.mxu2 %v3214_v12  ;;  %v3166_v12 = vor.u32 %v4156_v60, %v3165_v59  ;;  %v3292_v59 = vld [vmem:[#allocation9 + $0x114] sm:$0xf0]  ;;  %v3298_v60 = vld [vmem:[#allocation9 + $0x110] sm:$0xf] }
  0x4f   :  { %799 = vmatpush.bf16.msrb.mxu3 %v3303_v16  ;;  %v3255_v16 = vor.u32 %v4179_v0, %v3254_v61  ;;  %v3405_v61 = vor.u32 %v4214_v53, %v3402_v54  ;;  %v4212_v0 = vld [vmem:[#allocation9 + $0x1d0] sm:$0xf0]  ;;  %v3536_v53 = vld [vmem:[#allocation9 + $0x2f4] sm:$0xf0] }
  0x50   :  { %809 = vmatpush.bf16.msra.mxu0 %v3343_v17  ;;  %822 = vmatpush.bf16.msra.mxu1 %v3347_v18  ;;  %v3378_v17 = vld [vmem:[#allocation9 + $0x1bc] sm:$0xf0] }
  0x52   :  { %548 = vmatpush.bf16.msrb.mxu2 %v3202_v25  ;;  %v4198_v25 = vld [vmem:[#allocation9 + $0x160] sm:$0xf0] }
  0x53   :  { %800 = vmatpush.bf16.msrb.mxu3 %v3291_v29  ;;  %v4220_v29 = vld [vmem:[#allocation9 + $0x214] sm:$0xf]  ;;  %v3335_v32 = vor.u32 %v4198_v25, %v3334_v22  ;;  %v4206_v25 = vld [vmem:[#allocation9 + $0x1a0] sm:$0xf0] }
  0x54   :  { %v3429_v37 = vor.u32 %v4220_v29, %v3426_v30  ;;  %810 = vmatpush.bf16.msra.mxu0 %v3331_v31  ;;  %v3366_v29 = vld [vmem:[#allocation9 + $0x1a4] sm:$0xf0]  ;;  %v4178_v31 = vld [vmem:[#allocation9 + $0xc4] sm:$0xf] }
  0x55   :  { %823 = vmatpush.bf16.msra.mxu1 %v3335_v32  ;;  %v3256_v32 = vld [vmem:[#allocation9 + $0xcc] sm:$0xf0] }
  0x56   :  { %549 = vmatpush.bf16.msrb.mxu2 %v3190_v39  ;;  %v3412_v39 = vld [vmem:[#allocation9 + $0x1f8] sm:$0xf] }
  0x57   :  { %801 = vmatpush.bf16.msrb.mxu3 %v3279_v43  ;;  %v3413_v45 = vor.u32 %v4218_v40, %v3412_v39  ;;  %v4202_v40 = vld [vmem:[#allocation9 + $0x184] sm:$0xf] }
  0x58   :  { %v3357_v42 = vor.u32 %v4202_v40, %v3354_v41  ;;  %v4235_v40 = vld [vmem:[#allocation9 + $0x28c] sm:$0xf]  ;;  %v3488_v41 = vld [vmem:[#allocation9 + $0x294] sm:$0xf0] }
  0x5a   :  { %550 = vmatpush.bf16.msrb.mxu2 %v3178_v58  ;;  %v4187_v58 = vld [vmem:[#allocation9 + $0x10c] sm:$0xf] }
  0x5b   :  { %802 = vmatpush.bf16.msrb.mxu3 %v3267_v63  ;;  %v3388_v63 = vld [vmem:[#allocation9 + $0x1c8] sm:$0xf] }
  0x5c   :  { %v3389_v5 = vor.u32 %v4212_v0, %v3388_v63  ;;  %v3539_v63 = vor.u32 %v4247_v52, %v3536_v53  ;;  %v4232_v52 = vld [vmem:[#allocation9 + $0x274] sm:$0xf]  ;;  %v3476_v53 = vld [vmem:[#allocation9 + $0x27c] sm:$0xf0] }
  0x5e   :  { %551 = vmatpush.bf16.msrb.mxu2 %v3166_v12  ;;  %v3376_v12 = vld [vmem:[#allocation9 + $0x1b0] sm:$0xf] }
  0x5f   :  { %803 = vmatpush.bf16.msrb.mxu3 %v3255_v16  ;;  %v4208_v16 = vld [vmem:[#allocation9 + $0x1b4] sm:$0xf] }
  0x60   :  { %v3381_v18 = vor.u32 %v4208_v16, %v3378_v17  ;;  %v4241_v16 = vld [vmem:[#allocation9 + $0x2bc] sm:$0xf]  ;;  %v3512_v17 = vld [vmem:[#allocation9 + $0x2c4] sm:$0xf0] }
  0xa4   :  { %v162_v50 = vpop.f32.mrf.mxu0 }
  0xa5   :  { %v163_v55 = vadd.f32 %v162_v50, %v125_v35  ;;  %v175_v56 = vpop.f32.mrf.mxu1  ;;  %v3316_v35 = vld [vmem:[#allocation9 + $0x144] sm:$0xf0]  ;;  %v4192_v50 = vld [vmem:[#allocation9 + $0x130] sm:$0xf0] }
  0xa6   :  { %v176_v62 = vadd.f32 %v175_v56, %v126_v36  ;;  %v3322_v36 = vld [vmem:[#allocation9 + $0x140] sm:$0xf]  ;;  %v3319_v43 = vor.u32 %v4193_v34, %v3316_v35  ;;  %v3311_v56 = vor.u32 %v4192_v50, %v3310_v48  ;;  %v3259_v34 = vor.u32 %v4178_v31, %v3256_v32  ;;  %v4180_v35 = vld [vmem:[#allocation9 + $0xd0] sm:$0xf0]  ;;  %v3444_v48 = vld [vmem:[#allocation9 + $0x230] sm:$0xf] }
  0xa7   :  { %v179_v3 = vmax.f32 %v163_v55, 0.0  ;;  %v3323_v44 = vor.u32 %v4195_v38, %v3322_v36  ;;  %v3307_v55 = vor.u32 %v4190_v46, %v3304_v47  ;;  %v3352_v36 = vld [vmem:[#allocation9 + $0x180] sm:$0xf]  ;;  %v3534_v50 = vld [vmem:[#allocation9 + $0x2e8] sm:$0xf] }
  0xa8   :  { %v180_v6 = vmax.f32 %v176_v62, 0.0  ;;  %811 = vmatpush.bf16.msra.mxu0 %v3319_v43  ;;  %v4189_v62 = vld [vmem:[#allocation9 + $0x118] sm:$0xf0]  ;;  %v4240_v31 = vld [vmem:[#allocation9 + $0x2b0] sm:$0xf0] }
  0xa9   :  { %v181_v10 = vpack.c.bf16 %v179_v3, %v179_v3  ;;  %824 = vmatpush.bf16.msra.mxu1 %v3323_v44  ;;  %v3295_v3 = vor.u32 %v4187_v58, %v3292_v59  ;;  %v3299_v4 = vor.u32 %v4189_v62, %v3298_v60  ;;  %v4408_v43 = vld [vmem:[%s5232_s4] ss:$0 sm:$0xff]  ;;  %v3535_v59 = vor.u32 %v4248_v51, %v3534_v50  ;;  %v3432_v60 = vld [vmem:[#allocation9 + $0x218] sm:$0xf]  ;;  %v3474_v50 = vld [vmem:[#allocation9 + $0x270] sm:$0xf] }
  0xaa   :  { %v182_v15 = vpack.c.bf16 %v180_v6, %v180_v6  ;;  %v3393_v6 = vor.u32 %v4211_v1, %v3390_v2  ;;  %v3522_v1 = vld [vmem:[#allocation9 + $0x2d0] sm:$0xf]  ;;  %v4245_v2 = vld [vmem:[#allocation9 + $0x2d8] sm:$0xf0] }
  0xab   :  { %323 = vmatmul.bf16.vlgmr.msra.gmra.mxu2 %v181_v10  ;;  %v3283_v10 = vor.u32 %v4184_v7, %v3280_v8  ;;  %v4246_v7 = vld [vmem:[#allocation9 + $0x2e0] sm:$0xf0]  ;;  %v3523_v9 = vor.u32 %v4245_v2, %v3522_v1  ;;  %v4233_v51 = vld [vmem:[#allocation9 + $0x278] sm:$0xf0]  ;;  %v3464_v2 = vld [vmem:[#allocation9 + $0x264] sm:$0xf0] }
  0xac   :  { %336 = vmatmul.bf16.vlgmr.msra.gmra.mxu3 %v182_v15  ;;  %v164_v23 = vpop.f32.mrf.mxu0  ;;  %1067 = vmatpush.bf16.msra.mxu2 %v3437_v19  ;;  %v3377_v15 = vor.u32 %v4209_v13, %v3376_v12  ;;  %v4181_v19 = vld [vmem:[#allocation9 + $0xdc] sm:$0xf] }
  0xad   :  { %v177_v28 = vpop.f32.mrf.mxu1  ;;  %1080 = vmatpush.bf16.msra.mxu3 %v3441_v24  ;;  %812 = vmatpush.bf16.msra.mxu0 %v3307_v55  ;;  %v3271_v22 = vor.u32 %v4181_v19, %v3268_v20  ;;  %v4183_v23 = vld [vmem:[#allocation9 + $0xe8] sm:$0xf0]  ;;  %v3364_v24 = vld [vmem:[#allocation9 + $0x198] sm:$0xf]  ;;  %v3542_v55 = vld [vmem:[#allocation9 + $0x2f0] sm:$0xf] }
  0xae   :  { %825 = vmatpush.bf16.msra.mxu1 %v3311_v56  ;;  %v3275_v26 = vor.u32 %v4183_v23, %v3274_v21  ;;  %v3365_v27 = vor.u32 %v4206_v25, %v3364_v24  ;;  %v4205_v28 = vld [vmem:[#allocation9 + $0x19c] sm:$0xf]  ;;  %v4243_v19 = vld [vmem:[#allocation9 + $0x2c8] sm:$0xf0]  ;;  %v4216_v23 = vld [vmem:[#allocation9 + $0x1f0] sm:$0xf0]  ;;  %v3515_v24 = vor.u32 %v4241_v16, %v3512_v17 }
  0xaf   :  { %v3369_v30 = vor.u32 %v4205_v28, %v3366_v29  ;;  %v4249_v56 = vld [vmem:[#allocation9 + $0x2f8] sm:$0xf0]  ;;  %v4238_v28 = vld [vmem:[#allocation9 + $0x2a4] sm:$0xf]  ;;  %v3500_v29 = vld [vmem:[#allocation9 + $0x2ac] sm:$0xf0] }
  0xb0   :  { %1068 = vmatpush.bf16.msra.mxu2 %v3425_v33  ;;  %v3262_v33 = vld [vmem:[#allocation9 + $0xc8] sm:$0xf]  ;;  %v3543_v0 = vor.u32 %v4249_v56, %v3542_v55  ;;  %v4234_v55 = vld [vmem:[#allocation9 + $0x280] sm:$0xf0]  ;;  %v4229_v1 = vld [vmem:[#allocation9 + $0x25c] sm:$0xf] }
  0xb1   :  { %1081 = vmatpush.bf16.msra.mxu3 %v3429_v37  ;;  %813 = vmatpush.bf16.msra.mxu0 %v3295_v3  ;;  %v4203_v37 = vld [vmem:[#allocation9 + $0x188] sm:$0xf0]  ;;  %v3263_v38 = vor.u32 %v4180_v35, %v3262_v33  ;;  %v4244_v3 = vld [vmem:[#allocation9 + $0x2d4] sm:$0xf]  ;;  %v4213_v35 = vld [vmem:[#allocation9 + $0x1d8] sm:$0xf0] }
  0xb2   :  { %826 = vmatpush.bf16.msra.mxu1 %v3299_v4  ;;  %v3353_v39 = vor.u32 %v4203_v37, %v3352_v36  ;;  %v3503_v36 = vor.u32 %v4238_v28, %v3500_v29  ;;  %v4228_v16 = vld [vmem:[#allocation9 + $0x250] sm:$0xf0]  ;;  %v3632_v17 = vld [vmem:[#allocation9 + $0x3a8] sm:$0xf] }
  0xb4   :  { %1069 = vmatpush.bf16.msra.mxu2 %v3413_v45 }
  0xb5   :  { %1082 = vmatpush.bf16.msra.mxu3 %v3417_v49  ;;  %814 = vmatpush.bf16.msra.mxu0 %v3283_v10  ;;  %v4225_v49 = vld [vmem:[#allocation9 + $0x238] sm:$0xf0]  ;;  %v3420_v10 = vld [vmem:[#allocation9 + $0x200] sm:$0xf] }
  0xb6   :  { %827 = vmatpush.bf16.msra.mxu1 %v3287_v14  ;;  %v3445_v58 = vor.u32 %v4225_v49, %v3444_v48  ;;  %v3510_v14 = vld [vmem:[#allocation9 + $0x2b8] sm:$0xf]  ;;  %v3421_v20 = vor.u32 %v4219_v11, %v3420_v10  ;;  %v3491_v48 = vor.u32 %v4235_v40, %v3488_v41  ;;  %v4227_v10 = vld [vmem:[#allocation9 + $0x248] sm:$0xf0]  ;;  %v3467_v11 = vor.u32 %v4229_v1, %v3464_v2  ;;  %v4293_v40 = vld [vmem:[#allocation9 + $0x458] sm:$0xf0] }
  0xb7   :  { %v4287_v1 = vld [vmem:[#allocation9 + $0x428] sm:$0xf0] }
  0xb8   :  { %1070 = vmatpush.bf16.msra.mxu2 %v3401_v57 }
  0xb9   :  { %1083 = vmatpush.bf16.msra.mxu3 %v3405_v61  ;;  %815 = vmatpush.bf16.msra.mxu0 %v3271_v22  ;;  %v4222_v61 = vld [vmem:[#allocation9 + $0x220] sm:$0xf0]  ;;  %v3408_v22 = vld [vmem:[#allocation9 + $0x1e8] sm:$0xf] }
  0xba   :  { %828 = vmatpush.bf16.msra.mxu1 %v3275_v26  ;;  %v3433_v8 = vor.u32 %v4222_v61, %v3432_v60  ;;  %v3498_v26 = vld [vmem:[#allocation9 + $0x2a0] sm:$0xf]  ;;  %v3409_v32 = vor.u32 %v4216_v23, %v3408_v22  ;;  %v4207_v60 = vld [vmem:[#allocation9 + $0x1a8] sm:$0xf0]  ;;  %v3479_v61 = vor.u32 %v4232_v52, %v3476_v53  ;;  %v4290_v52 = vld [vmem:[#allocation9 + $0x440] sm:$0xf0] }
  0xbc   :  { %1071 = vmatpush.bf16.msra.mxu2 %v3389_v5  ;;  %v3524_v5 = vld [vmem:[#allocation9 + $0x2dc] sm:$0xf0] }
  0xbd   :  { %1084 = vmatpush.bf16.msra.mxu3 %v3393_v6  ;;  %816 = vmatpush.bf16.msra.mxu0 %v3259_v34  ;;  %v3530_v6 = vld [vmem:[#allocation9 + $0x2d8] sm:$0xf]  ;;  %v3527_v12 = vor.u32 %v4244_v3, %v3524_v5  ;;  %v3396_v34 = vld [vmem:[#allocation9 + $0x1d0] sm:$0xf]  ;;  %v3470_v3 = vld [vmem:[#allocation9 + $0x260] sm:$0xf] }
  0xbe   :  { %829 = vmatpush.bf16.msra.mxu1 %v3263_v38  ;;  %v3531_v13 = vor.u32 %v4246_v7, %v3530_v6  ;;  %v3486_v38 = vld [vmem:[#allocation9 + $0x288] sm:$0xf] }
  0xbf   :  { %v3360_v5 = vld [vmem:[#allocation9 + $0x188] sm:$0xf] }
  0xc0   :  { %1072 = vmatpush.bf16.msra.mxu2 %v3377_v15  ;;  %v4242_v15 = vld [vmem:[#allocation9 + $0x2c0] sm:$0xf0] }
  0xc1   :  { %1085 = vmatpush.bf16.msra.mxu3 %v3381_v18  ;;  %v3518_v18 = vld [vmem:[#allocation9 + $0x2c0] sm:$0xf]  ;;  %v3511_v21 = vor.u32 %v4242_v15, %v3510_v14  ;;  %v3452_v14 = vld [vmem:[#allocation9 + $0x24c] sm:$0xf0]  ;;  %v3458_v15 = vld [vmem:[#allocation9 + $0x248] sm:$0xf] }
  0xc2   :  { %v3519_v25 = vor.u32 %v4243_v19, %v3518_v18  ;;  %v4272_v18 = vld [vmem:[#allocation9 + $0x3b0] sm:$0xf0]  ;;  %v4271_v19 = vld [vmem:[#allocation9 + $0x3ac] sm:$0xf]  ;;  %v3459_v28 = vor.u32 %v4228_v16, %v3458_v15  ;;  %v3572_v16 = vld [vmem:[#allocation9 + $0x330] sm:$0xf] }
  0xc3   :  { %v3633_v29 = vor.u32 %v4272_v18, %v3632_v17  ;;  %v4257_v17 = vld [vmem:[#allocation9 + $0x338] sm:$0xf0] }
  0xc4   :  { %1073 = vmatpush.bf16.msra.mxu2 %v3365_v27  ;;  %v4239_v27 = vld [vmem:[#allocation9 + $0x2a8] sm:$0xf0] }
  0xc5   :  { %1086 = vmatpush.bf16.msra.mxu3 %v3369_v30  ;;  %v3506_v30 = vld [vmem:[#allocation9 + $0x2a8] sm:$0xf]  ;;  %v3499_v33 = vor.u32 %v4239_v27, %v3498_v26  ;;  %v4296_v26 = vld [vmem:[#allocation9 + $0x470] sm:$0xf0] }
  0xc6   :  { %v3507_v37 = vor.u32 %v4240_v31, %v3506_v30  ;;  %v3620_v31 = vld [vmem:[#allocation9 + $0x390] sm:$0xf] }
  0xc8   :  { %1074 = vmatpush.bf16.msra.mxu2 %v3353_v39  ;;  %v4236_v39 = vld [vmem:[#allocation9 + $0x290] sm:$0xf0] }
  0xc9   :  { %1087 = vmatpush.bf16.msra.mxu3 %v3357_v42  ;;  %v3494_v42 = vld [vmem:[#allocation9 + $0x290] sm:$0xf] }
 0x12e   :  { %v324_v44 = vpop.f32.mrf.mxu2 }
 0x12f   :  { %v325_v45 = vadd.f32 %v4408_v43, %v324_v44  ;;  %v337_v46 = vpop.f32.mrf.mxu3  ;;  %v4237_v43 = vld [vmem:[#allocation9 + $0x298] sm:$0xf0]  ;;  %v3397_v44 = vor.u32 %v4213_v35, %v3396_v34  ;;  %v4268_v35 = vld [vmem:[#allocation9 + $0x394] sm:$0xf] }
 0x130   :  { %v3495_v49 = vor.u32 %v4237_v43, %v3494_v42  ;;  %v3608_v43 = vld [vmem:[#allocation9 + $0x378] sm:$0xf] }
 0x131   :  { %v338_v47 = vadd.f32 %v337_v46, %v325_v45  ;;  %v3487_v45 = vor.u32 %v4236_v39, %v3486_v38  ;;  %v3384_v46 = vld [vmem:[#allocation9 + $0x1b8] sm:$0xf]  ;;  %v4270_v38 = vld [vmem:[#allocation9 + $0x3a0] sm:$0xf0]  ;;  %v3718_v39 = vld [vmem:[#allocation9 + $0x450] sm:$0xf] }
 0x133   :  { %v341_v54 = vmax.f32 %v338_v47, 0.0  ;;  %v4210_v47 = vld [vmem:[#allocation9 + $0x1c0] sm:$0xf0] }
 0x134   :  { %v3385_v56 = vor.u32 %v4210_v47, %v3384_v46  ;;  %v3719_v46 = vor.u32 %v4293_v40, %v3718_v39  ;;  %v4265_v47 = vld [vmem:[#allocation9 + $0x37c] sm:$0xf] }
 0x135   :  { %v4716_v57 = vpack.c.bf16 %v341_v54, %v341_v54  ;;  %v3482_v54 = vld [vmem:[#allocation9 + $0x278] sm:$0xf] }
 0x136   :  { %v326_v62 = vpop.f32.mrf.mxu2 }
 0x137   :  { %v339_v4 = vpop.f32.mrf.mxu3  ;;  %526 = vmatmul.bf16.vlgmr.msrb.gmra.mxu0 %v4716_v57  ;;  %539 = vmatmul.bf16.vlgmr.msrb.gmra.mxu1 %v4716_v57  ;;  %v3483_v62 = vor.u32 %v4234_v55, %v3482_v54  ;;  %v3596_v55 = vld [vmem:[#allocation9 + $0x360] sm:$0xf] }
 0x138   :  { %552 = vmatmul.bf16.vlgmr.msrb.gmra.mxu2 %v4716_v57  ;;  %804 = vmatmul.bf16.vlgmr.msrb.gmra.mxu3 %v4716_v57  ;;  %v4231_v4 = vld [vmem:[#allocation9 + $0x268] sm:$0xf0] }
 0x139   :  { %1093 = vmatpush.bf16.msrb.mxu0 %v3445_v58  ;;  %1338 = vmatpush.bf16.msrb.mxu1 %v3535_v59  ;;  %v3475_v58 = vor.u32 %v4233_v51, %v3474_v50  ;;  %v3372_v59 = vld [vmem:[#allocation9 + $0x1a0] sm:$0xf]  ;;  %v4267_v50 = vld [vmem:[#allocation9 + $0x388] sm:$0xf0]  ;;  %v3706_v51 = vld [vmem:[#allocation9 + $0x438] sm:$0xf] }
 0x13a   :  { %1351 = vmatpush.bf16.msrb.mxu2 %v3539_v63  ;;  %1364 = vmatpush.bf16.msrb.mxu3 %v3543_v0  ;;  %v3462_v63 = vld [vmem:[#allocation9 + $0x258] sm:$0xf]  ;;  %v4230_v0 = vld [vmem:[#allocation9 + $0x260] sm:$0xf0]  ;;  %v3373_v6 = vor.u32 %v4207_v60, %v3372_v59  ;;  %v3707_v59 = vor.u32 %v4290_v52, %v3706_v51  ;;  %v3738_v52 = vld [vmem:[#allocation9 + $0x470] sm:$0xf] }
 0x13b   :  { %v3463_v7 = vor.u32 %v4230_v0, %v3462_v63  ;;  %v4262_v60 = vld [vmem:[#allocation9 + $0x364] sm:$0xf]  ;;  %v4264_v63 = vld [vmem:[#allocation9 + $0x370] sm:$0xf0]  ;;  %v3694_v0 = vld [vmem:[#allocation9 + $0x420] sm:$0xf] }
 0x13c   :  { %v3732_v51 = vld [vmem:[#allocation9 + $0x474] sm:$0xf0] }
 0x13d   :  { %1094 = vmatpush.bf16.msrb.mxu0 %v3433_v8  ;;  %1339 = vmatpush.bf16.msrb.mxu1 %v3523_v9  ;;  %v4204_v8 = vld [vmem:[#allocation9 + $0x190] sm:$0xf0]  ;;  %v3450_v9 = vld [vmem:[#allocation9 + $0x240] sm:$0xf] }
 0x13e   :  { %1352 = vmatpush.bf16.msrb.mxu2 %v3527_v12  ;;  %1365 = vmatpush.bf16.msrb.mxu3 %v3531_v13  ;;  %v3471_v12 = vor.u32 %v4231_v4, %v3470_v3  ;;  %v4226_v13 = vld [vmem:[#allocation9 + $0x244] sm:$0xf]  ;;  %v3361_v22 = vor.u32 %v4204_v8, %v3360_v5  ;;  %v3451_v23 = vor.u32 %v4227_v10, %v3450_v9  ;;  %v3584_v4 = vld [vmem:[#allocation9 + $0x348] sm:$0xf]  ;;  %v4260_v5 = vld [vmem:[#allocation9 + $0x350] sm:$0xf0] }
 0x13f   :  { %v3455_v27 = vor.u32 %v4226_v13, %v3452_v14  ;;  %v4259_v8 = vld [vmem:[#allocation9 + $0x34c] sm:$0xf]  ;;  %v3586_v9 = vld [vmem:[#allocation9 + $0x354] sm:$0xf0]  ;;  %v3592_v10 = vld [vmem:[#allocation9 + $0x350] sm:$0xf]  ;;  %v3585_v14 = vor.u32 %v4260_v5, %v3584_v4 }
 0x140   :  { %v4284_v13 = vld [vmem:[#allocation9 + $0x410] sm:$0xf0]  ;;  %v3589_v15 = vor.u32 %v4259_v8, %v3586_v9  ;;  %v3726_v5 = vld [vmem:[#allocation9 + $0x458] sm:$0xf]  ;;  %v4317_v8 = vld [vmem:[#allocation9 + $0x518] sm:$0xf0] }
 0x141   :  { %1095 = vmatpush.bf16.msrb.mxu0 %v3421_v20  ;;  %1340 = vmatpush.bf16.msrb.mxu1 %v3511_v21  ;;  %v3634_v20 = vld [vmem:[#allocation9 + $0x3b4] sm:$0xf0]  ;;  %v3640_v21 = vld [vmem:[#allocation9 + $0x3b0] sm:$0xf]  ;;  %v4316_v9 = vld [vmem:[#allocation9 + $0x514] sm:$0xf] }
 0x142   :  { %1353 = vmatpush.bf16.msrb.mxu2 %v3515_v24  ;;  %1366 = vmatpush.bf16.msrb.mxu3 %v3519_v25  ;;  %v4273_v24 = vld [vmem:[#allocation9 + $0x3b8] sm:$0xf0]  ;;  %v3730_v25 = vld [vmem:[#allocation9 + $0x468] sm:$0xf]  ;;  %v3637_v30 = vor.u32 %v4271_v19, %v3634_v20  ;;  %v4256_v20 = vld [vmem:[#allocation9 + $0x334] sm:$0xf] }
 0x143   :  { %v3731_v34 = vor.u32 %v4296_v26, %v3730_v25  ;;  %v4281_v25 = vld [vmem:[#allocation9 + $0x3f8] sm:$0xf0]  ;;  %v3573_v26 = vor.u32 %v4257_v17, %v3572_v16  ;;  %v3714_v17 = vld [vmem:[#allocation9 + $0x440] sm:$0xf] }
 0x145   :  { %1096 = vmatpush.bf16.msrb.mxu0 %v3409_v32  ;;  %1341 = vmatpush.bf16.msrb.mxu1 %v3499_v33  ;;  %v4269_v32 = vld [vmem:[#allocation9 + $0x398] sm:$0xf0]  ;;  %v3641_v33 = vor.u32 %v4273_v24, %v3640_v21  ;;  %v3574_v21 = vld [vmem:[#allocation9 + $0x33c] sm:$0xf0]  ;;  %v3670_v24 = vld [vmem:[#allocation9 + $0x3f0] sm:$0xf] }
 0x146   :  { %1354 = vmatpush.bf16.msrb.mxu2 %v3503_v36  ;;  %1367 = vmatpush.bf16.msrb.mxu3 %v3507_v37  ;;  %v3622_v36 = vld [vmem:[#allocation9 + $0x39c] sm:$0xf0]  ;;  %v3628_v37 = vld [vmem:[#allocation9 + $0x398] sm:$0xf]  ;;  %v3621_v41 = vor.u32 %v4269_v32, %v3620_v31  ;;  %v3671_v31 = vor.u32 %v4281_v25, %v3670_v24  ;;  %v4253_v32 = vld [vmem:[#allocation9 + $0x31c] sm:$0xf] }
 0x147   :  { %817 = vmatmul.bf16.vlgmr.msra.gmra.mxu0 %v4716_v57  ;;  %830 = vmatmul.bf16.vlgmr.msra.gmra.mxu1 %v4716_v57  ;;  %v3625_v42 = vor.u32 %v4268_v35, %v3622_v36  ;;  %v4255_v35 = vld [vmem:[#allocation9 + $0x328] sm:$0xf0]  ;;  %v3658_v36 = vld [vmem:[#allocation9 + $0x3d8] sm:$0xf]  ;;  %v4286_v25 = vld [vmem:[#allocation9 + $0x424] sm:$0xf] }
 0x148   :  { %1075 = vmatmul.bf16.vlgmr.msra.gmra.mxu2 %v4716_v57  ;;  %1088 = vmatmul.bf16.vlgmr.msra.gmra.mxu3 %v4716_v57 }
 0x149   :  { %1097 = vmatpush.bf16.msrb.mxu0 %v3397_v44  ;;  %1342 = vmatpush.bf16.msrb.mxu1 %v3487_v45  ;;  %v4266_v44 = vld [vmem:[#allocation9 + $0x380] sm:$0xf0]  ;;  %v3629_v45 = vor.u32 %v4270_v38, %v3628_v37  ;;  %v3548_v38 = vld [vmem:[#allocation9 + $0x300] sm:$0xf] }
 0x14a   :  { %1355 = vmatpush.bf16.msrb.mxu2 %v3491_v48  ;;  %1368 = vmatpush.bf16.msrb.mxu3 %v3495_v49  ;;  %v3610_v48 = vld [vmem:[#allocation9 + $0x384] sm:$0xf0]  ;;  %v3616_v49 = vld [vmem:[#allocation9 + $0x380] sm:$0xf]  ;;  %v3609_v53 = vor.u32 %v4266_v44, %v3608_v43  ;;  %v4278_v37 = vld [vmem:[#allocation9 + $0x3e0] sm:$0xf0] }
 0x14b   :  { %v3613_v54 = vor.u32 %v4265_v47, %v3610_v48  ;;  %v3550_v43 = vld [vmem:[#allocation9 + $0x30c] sm:$0xf0]  ;;  %v4252_v47 = vld [vmem:[#allocation9 + $0x310] sm:$0xf0]  ;;  %v3646_v48 = vld [vmem:[#allocation9 + $0x3c0] sm:$0xf] }
 0x14d   :  { %1098 = vmatpush.bf16.msrb.mxu0 %v3385_v56  ;;  %1343 = vmatpush.bf16.msrb.mxu1 %v3475_v58  ;;  %v4263_v56 = vld [vmem:[#allocation9 + $0x368] sm:$0xf0]  ;;  %v3617_v58 = vor.u32 %v4267_v50, %v3616_v49 }
 0x14e   :  { %1356 = vmatpush.bf16.msrb.mxu2 %v3479_v61  ;;  %1369 = vmatpush.bf16.msrb.mxu3 %v3483_v62  ;;  %v3598_v61 = vld [vmem:[#allocation9 + $0x36c] sm:$0xf0]  ;;  %v3604_v62 = vld [vmem:[#allocation9 + $0x368] sm:$0xf]  ;;  %v3597_v2 = vor.u32 %v4263_v56, %v3596_v55  ;;  %v4275_v49 = vld [vmem:[#allocation9 + $0x3c8] sm:$0xf0] }
 0x14f   :  { %v3601_v3 = vor.u32 %v4262_v60, %v3598_v61  ;;  %v4295_v50 = vld [vmem:[#allocation9 + $0x46c] sm:$0xf]  ;;  %v3830_v60 = vld [vmem:[#allocation9 + $0x534] sm:$0xf0] }
 0x151   :  { %1099 = vmatpush.bf16.msrb.mxu0 %v3373_v6  ;;  %1344 = vmatpush.bf16.msrb.mxu1 %v3463_v7  ;;  %v3605_v6 = vor.u32 %v4264_v63, %v3604_v62  ;;  %v3695_v7 = vor.u32 %v4287_v1, %v3694_v0  ;;  %v3647_v62 = vor.u32 %v4275_v49, %v3646_v48  ;;  %v4292_v1 = vld [vmem:[#allocation9 + $0x454] sm:$0xf] }
 0x152   :  { %1357 = vmatpush.bf16.msrb.mxu2 %v3467_v11  ;;  %1370 = vmatpush.bf16.msrb.mxu3 %v3471_v12  ;;  %v4261_v11 = vld [vmem:[#allocation9 + $0x358] sm:$0xf0]  ;;  %v3682_v12 = vld [vmem:[#allocation9 + $0x408] sm:$0xf]  ;;  %v3735_v63 = vor.u32 %v4295_v50, %v3732_v51  ;;  %v4280_v49 = vld [vmem:[#allocation9 + $0x3f4] sm:$0xf] }
 0x153   :  { %v3593_v18 = vor.u32 %v4261_v11, %v3592_v10  ;;  %v3683_v19 = vor.u32 %v4284_v13, %v3682_v12  ;;  %v3818_v10 = vld [vmem:[#allocation9 + $0x51c] sm:$0xf0]  ;;  %v4289_v13 = vld [vmem:[#allocation9 + $0x43c] sm:$0xf] }
 0x154   :  { %v3821_v16 = vor.u32 %v4316_v9, %v3818_v10  ;;  %v3672_v50 = vld [vmem:[#allocation9 + $0x3fc] sm:$0xf0] }
 0x155   :  { %1100 = vmatpush.bf16.msrb.mxu0 %v3361_v22  ;;  %1345 = vmatpush.bf16.msrb.mxu1 %v3451_v23  ;;  %v3580_v22 = vld [vmem:[#allocation9 + $0x338] sm:$0xf]  ;;  %v4258_v23 = vld [vmem:[#allocation9 + $0x340] sm:$0xf0] }
 0x156   :  { %1358 = vmatpush.bf16.msrb.mxu2 %v3455_v27  ;;  %1371 = vmatpush.bf16.msrb.mxu3 %v3459_v28  ;;  %v3577_v27 = vor.u32 %v4256_v20, %v3574_v21  ;;  %v3560_v28 = vld [vmem:[#allocation9 + $0x318] sm:$0xf]  ;;  %v4314_v20 = vld [vmem:[#allocation9 + $0x500] sm:$0xf0]  ;;  %v4313_v21 = vld [vmem:[#allocation9 + $0x4fc] sm:$0xf] }
 0x158   :  { %1101 = vmatmul.bf16.vlgmr.msrb.gmra.mxu0 %v4716_v57  ;;  %1346 = vmatmul.bf16.vlgmr.msrb.gmra.mxu1 %v4716_v57 }
 0x159   :  { %1609 = vmatpush.bf16.msra.mxu0 %v3633_v29  ;;  %1622 = vmatpush.bf16.msra.mxu1 %v3637_v30  ;;  %v4254_v29 = vld [vmem:[#allocation9 + $0x320] sm:$0xf0]  ;;  %v3581_v30 = vor.u32 %v4258_v23, %v3580_v22  ;;  %v3806_v22 = vld [vmem:[#allocation9 + $0x504] sm:$0xf0] }
 0x15a   :  { %1635 = vmatpush.bf16.msra.mxu2 %v3641_v33  ;;  %1880 = vmatpush.bf16.msra.mxu3 %v3731_v34  ;;  %v3562_v33 = vld [vmem:[#allocation9 + $0x324] sm:$0xf0]  ;;  %v3568_v34 = vld [vmem:[#allocation9 + $0x320] sm:$0xf]  ;;  %v3561_v39 = vor.u32 %v4254_v29, %v3560_v28  ;;  %v3809_v28 = vor.u32 %v4313_v21, %v3806_v22  ;;  %v4321_v21 = vld [vmem:[#allocation9 + $0x538] sm:$0xf0] }
 0x15b   :  { %1359 = vmatmul.bf16.vlgmr.msrb.gmra.mxu2 %v4716_v57  ;;  %1372 = vmatmul.bf16.vlgmr.msrb.gmra.mxu3 %v4716_v57  ;;  %v3565_v40 = vor.u32 %v4253_v32, %v3562_v33  ;;  %v3569_v44 = vor.u32 %v4255_v35, %v3568_v34  ;;  %v3702_v29 = vld [vmem:[#allocation9 + $0x428] sm:$0xf]  ;;  %v4311_v32 = vld [vmem:[#allocation9 + $0x4e8] sm:$0xf0]  ;;  %v4310_v33 = vld [vmem:[#allocation9 + $0x4e4] sm:$0xf] }
 0x15c   :  { %v3794_v34 = vld [vmem:[#allocation9 + $0x4ec] sm:$0xf0]  ;;  %v3926_v22 = vld [vmem:[#allocation9 + $0x5e8] sm:$0xf] }
 0x15d   :  { %1610 = vmatpush.bf16.msra.mxu0 %v3621_v41  ;;  %1623 = vmatpush.bf16.msra.mxu1 %v3625_v42  ;;  %v4251_v41 = vld [vmem:[#allocation9 + $0x308] sm:$0xf0]  ;;  %v4250_v42 = vld [vmem:[#allocation9 + $0x304] sm:$0xf] }
 0x15e   :  { %1636 = vmatpush.bf16.msra.mxu2 %v3629_v45  ;;  %1881 = vmatpush.bf16.msra.mxu3 %v3719_v46  ;;  %v3659_v45 = vor.u32 %v4278_v37, %v3658_v36  ;;  %v3556_v46 = vld [vmem:[#allocation9 + $0x308] sm:$0xf]  ;;  %v3549_v55 = vor.u32 %v4251_v41, %v3548_v38  ;;  %v3553_v56 = vor.u32 %v4250_v42, %v3550_v43  ;;  %v4283_v37 = vld [vmem:[#allocation9 + $0x40c] sm:$0xf]  ;;  %v3684_v38 = vld [vmem:[#allocation9 + $0x414] sm:$0xf0] }
 0x15f   :  { %v3557_v61 = vor.u32 %v4252_v47, %v3556_v46  ;;  %v3690_v41 = vld [vmem:[#allocation9 + $0x410] sm:$0xf]  ;;  %v4285_v42 = vld [vmem:[#allocation9 + $0x418] sm:$0xf0]  ;;  %v3780_v43 = vld [vmem:[#allocation9 + $0x4c8] sm:$0xf]  ;;  %v3687_v47 = vor.u32 %v4283_v37, %v3684_v38 }
 0x160   :  { %v3782_v46 = vld [vmem:[#allocation9 + $0x4d4] sm:$0xf0]  ;;  %v3691_v48 = vor.u32 %v4285_v42, %v3690_v41  ;;  %v3914_v38 = vld [vmem:[#allocation9 + $0x5d0] sm:$0xf]  ;;  %v3916_v41 = vld [vmem:[#allocation9 + $0x5dc] sm:$0xf0] }
 0x161   :  { %1611 = vmatpush.bf16.msra.mxu0 %v3609_v53  ;;  %1624 = vmatpush.bf16.msra.mxu1 %v3613_v54  ;;  %v4297_v53 = vld [vmem:[#allocation9 + $0x478] sm:$0xf0]  ;;  %v3828_v54 = vld [vmem:[#allocation9 + $0x528] sm:$0xf]  ;;  %v3922_v42 = vld [vmem:[#allocation9 + $0x5d8] sm:$0xf] }
 0x162   :  { %1637 = vmatpush.bf16.msra.mxu2 %v3617_v58  ;;  %1882 = vmatpush.bf16.msra.mxu3 %v3707_v59  ;;  %v4320_v58 = vld [vmem:[#allocation9 + $0x530] sm:$0xf0]  ;;  %v4319_v59 = vld [vmem:[#allocation9 + $0x52c] sm:$0xf]  ;;  %v3739_v0 = vor.u32 %v4297_v53, %v3738_v52  ;;  %v3678_v53 = vld [vmem:[#allocation9 + $0x3f8] sm:$0xf] }
 0x163   :  { %v3833_v4 = vor.u32 %v4319_v59, %v3830_v60  ;;  %v3770_v59 = vld [vmem:[#allocation9 + $0x4bc] sm:$0xf0]  ;;  %v3675_v60 = vor.u32 %v4280_v49, %v3672_v50  ;;  %v3902_v50 = vld [vmem:[#allocation9 + $0x5b8] sm:$0xf] }
 0x165   :  { %1612 = vmatpush.bf16.msra.mxu0 %v3597_v2  ;;  %1625 = vmatpush.bf16.msra.mxu1 %v3601_v3  ;;  %v3720_v2 = vld [vmem:[#allocation9 + $0x45c] sm:$0xf0]  ;;  %v3829_v3 = vor.u32 %v4320_v58, %v3828_v54  ;;  %v4282_v54 = vld [vmem:[#allocation9 + $0x400] sm:$0xf0]  ;;  %v4304_v58 = vld [vmem:[#allocation9 + $0x4b4] sm:$0xf] }
 0x166   :  { %1638 = vmatpush.bf16.msra.mxu2 %v3605_v6  ;;  %1883 = vmatpush.bf16.msra.mxu3 %v3695_v7  ;;  %v4294_v6 = vld [vmem:[#allocation9 + $0x460] sm:$0xf0]  ;;  %v3816_v7 = vld [vmem:[#allocation9 + $0x510] sm:$0xf]  ;;  %v3723_v11 = vor.u32 %v4292_v1, %v3720_v2  ;;  %v3773_v1 = vor.u32 %v4304_v58, %v3770_v59  ;;  %v3666_v2 = vld [vmem:[#allocation9 + $0x3e0] sm:$0xf] }
 0x167   :  { %v3727_v12 = vor.u32 %v4294_v6, %v3726_v5  ;;  %v4302_v5 = vld [vmem:[#allocation9 + $0x4a0] sm:$0xf0]  ;;  %v4301_v6 = vld [vmem:[#allocation9 + $0x49c] sm:$0xf]  ;;  %v3800_v59 = vld [vmem:[#allocation9 + $0x4e8] sm:$0xf] }
 0x169   :  { %1613 = vmatpush.bf16.msra.mxu0 %v3585_v14  ;;  %1626 = vmatpush.bf16.msra.mxu1 %v3589_v15  ;;  %v3708_v14 = vld [vmem:[#allocation9 + $0x444] sm:$0xf0]  ;;  %v3817_v15 = vor.u32 %v4317_v8, %v3816_v7  ;;  %v4274_v8 = vld [vmem:[#allocation9 + $0x3c4] sm:$0xf] }
 0x16a   :  { %1639 = vmatpush.bf16.msra.mxu2 %v3593_v18  ;;  %1884 = vmatpush.bf16.msra.mxu3 %v3683_v19  ;;  %v4291_v18 = vld [vmem:[#allocation9 + $0x448] sm:$0xf0]  ;;  %v3804_v19 = vld [vmem:[#allocation9 + $0x4f8] sm:$0xf]  ;;  %v3711_v23 = vor.u32 %v4289_v13, %v3708_v14  ;;  %v3758_v7 = vld [vmem:[#allocation9 + $0x4a4] sm:$0xf0] }
 0x16b   :  { %v3715_v24 = vor.u32 %v4291_v18, %v3714_v17  ;;  %v4276_v13 = vld [vmem:[#allocation9 + $0x3d0] sm:$0xf0]  ;;  %v4299_v17 = vld [vmem:[#allocation9 + $0x488] sm:$0xf0]  ;;  %v4298_v18 = vld [vmem:[#allocation9 + $0x484] sm:$0xf] }
 0x16d   :  { %1614 = vmatpush.bf16.msra.mxu0 %v3573_v26  ;;  %1627 = vmatpush.bf16.msra.mxu1 %v3577_v27  ;;  %v3696_v26 = vld [vmem:[#allocation9 + $0x42c] sm:$0xf0]  ;;  %v3805_v27 = vor.u32 %v4314_v20, %v3804_v19 }
 0x16e   :  { %1640 = vmatpush.bf16.msra.mxu2 %v3581_v30  ;;  %1885 = vmatpush.bf16.msra.mxu3 %v3671_v31  ;;  %v4288_v30 = vld [vmem:[#allocation9 + $0x430] sm:$0xf0]  ;;  %v3792_v31 = vld [vmem:[#allocation9 + $0x4e0] sm:$0xf]  ;;  %v3699_v35 = vor.u32 %v4286_v25, %v3696_v26  ;;  %v3746_v19 = vld [vmem:[#allocation9 + $0x48c] sm:$0xf0] }
 0x16f   :  { %v3703_v36 = vor.u32 %v4288_v30, %v3702_v29  ;;  %v3836_v20 = vld [vmem:[#allocation9 + $0x530] sm:$0xf]  ;;  %v4345_v29 = vld [vmem:[#allocation9 + $0x5f8] sm:$0xf0] }
 0x171   :  { %1615 = vmatpush.bf16.msra.mxu0 %v3561_v39  ;;  %1628 = vmatpush.bf16.msra.mxu1 %v3565_v40  ;;  %v3793_v39 = vor.u32 %v4311_v32, %v3792_v31  ;;  %v3797_v40 = vor.u32 %v4310_v33, %v3794_v34  ;;  %v3749_v31 = vor.u32 %v4298_v18, %v3746_v19  ;;  %v3824_v34 = vld [vmem:[#allocation9 + $0x518] sm:$0xf] }
 0x172   :  { %1641 = vmatpush.bf16.msra.mxu2 %v3569_v44  ;;  %1886 = vmatpush.bf16.msra.mxu3 %v3659_v45  ;;  %v4308_v44 = vld [vmem:[#allocation9 + $0x4d0] sm:$0xf0]  ;;  %v4307_v45 = vld [vmem:[#allocation9 + $0x4cc] sm:$0xf]  ;;  %v3837_v32 = vor.u32 %v4321_v21, %v3836_v20  ;;  %v3776_v19 = vld [vmem:[#allocation9 + $0x4b8] sm:$0xf] }
 0x173   :  { %v3781_v51 = vor.u32 %v4308_v44, %v3780_v43  ;;  %v3785_v52 = vor.u32 %v4307_v45, %v3782_v46  ;;  %v4342_v43 = vld [vmem:[#allocation9 + $0x5e0] sm:$0xf0]  ;;  %v3812_v46 = vld [vmem:[#allocation9 + $0x500] sm:$0xf] }
 0x174   :  { %v3923_v49 = vor.u32 %v4342_v43, %v3922_v42  ;;  %v4306_v20 = vld [vmem:[#allocation9 + $0x4c0] sm:$0xf0] }
 0x175   :  { %1616 = vmatpush.bf16.msra.mxu0 %v3549_v55  ;;  %1629 = vmatpush.bf16.msra.mxu1 %v3553_v56  ;;  %v3768_v55 = vld [vmem:[#allocation9 + $0x4b0] sm:$0xf]  ;;  %v4305_v56 = vld [vmem:[#allocation9 + $0x4b8] sm:$0xf0] }
 0x176   :  { %1642 = vmatpush.bf16.msra.mxu2 %v3557_v61  ;;  %1887 = vmatpush.bf16.msra.mxu3 %v3647_v62  ;;  %v3679_v61 = vor.u32 %v4282_v54, %v3678_v53  ;;  %v4277_v62 = vld [vmem:[#allocation9 + $0x3dc] sm:$0xf]  ;;  %v3904_v53 = vld [vmem:[#allocation9 + $0x5c4] sm:$0xf0]  ;;  %v3910_v54 = vld [vmem:[#allocation9 + $0x5c0] sm:$0xf] }
 0x178   :  { %1617 = vmatmul.bf16.vlgmr.msra.gmra.mxu0 %v4716_v57  ;;  %1630 = vmatmul.bf16.vlgmr.msra.gmra.mxu1 %v4716_v57 }
 0x179   :  { %1893 = vmatpush.bf16.msrb.mxu0 %v3735_v63  ;;  %1906 = vmatpush.bf16.msrb.mxu1 %v3739_v0  ;;  %v3660_v63 = vld [vmem:[#allocation9 + $0x3e4] sm:$0xf0]  ;;  %v3769_v0 = vor.u32 %v4305_v56, %v3768_v55  ;;  %v4339_v55 = vld [vmem:[#allocation9 + $0x5c8] sm:$0xf0] }
 0x17a   :  { %2151 = vmatpush.bf16.msrb.mxu2 %v3829_v3  ;;  %2164 = vmatpush.bf16.msrb.mxu3 %v3833_v4  ;;  %v4279_v3 = vld [vmem:[#allocation9 + $0x3e8] sm:$0xf0]  ;;  %v3756_v4 = vld [vmem:[#allocation9 + $0x498] sm:$0xf]  ;;  %v3663_v9 = vor.u32 %v4277_v62, %v3660_v63  ;;  %v3911_v62 = vor.u32 %v4339_v55, %v3910_v54  ;;  %v3890_v63 = vld [vmem:[#allocation9 + $0x5a0] sm:$0xf] }
 0x17b   :  { %1643 = vmatmul.bf16.vlgmr.msra.gmra.mxu2 %v4716_v57  ;;  %1888 = vmatmul.bf16.vlgmr.msra.gmra.mxu3 %v4716_v57  ;;  %v3667_v10 = vor.u32 %v4279_v3, %v3666_v2  ;;  %v3757_v14 = vor.u32 %v4302_v5, %v3756_v4  ;;  %v3892_v2 = vld [vmem:[#allocation9 + $0x5ac] sm:$0xf0]  ;;  %v3898_v3 = vld [vmem:[#allocation9 + $0x5a8] sm:$0xf]  ;;  %v4336_v4 = vld [vmem:[#allocation9 + $0x5b0] sm:$0xf0] }
 0x17c   :  { %v4368_v54 = vld [vmem:[#allocation9 + $0x6b0] sm:$0xf0]  ;;  %v4367_v55 = vld [vmem:[#allocation9 + $0x6ac] sm:$0xf] }
 0x17d   :  { %1894 = vmatpush.bf16.msrb.mxu0 %v3723_v11  ;;  %1907 = vmatpush.bf16.msrb.mxu1 %v3727_v12  ;;  %v3648_v11 = vld [vmem:[#allocation9 + $0x3cc] sm:$0xf0]  ;;  %v3654_v12 = vld [vmem:[#allocation9 + $0x3c8] sm:$0xf] }
 0x17e   :  { %2152 = vmatpush.bf16.msrb.mxu2 %v3817_v15  ;;  %2165 = vmatpush.bf16.msrb.mxu3 %v3821_v16  ;;  %v3761_v15 = vor.u32 %v4301_v6, %v3758_v7  ;;  %v3744_v16 = vld [vmem:[#allocation9 + $0x480] sm:$0xf]  ;;  %v3651_v25 = vor.u32 %v4274_v8, %v3648_v11  ;;  %v3655_v26 = vor.u32 %v4276_v13, %v3654_v12  ;;  %v3788_v7 = vld [vmem:[#allocation9 + $0x4d0] sm:$0xf]  ;;  %v4309_v8 = vld [vmem:[#allocation9 + $0x4d8] sm:$0xf0] }
 0x17f   :  { %v3745_v30 = vor.u32 %v4299_v17, %v3744_v16  ;;  %v3878_v11 = vld [vmem:[#allocation9 + $0x588] sm:$0xf]  ;;  %v4332_v12 = vld [vmem:[#allocation9 + $0x590] sm:$0xf0]  ;;  %v4331_v13 = vld [vmem:[#allocation9 + $0x58c] sm:$0xf]  ;;  %v3789_v17 = vor.u32 %v4309_v8, %v3788_v7 }
 0x180   :  { %v4333_v16 = vld [vmem:[#allocation9 + $0x598] sm:$0xf0]  ;;  %v3879_v18 = vor.u32 %v4332_v12, %v3878_v11  ;;  %v4366_v11 = vld [vmem:[#allocation9 + $0x6a0] sm:$0xf0]  ;;  %v4110_v12 = vld [vmem:[#allocation9 + $0x750] sm:$0xf] }
 0x181   :  { %1895 = vmatpush.bf16.msrb.mxu0 %v3711_v23  ;;  %1908 = vmatpush.bf16.msrb.mxu1 %v3715_v24  ;;  %v4344_v23 = vld [vmem:[#allocation9 + $0x5f0] sm:$0xf0]  ;;  %v4343_v24 = vld [vmem:[#allocation9 + $0x5ec] sm:$0xf] }
 0x182   :  { %2153 = vmatpush.bf16.msrb.mxu2 %v3805_v27  ;;  %2166 = vmatpush.bf16.msrb.mxu3 %v3809_v28  ;;  %v3928_v27 = vld [vmem:[#allocation9 + $0x5f4] sm:$0xf0]  ;;  %v3934_v28 = vld [vmem:[#allocation9 + $0x5f0] sm:$0xf]  ;;  %v3927_v33 = vor.u32 %v4344_v23, %v3926_v22 }
 0x183   :  { %v3935_v37 = vor.u32 %v4345_v29, %v3934_v28  ;;  %v3866_v23 = vld [vmem:[#allocation9 + $0x570] sm:$0xf]  ;;  %v4330_v28 = vld [vmem:[#allocation9 + $0x580] sm:$0xf0]  ;;  %v3777_v29 = vor.u32 %v4306_v20, %v3776_v19  ;;  %v4361_v19 = vld [vmem:[#allocation9 + $0x67c] sm:$0xf] }
 0x184   :  { %v4002_v20 = vld [vmem:[#allocation9 + $0x684] sm:$0xf0] }
 0x185   :  { %1896 = vmatpush.bf16.msrb.mxu0 %v3699_v35  ;;  %1909 = vmatpush.bf16.msrb.mxu1 %v3703_v36  ;;  %v4318_v35 = vld [vmem:[#allocation9 + $0x520] sm:$0xf0]  ;;  %v3931_v36 = vor.u32 %v4343_v24, %v3928_v27  ;;  %v4329_v24 = vld [vmem:[#allocation9 + $0x578] sm:$0xf0]  ;;  %v3874_v27 = vld [vmem:[#allocation9 + $0x578] sm:$0xf] }
 0x186   :  { %2154 = vmatpush.bf16.msrb.mxu2 %v3793_v39  ;;  %2167 = vmatpush.bf16.msrb.mxu3 %v3797_v40  ;;  %v4341_v39 = vld [vmem:[#allocation9 + $0x5d8] sm:$0xf0]  ;;  %v4340_v40 = vld [vmem:[#allocation9 + $0x5d4] sm:$0xf]  ;;  %v3825_v44 = vor.u32 %v4318_v35, %v3824_v34  ;;  %v3875_v34 = vor.u32 %v4330_v28, %v3874_v27  ;;  %v3854_v35 = vld [vmem:[#allocation9 + $0x558] sm:$0xf] }
 0x187   :  { %v3915_v45 = vor.u32 %v4341_v39, %v3914_v38  ;;  %v3856_v38 = vld [vmem:[#allocation9 + $0x564] sm:$0xf0]  ;;  %v3862_v39 = vld [vmem:[#allocation9 + $0x560] sm:$0xf]  ;;  %v4098_v27 = vld [vmem:[#allocation9 + $0x738] sm:$0xf] }
 0x188   :  { %v4386_v28 = vld [vmem:[#allocation9 + $0x740] sm:$0xf0] }
 0x189   :  { %1897 = vmatpush.bf16.msrb.mxu0 %v3687_v47  ;;  %1910 = vmatpush.bf16.msrb.mxu1 %v3691_v48  ;;  %v4315_v47 = vld [vmem:[#allocation9 + $0x508] sm:$0xf0]  ;;  %v3919_v48 = vor.u32 %v4340_v40, %v3916_v41  ;;  %v3752_v41 = vld [vmem:[#allocation9 + $0x488] sm:$0xf] }
 0x18a   :  { %2155 = vmatpush.bf16.msrb.mxu2 %v3781_v51  ;;  %2168 = vmatpush.bf16.msrb.mxu3 %v3785_v52  ;;  %v4338_v51 = vld [vmem:[#allocation9 + $0x5c0] sm:$0xf0]  ;;  %v4337_v52 = vld [vmem:[#allocation9 + $0x5bc] sm:$0xf]  ;;  %v3813_v56 = vor.u32 %v4315_v47, %v3812_v46  ;;  %v4327_v40 = vld [vmem:[#allocation9 + $0x568] sm:$0xf0] }
 0x18b   :  { %v3903_v58 = vor.u32 %v4338_v51, %v3902_v50  ;;  %v4323_v46 = vld [vmem:[#allocation9 + $0x548] sm:$0xf0]  ;;  %v3844_v50 = vld [vmem:[#allocation9 + $0x54c] sm:$0xf0]  ;;  %v3850_v51 = vld [vmem:[#allocation9 + $0x548] sm:$0xf] }
 0x18d   :  { %1898 = vmatpush.bf16.msrb.mxu0 %v3675_v60  ;;  %1911 = vmatpush.bf16.msrb.mxu1 %v3679_v61  ;;  %v4312_v60 = vld [vmem:[#allocation9 + $0x4f0] sm:$0xf0]  ;;  %v3907_v61 = vor.u32 %v4337_v52, %v3904_v53  ;;  %v4024_v53 = vld [vmem:[#allocation9 + $0x6a8] sm:$0xf] }
 0x18e   :  { %2156 = vmatpush.bf16.msrb.mxu2 %v3769_v0  ;;  %2169 = vmatpush.bf16.msrb.mxu3 %v3773_v1  ;;  %v4335_v0 = vld [vmem:[#allocation9 + $0x5a8] sm:$0xf0]  ;;  %v4334_v1 = vld [vmem:[#allocation9 + $0x5a4] sm:$0xf]  ;;  %v3801_v5 = vor.u32 %v4312_v60, %v3800_v59  ;;  %v4324_v52 = vld [vmem:[#allocation9 + $0x550] sm:$0xf0] }
 0x18f   :  { %v3891_v6 = vor.u32 %v4335_v0, %v3890_v63  ;;  %v4392_v63 = vld [vmem:[#allocation9 + $0x770] sm:$0xf0] }
 0x191   :  { %1899 = vmatpush.bf16.msrb.mxu0 %v3663_v9  ;;  %1912 = vmatpush.bf16.msrb.mxu1 %v3667_v10  ;;  %v3895_v9 = vor.u32 %v4334_v1, %v3892_v2  ;;  %v3899_v10 = vor.u32 %v4336_v4, %v3898_v3  ;;  %v3851_v1 = vor.u32 %v4324_v52, %v3850_v51  ;;  %v4012_v4 = vld [vmem:[#allocation9 + $0x690] sm:$0xf]  ;;  %v4355_v51 = vld [vmem:[#allocation9 + $0x64c] sm:$0xf] }
 0x192   :  { %2157 = vmatpush.bf16.msrb.mxu2 %v3757_v14  ;;  %2170 = vmatpush.bf16.msrb.mxu3 %v3761_v15  ;;  %v3880_v14 = vld [vmem:[#allocation9 + $0x594] sm:$0xf0]  ;;  %v3886_v15 = vld [vmem:[#allocation9 + $0x590] sm:$0xf]  ;;  %v4025_v2 = vor.u32 %v4368_v54, %v4024_v53 }
 0x193   :  { %v3883_v21 = vor.u32 %v4331_v13, %v3880_v14  ;;  %v3887_v22 = vor.u32 %v4333_v16, %v3886_v15  ;;  %v4389_v13 = vld [vmem:[#allocation9 + $0x758] sm:$0xf0]  ;;  %v4738_v14 = vld [vmem:[#allocation10] sm:$0x7]  ;;  %v4000_v15 = vld [vmem:[#allocation9 + $0x678] sm:$0xf] }
 0x195   :  { %1900 = vmatpush.bf16.msrb.mxu0 %v3651_v25  ;;  %1913 = vmatpush.bf16.msrb.mxu1 %v3655_v26  ;;  %v4328_v25 = vld [vmem:[#allocation9 + $0x574] sm:$0xf]  ;;  %v3868_v26 = vld [vmem:[#allocation9 + $0x57c] sm:$0xf0] }
 0x196   :  { %2158 = vmatpush.bf16.msrb.mxu2 %v3745_v30  ;;  %2171 = vmatpush.bf16.msrb.mxu3 %v3749_v31  ;;  %v3867_v30 = vor.u32 %v4329_v24, %v3866_v23  ;;  %v3764_v31 = vld [vmem:[#allocation9 + $0x4a0] sm:$0xf]  ;;  %v4363_v24 = vld [vmem:[#allocation9 + $0x688] sm:$0xf0] }
 0x197   :  { %v4008_v23 = vld [vmem:[#allocation9 + $0x680] sm:$0xf] }
 0x198   :  { %1901 = vmatmul.bf16.vlgmr.msrb.gmra.mxu0 %v4716_v57  ;;  %1914 = vmatmul.bf16.vlgmr.msrb.gmra.mxu1 %v4716_v57 }
 0x199   :  { %2177 = vmatpush.bf16.msra.mxu0 %v3837_v32  ;;  %2422 = vmatpush.bf16.msra.mxu1 %v3927_v33  ;;  %v4303_v32 = vld [vmem:[#allocation9 + $0x4a8] sm:$0xf0]  ;;  %v3871_v33 = vor.u32 %v4328_v25, %v3868_v26  ;;  %v384_v25 = vperm.slane %v4738_v14, 0  ;;  %v385_v26 = vperm.slane %v4738_v14, 1 }
 0x19a   :  { %2435 = vmatpush.bf16.msra.mxu2 %v3931_v36  ;;  %2448 = vmatpush.bf16.msra.mxu3 %v3935_v37  ;;  %v4326_v36 = vld [vmem:[#allocation9 + $0x560] sm:$0xf0]  ;;  %v4325_v37 = vld [vmem:[#allocation9 + $0x55c] sm:$0xf]  ;;  %v3765_v42 = vor.u32 %v4303_v32, %v3764_v31  ;;  %v4005_v32 = vor.u32 %v4361_v19, %v4002_v20 }
 0x19b   :  { %2159 = vmatmul.bf16.vlgmr.msrb.gmra.mxu2 %v4716_v57  ;;  %2172 = vmatmul.bf16.vlgmr.msrb.gmra.mxu3 %v4716_v57  ;;  %v3855_v43 = vor.u32 %v4326_v36, %v3854_v35  ;;  %v3859_v47 = vor.u32 %v4325_v37, %v3856_v38  ;;  %v4359_v35 = vld [vmem:[#allocation9 + $0x668] sm:$0xf0]  ;;  %v4099_v36 = vor.u32 %v4386_v28, %v4098_v27  ;;  %v4349_v27 = vld [vmem:[#allocation9 + $0x61c] sm:$0xf]  ;;  %v3954_v28 = vld [vmem:[#allocation9 + $0x624] sm:$0xf0] }
 0x19d   :  { %2178 = vmatpush.bf16.msra.mxu0 %v3825_v44  ;;  %2423 = vmatpush.bf16.msra.mxu1 %v3915_v45  ;;  %v4300_v44 = vld [vmem:[#allocation9 + $0x490] sm:$0xf0]  ;;  %v3842_v45 = vld [vmem:[#allocation9 + $0x540] sm:$0xf] }
 0x19e   :  { %2436 = vmatpush.bf16.msra.mxu2 %v3919_v48  ;;  %2449 = vmatpush.bf16.msra.mxu3 %v3923_v49  ;;  %v3863_v48 = vor.u32 %v4327_v40, %v3862_v39  ;;  %v4322_v49 = vld [vmem:[#allocation9 + $0x544] sm:$0xf]  ;;  %v3753_v59 = vor.u32 %v4300_v44, %v3752_v41  ;;  %v3843_v60 = vor.u32 %v4323_v46, %v3842_v45  ;;  %v3990_v40 = vld [vmem:[#allocation9 + $0x66c] sm:$0xf0]  ;;  %v3996_v41 = vld [vmem:[#allocation9 + $0x668] sm:$0xf] }
 0x19f   :  { %v3847_v0 = vor.u32 %v4322_v49, %v3844_v50  ;;  %v4358_v39 = vld [vmem:[#allocation9 + $0x664] sm:$0xf]  ;;  %v4383_v44 = vld [vmem:[#allocation9 + $0x728] sm:$0xf0]  ;;  %v386_v45 = vperm.slane %v4738_v14, 2 }
 0x1a0   :  { %v3976_v49 = vld [vmem:[#allocation9 + $0x648] sm:$0xf]  ;;  %v4356_v50 = vld [vmem:[#allocation9 + $0x650] sm:$0xf0] }
 0x1a1   :  { %2179 = vmatpush.bf16.msra.mxu0 %v3813_v56  ;;  %2424 = vmatpush.bf16.msra.mxu1 %v3903_v58  ;;  %v4026_v56 = vld [vmem:[#allocation9 + $0x6b4] sm:$0xf0]  ;;  %v4032_v58 = vld [vmem:[#allocation9 + $0x6b0] sm:$0xf] }
 0x1a2   :  { %2437 = vmatpush.bf16.msra.mxu2 %v3907_v61  ;;  %2450 = vmatpush.bf16.msra.mxu3 %v3911_v62  ;;  %v4369_v61 = vld [vmem:[#allocation9 + $0x6b8] sm:$0xf0]  ;;  %v4122_v62 = vld [vmem:[#allocation9 + $0x768] sm:$0xf]  ;;  %v4029_v3 = vor.u32 %v4367_v55, %v4026_v56  ;;  %v3978_v56 = vld [vmem:[#allocation9 + $0x654] sm:$0xf0] }
 0x1a3   :  { %v4033_v7 = vor.u32 %v4369_v61, %v4032_v58  ;;  %v4123_v8 = vor.u32 %v4392_v63, %v4122_v62  ;;  %v3984_v58 = vld [vmem:[#allocation9 + $0x650] sm:$0xf]  ;;  %v4357_v61 = vld [vmem:[#allocation9 + $0x658] sm:$0xf0]  ;;  %v4074_v62 = vld [vmem:[#allocation9 + $0x708] sm:$0xf] }
 0x1a4   :  { %v4380_v63 = vld [vmem:[#allocation9 + $0x710] sm:$0xf0] }
 0x1a5   :  { %2180 = vmatpush.bf16.msra.mxu0 %v3801_v5  ;;  %2425 = vmatpush.bf16.msra.mxu1 %v3891_v6  ;;  %v4365_v5 = vld [vmem:[#allocation9 + $0x698] sm:$0xf0]  ;;  %v4364_v6 = vld [vmem:[#allocation9 + $0x694] sm:$0xf] }
 0x1a6   :  { %2438 = vmatpush.bf16.msra.mxu2 %v3895_v9  ;;  %2451 = vmatpush.bf16.msra.mxu3 %v3899_v10  ;;  %v4014_v9 = vld [vmem:[#allocation9 + $0x69c] sm:$0xf0]  ;;  %v4020_v10 = vld [vmem:[#allocation9 + $0x698] sm:$0xf]  ;;  %v4013_v16 = vor.u32 %v4365_v5, %v4012_v4  ;;  %v3981_v4 = vor.u32 %v4355_v51, %v3978_v56  ;;  %v3964_v5 = vld [vmem:[#allocation9 + $0x630] sm:$0xf] }
 0x1a7   :  { %v4348_v51 = vld [vmem:[#allocation9 + $0x610] sm:$0xf0]  ;;  %v4391_v56 = vld [vmem:[#allocation9 + $0x76c] sm:$0xf] }
 0x1a9   :  { %2181 = vmatpush.bf16.msra.mxu0 %v3789_v17  ;;  %2426 = vmatpush.bf16.msra.mxu1 %v3879_v18  ;;  %v4017_v17 = vor.u32 %v4364_v6, %v4014_v9  ;;  %v4362_v18 = vld [vmem:[#allocation9 + $0x680] sm:$0xf0]  ;;  %v4353_v6 = vld [vmem:[#allocation9 + $0x638] sm:$0xf0] }
 0x1aa   :  { %2439 = vmatpush.bf16.msra.mxu2 %v3883_v21  ;;  %2452 = vmatpush.bf16.msra.mxu3 %v3887_v22  ;;  %v4021_v21 = vor.u32 %v4366_v11, %v4020_v10  ;;  %v4111_v22 = vor.u32 %v4389_v13, %v4110_v12  ;;  %v4001_v31 = vor.u32 %v4362_v18, %v4000_v15  ;;  %v3966_v12 = vld [vmem:[#allocation9 + $0x63c] sm:$0xf0]  ;;  %v3972_v13 = vld [vmem:[#allocation9 + $0x638] sm:$0xf]  ;;  %v4354_v15 = vld [vmem:[#allocation9 + $0x640] sm:$0xf0] }
 0x1ab   :  { %v3985_v10 = vor.u32 %v4357_v61, %v3984_v58  ;;  %v4075_v11 = vor.u32 %v4380_v63, %v4074_v62  ;;  %v3965_v19 = vor.u32 %v4353_v6, %v3964_v5  ;;  %v4124_v58 = vld [vmem:[#allocation9 + $0x774] sm:$0xf0] }
 0x1ac   :  { %v4127_v6 = vor.u32 %v4391_v56, %v4124_v58 }
 0x1ad   :  { %2182 = vmatpush.bf16.msra.mxu0 %v3777_v29  ;;  %2427 = vmatpush.bf16.msra.mxu1 %v3867_v30 }
 0x1ae   :  { %2440 = vmatpush.bf16.msra.mxu2 %v3871_v33  ;;  %2453 = vmatpush.bf16.msra.mxu3 %v3875_v34  ;;  %v4009_v33 = vor.u32 %v4363_v24, %v4008_v23  ;;  %v3988_v34 = vld [vmem:[#allocation9 + $0x660] sm:$0xf] }
 0x1af   :  { %v3989_v46 = vor.u32 %v4359_v35, %v3988_v34  ;;  %v4050_v34 = vld [vmem:[#allocation9 + $0x6d8] sm:$0xf]  ;;  %v4374_v35 = vld [vmem:[#allocation9 + $0x6e0] sm:$0xf0] }
 0x1b1   :  { %2183 = vmatpush.bf16.msra.mxu0 %v3765_v42  ;;  %2428 = vmatpush.bf16.msra.mxu1 %v3855_v43  ;;  %v4360_v42 = vld [vmem:[#allocation9 + $0x670] sm:$0xf0]  ;;  %v4086_v43 = vld [vmem:[#allocation9 + $0x720] sm:$0xf] }
 0x1b2   :  { %2441 = vmatpush.bf16.msra.mxu2 %v3859_v47  ;;  %2454 = vmatpush.bf16.msra.mxu3 %v3863_v48  ;;  %v3993_v47 = vor.u32 %v4358_v39, %v3990_v40  ;;  %v4751_v48 = vld [vmem:[#allocation10 + $0x3] sm:$0x7]  ;;  %v3997_v54 = vor.u32 %v4360_v42, %v3996_v41  ;;  %v4087_v55 = vor.u32 %v4383_v44, %v4086_v43 }
 0x1b3   :  { %v662_v9 = vperm.slane %v4751_v48, 0  ;;  %v663_v23 = vperm.slane %v4751_v48, 1  ;;  %v664_v24 = vperm.slane %v4751_v48, 2  ;;  %v3940_v41 = vld [vmem:[#allocation9 + $0x600] sm:$0xf]  ;;  %v3957_v42 = vor.u32 %v4349_v27, %v3954_v28 }
 0x1b4   :  { %v527_v29 = vpop.f32.mrf.mxu0  ;;  %v540_v30 = vpop.f32.mrf.mxu1 }
 0x1b5   :  { %2184 = vmatpush.bf16.msra.mxu0 %v3753_v59  ;;  %2429 = vmatpush.bf16.msra.mxu1 %v3843_v60  ;;  %v4746_v37 = vadd.f32 %v527_v29, %v384_v25  ;;  %v4748_v38 = vadd.f32 %v540_v30, %v385_v26  ;;  %v3973_v25 = vor.u32 %v4354_v15, %v3972_v13  ;;  %v3960_v29 = vld [vmem:[#allocation9 + $0x620] sm:$0xf]  ;;  %v4390_v15 = vld [vmem:[#allocation9 + $0x760] sm:$0xf0] }
 0x1b6   :  { %2442 = vmatpush.bf16.msra.mxu2 %v3847_v0  ;;  %2455 = vmatpush.bf16.msra.mxu3 %v3851_v1  ;;  %v4112_v13 = vld [vmem:[#allocation9 + $0x75c] sm:$0xf0] }
 0x1b7   :  { %v558_v52 = vsel %vm557_vm1, %v4746_v37, -inf  ;;  %v559_v53 = vsel %vm557_vm1, %v4748_v38, -inf }
 0x1b8   :  { %2185 = vmatmul.bf16.vlgmr.msra.gmra.mxu0 %v4716_v57  ;;  %2430 = vmatmul.bf16.vlgmr.msra.gmra.mxu1 %v4716_v57 }
 0x1b9   :  { %2693 = vmatpush.bf16.msrb.mxu0 %v4025_v2  ;;  %2706 = vmatpush.bf16.msrb.mxu1 %v4029_v3  ;;  %v3977_v3 = vor.u32 %v4356_v50, %v3976_v49  ;;  %v4051_v49 = vor.u32 %v4374_v35, %v4050_v34  ;;  %v3948_v50 = vld [vmem:[#allocation9 + $0x608] sm:$0xf]  ;;  %v4088_v34 = vld [vmem:[#allocation9 + $0x72c] sm:$0xf0] }
 0x1ba   :  { %2719 = vmatpush.bf16.msrb.mxu2 %v4033_v7  ;;  %2964 = vmatpush.bf16.msrb.mxu3 %v4123_v8  ;;  %v4352_v7 = vld [vmem:[#allocation9 + $0x634] sm:$0xf]  ;;  %v561_v8 = vmax.f32 %v558_v52, %v559_v53  ;;  %v4038_v52 = vld [vmem:[#allocation9 + $0x6c0] sm:$0xf]  ;;  %v4094_v35 = vld [vmem:[#allocation9 + $0x728] sm:$0xf] }
 0x1bb   :  { %2443 = vmatmul.bf16.vlgmr.msra.gmra.mxu2 %v4716_v57  ;;  %2456 = vmatmul.bf16.vlgmr.msra.gmra.mxu3 %v4716_v57  ;;  %v553_v59 = vpop.f32.mrf.mxu2  ;;  %v805_v60 = vpop.f32.mrf.mxu3  ;;  %v3969_v20 = vor.u32 %v4352_v7, %v3966_v12 }
 0x1bc   :  { %v4757_v0 = vadd.f32 %v553_v59, %v386_v45  ;;  %v529_v1 = vpop.f32.mrf.mxu0  ;;  %v542_v2 = vpop.f32.mrf.mxu1  ;;  %v4764_v30 = vadd.f32 %v805_v60, %v662_v9  ;;  %v4347_v45 = vld [vmem:[#allocation9 + $0x608] sm:$0xf0]  ;;  %v4130_v59 = vld [vmem:[#allocation9 + $0x770] sm:$0xf]  ;;  %v4393_v60 = vld [vmem:[#allocation9 + $0x778] sm:$0xf0] }
 0x1bd   :  { %2694 = vmatpush.bf16.msrb.mxu0 %v4013_v16  ;;  %2707 = vmatpush.bf16.msrb.mxu1 %v4017_v17  ;;  %v4062_v16 = vld [vmem:[#allocation9 + $0x6f0] sm:$0xf]  ;;  %v4377_v17 = vld [vmem:[#allocation9 + $0x6f8] sm:$0xf0]  ;;  %v3941_v62 = vor.u32 %v4347_v45, %v3940_v41  ;;  %v3949_v2 = vor.u32 %v4348_v51, %v3948_v50  ;;  %v4131_v7 = vor.u32 %v4393_v60, %v4130_v59  ;;  %v4076_v50 = vld [vmem:[#allocation9 + $0x714] sm:$0xf0] }
 0x1be   :  { %2720 = vmatpush.bf16.msrb.mxu2 %v4021_v21  ;;  %2965 = vmatpush.bf16.msrb.mxu3 %v4111_v22  ;;  %v560_v14 = vsel %vm557_vm1, %v4757_v0, -inf  ;;  %v3952_v21 = vld [vmem:[#allocation9 + $0x618] sm:$0xf]  ;;  %v4350_v22 = vld [vmem:[#allocation9 + $0x620] sm:$0xf0]  ;;  %v4063_v26 = vor.u32 %v4377_v17, %v4062_v16  ;;  %v835_v53 = vsel %vm557_vm1, %v4764_v30, -inf }
 0x1bf   :  { %v562_v18 = vmax.f32 %v561_v8, %v560_v14  ;;  %v4118_v14 = vld [vmem:[#allocation9 + $0x758] sm:$0xf]  ;;  %v4082_v51 = vld [vmem:[#allocation9 + $0x710] sm:$0xf] }
 0x1c1   :  { %2695 = vmatpush.bf16.msrb.mxu0 %v4001_v31  ;;  %2708 = vmatpush.bf16.msrb.mxu1 %v4005_v32 }
 0x1c2   :  { %2721 = vmatpush.bf16.msrb.mxu2 %v4009_v33  ;;  %2966 = vmatpush.bf16.msrb.mxu3 %v4099_v36  ;;  %v4351_v33 = vld [vmem:[#allocation9 + $0x628] sm:$0xf0]  ;;  %v3953_v36 = vor.u32 %v4350_v22, %v3952_v21  ;;  %v4100_v21 = vld [vmem:[#allocation9 + $0x744] sm:$0xf0]  ;;  %v4106_v22 = vld [vmem:[#allocation9 + $0x740] sm:$0xf] }
 0x1c3   :  { %563 = vmax.xlane.f32.xlu0 %v562_v18  ;;  %v555_v31 = vpop.f32.mrf.mxu2  ;;  %v807_v32 = vpop.f32.mrf.mxu3  ;;  %v3961_v48 = vor.u32 %v4351_v33, %v3960_v29  ;;  %v4382_v33 = vld [vmem:[#allocation9 + $0x724] sm:$0xf] }
 0x1c4   :  { %v818_v39 = vpop.f32.mrf.mxu0  ;;  %v831_v40 = vpop.f32.mrf.mxu1  ;;  %v1202_v32 = vld [vmem:[#allocation10 + $0x9] sm:$0x7] }
 0x1c5   :  { %2696 = vmatpush.bf16.msrb.mxu0 %v3989_v46  ;;  %2709 = vmatpush.bf16.msrb.mxu1 %v3993_v47  ;;  %v4766_v43 = vadd.f32 %v818_v39, %v663_v23  ;;  %v4768_v44 = vadd.f32 %v831_v40, %v664_v24  ;;  %v4346_v46 = vld [vmem:[#allocation9 + $0x604] sm:$0xf]  ;;  %v3942_v47 = vld [vmem:[#allocation9 + $0x60c] sm:$0xf0]  ;;  %v4387_v23 = vld [vmem:[#allocation9 + $0x748] sm:$0xf0] }
 0x1c6   :  { %2722 = vmatpush.bf16.msrb.mxu2 %v3997_v54  ;;  %2967 = vmatpush.bf16.msrb.mxu3 %v4087_v55  ;;  %v4371_v55 = vld [vmem:[#allocation9 + $0x6c8] sm:$0xf0]  ;;  %v3945_v63 = vor.u32 %v4346_v46, %v3942_v47  ;;  %v4107_v27 = vor.u32 %v4387_v23, %v4106_v22  ;;  %v1204_v46 = vperm.slane %v1202_v32, 0  ;;  %v4091_v47 = vor.u32 %v4382_v33, %v4088_v34  ;;  %v4370_v22 = vld [vmem:[#allocation9 + $0x6c4] sm:$0xf] }
 0x1c7   :  { %v836_v54 = vsel %vm557_vm1, %v4766_v43, -inf  ;;  %v837_v1 = vsel %vm557_vm1, %v4768_v44, -inf  ;;  %v1206_v56 = vperm.slane %v1202_v32, 2  ;;  %v4040_v23 = vld [vmem:[#allocation9 + $0x6cc] sm:$0xf0] }
 0x1c8   :  { %v838_v61 = vmax.f32 %v835_v53, %v836_v54  ;;  %v1473_v33 = vld [vmem:[#allocation10 + $0xc] sm:$0x7] }
 0x1c9   :  { %2697 = vmatpush.bf16.msrb.mxu0 %v3977_v3  ;;  %2710 = vmatpush.bf16.msrb.mxu1 %v3981_v4  ;;  %v4039_v3 = vor.u32 %v4371_v55, %v4038_v52  ;;  %v931_v4 = vld [vmem:[#allocation10 + $0x6] sm:$0x7]  ;;  %v4381_v52 = vld [vmem:[#allocation9 + $0x718] sm:$0xf0]  ;;  %v1205_v55 = vperm.slane %v1202_v32, 1  ;;  %v1475_v34 = vperm.slane %v1473_v33, 0 }
 0x1ca   :  { %2723 = vmatpush.bf16.msrb.mxu2 %v3985_v10  ;;  %2968 = vmatpush.bf16.msrb.mxu3 %v4075_v11  ;;  %v839_v5 = vmax.f32 %v838_v61, %v837_v1  ;;  %v4388_v10 = vld [vmem:[#allocation9 + $0x754] sm:$0xf]  ;;  %v933_v16 = vperm.slane %v931_v4, 0  ;;  %v934_v17 = vperm.slane %v931_v4, 1  ;;  %v935_v31 = vperm.slane %v931_v4, 2 }
 0x1cb   :  { %v1076_v8 = vpop.f32.mrf.mxu2  ;;  %v1089_v9 = vpop.f32.mrf.mxu3  ;;  %v4115_v18 = vor.u32 %v4388_v10, %v4112_v13  ;;  %v4083_v60 = vor.u32 %v4381_v52, %v4082_v51  ;;  %v4376_v61 = vld [vmem:[#allocation9 + $0x6f4] sm:$0xf]  ;;  %v4070_v1 = vld [vmem:[#allocation9 + $0x6f8] sm:$0xf] }
 0x1cc   :  { %v820_v11 = vpop.f32.mrf.mxu0  ;;  %v833_v12 = vpop.f32.mrf.mxu1  ;;  %840 = vmax.xlane.f32.xlu0 %v839_v5  ;;  %v4778_v24 = vadd.f32 %v1076_v8, %v933_v16  ;;  %v4375_v16 = vld [vmem:[#allocation9 + $0x6e8] sm:$0xf0] }
 0x1cd   :  { %2698 = vmatpush.bf16.msrb.mxu0 %v3965_v19  ;;  %2711 = vmatpush.bf16.msrb.mxu1 %v3969_v20  ;;  %v4119_v19 = vor.u32 %v4390_v15, %v4118_v14  ;;  %v4385_v20 = vld [vmem:[#allocation9 + $0x73c] sm:$0xf]  ;;  %v4052_v12 = vld [vmem:[#allocation9 + $0x6e4] sm:$0xf0]  ;;  %v4058_v15 = vld [vmem:[#allocation9 + $0x6e0] sm:$0xf] }
 0x1ce   :  { %2724 = vmatpush.bf16.msrb.mxu2 %v3973_v25  ;;  %2969 = vmatpush.bf16.msrb.mxu3 %v4063_v26  ;;  %v4780_v25 = vadd.f32 %v1089_v9, %v934_v17  ;;  %v4103_v26 = vor.u32 %v4385_v20, %v4100_v21  ;;  %v1106_v39 = vsel %vm557_vm1, %v4778_v24, -inf  ;;  %v4373_v11 = vld [vmem:[#allocation9 + $0x6dc] sm:$0xf]  ;;  %v4059_v20 = vor.u32 %v4375_v16, %v4058_v15 }
 0x1d0   :  { %v1107_v40 = vsel %vm557_vm1, %v4780_v25, -inf }
 0x1d1   :  { %2699 = vmatpush.bf16.msrb.mxu0 %v3953_v36  ;;  %2712 = vmatpush.bf16.msrb.mxu1 %v3957_v42  ;;  %v4384_v36 = vld [vmem:[#allocation9 + $0x730] sm:$0xf0]  ;;  %v1109_v53 = vmax.f32 %v1106_v39, %v1107_v40 }
 0x1d2   :  { %2725 = vmatpush.bf16.msrb.mxu2 %v3961_v48  ;;  %2970 = vmatpush.bf16.msrb.mxu3 %v4051_v49  ;;  %v4095_v48 = vor.u32 %v4384_v36, %v4094_v35  ;;  %v4379_v49 = vld [vmem:[#allocation9 + $0x70c] sm:$0xf]  ;;  %v1476_v35 = vperm.slane %v1473_v33, 1 }
 0x1d3   :  { %v1078_v28 = vpop.f32.mrf.mxu2  ;;  %v1091_v29 = vpop.f32.mrf.mxu3  ;;  %v4079_v59 = vor.u32 %v4379_v49, %v4076_v50 }
 0x1d5   :  { %2700 = vmatpush.bf16.msrb.mxu0 %v3941_v62  ;;  %2713 = vmatpush.bf16.msrb.mxu1 %v3945_v63  ;;  %v1102_v41 = vpop.f32.mrf.mxu0  ;;  %v1347_v42 = vpop.f32.mrf.mxu1  ;;  %v4064_v63 = vld [vmem:[#allocation9 + $0x6fc] sm:$0xf0] }
 0x1d6   :  { %2726 = vmatpush.bf16.msrb.mxu2 %v3949_v2  ;;  %2971 = vmatpush.bf16.msrb.mxu3 %v4039_v3  ;;  %v4788_v45 = vadd.f32 %v1102_v41, %v935_v31  ;;  %v4792_v62 = vadd.f32 %v1347_v42, %v1204_v46  ;;  %v4378_v2 = vld [vmem:[#allocation9 + $0x700] sm:$0xf0]  ;;  %v4067_v9 = vor.u32 %v4376_v61, %v4064_v63  ;;  %v1477_v42 = vperm.slane %v1473_v33, 2 }
 0x1d7   :  { %v4071_v10 = vor.u32 %v4378_v2, %v4070_v1  ;;  %v4043_v31 = vor.u32 %v4370_v22, %v4040_v23 }
 0x1d8   :  { %2701 = vmatmul.bf16.vlgmr.msrb.gmra.mxu0 %v4716_v57  ;;  %2714 = vmatmul.bf16.vlgmr.msrb.gmra.mxu1 %v4716_v57  ;;  %v1108_v54 = vsel %vm557_vm1, %v4788_v45, -inf  ;;  %v1377_v13 = vsel %vm557_vm1, %v4792_v62, -inf }
 0x1d9   :  { %2977 = vmatpush.bf16.msra.mxu0 %v4127_v6  ;;  %2990 = vmatpush.bf16.msra.mxu1 %v4131_v7  ;;  %v1110_v58 = vmax.f32 %v1109_v53, %v1108_v54 }
 0x1da   :  { %2727 = vmatmul.bf16.vlgmr.msrb.gmra.mxu2 %v4716_v57  ;;  %2972 = vmatmul.bf16.vlgmr.msrb.gmra.mxu3 %v4716_v57 }
 0x1db   :  { %1111 = vmax.xlane.f32.xlu1 %v1110_v58  ;;  %v1744_v58 = vld [vmem:[#allocation10 + $0xf] sm:$0x7] }
 0x1dc   :  { %v1748_v61 = vperm.slane %v1744_v58, 2 }
 0x1dd   :  { %2978 = vmatpush.bf16.msra.mxu0 %v4115_v18  ;;  %2991 = vmatpush.bf16.msra.mxu1 %v4119_v19  ;;  %v1104_v7 = vpop.f32.mrf.mxu0  ;;  %v1349_v8 = vpop.f32.mrf.mxu1  ;;  %v4055_v19 = vor.u32 %v4373_v11, %v4052_v12 }
 0x1de   :  { %v1360_v3 = vpop.f32.mrf.mxu2  ;;  %v1373_v4 = vpop.f32.mrf.mxu3 }
 0x1df   :  { %v4794_v5 = vadd.f32 %v1360_v3, %v1205_v55  ;;  %v4796_v6 = vadd.f32 %v1373_v4, %v1206_v56 }
 0x1e1   :  { %2979 = vmatpush.bf16.msra.mxu0 %v4103_v26  ;;  %2992 = vmatpush.bf16.msra.mxu1 %v4107_v27  ;;  %v1378_v14 = vsel %vm557_vm1, %v4794_v5, -inf  ;;  %v1379_v18 = vsel %vm557_vm1, %v4796_v6, -inf  ;;  %v4046_v26 = vld [vmem:[#allocation9 + $0x6c8] sm:$0xf]  ;;  %v4372_v27 = vld [vmem:[#allocation9 + $0x6d0] sm:$0xf0] }
 0x1e2   :  { %v1380_v17 = vmax.f32 %v1377_v13, %v1378_v14  ;;  %v4047_v32 = vor.u32 %v4372_v27, %v4046_v26 }
 0x1e4   :  { %v1381_v21 = vmax.f32 %v1380_v17, %v1379_v18  ;;  %v2015_v18 = vld [vmem:[#allocation10 + $0x12] sm:$0x7] }
 0x1e5   :  { %2980 = vmatpush.bf16.msra.mxu0 %v4091_v47  ;;  %2993 = vmatpush.bf16.msra.mxu1 %v4095_v48  ;;  %v2019_v23 = vperm.slane %v2015_v18, 2 }
 0x1e6   :  { %v1362_v28 = vpop.f32.mrf.mxu2  ;;  %v1375_v29 = vpop.f32.mrf.mxu3  ;;  %1382 = vmax.xlane.f32.xlu1 %v1381_v21 }
 0x1e7   :  { %v2286_v28 = vld [vmem:[#allocation10 + $0x15] sm:$0x7] }
 0x1e8   :  { %v2288_v33 = vperm.slane %v2286_v28, 0 }
 0x1e9   :  { %2981 = vmatpush.bf16.msra.mxu0 %v4079_v59  ;;  %2994 = vmatpush.bf16.msra.mxu1 %v4083_v60  ;;  %v1746_v59 = vperm.slane %v1744_v58, 0  ;;  %v1747_v60 = vperm.slane %v1744_v58, 1 }
 0x1ed   :  { %2982 = vmatpush.bf16.msra.mxu0 %v4067_v9  ;;  %2995 = vmatpush.bf16.msra.mxu1 %v4071_v10 }
 0x1f1   :  { %2983 = vmatpush.bf16.msra.mxu0 %v4055_v19  ;;  %2996 = vmatpush.bf16.msra.mxu1 %v4059_v20  ;;  %v2017_v19 = vperm.slane %v2015_v18, 0  ;;  %v2018_v20 = vperm.slane %v2015_v18, 1 }
 0x1f5   :  { %2984 = vmatpush.bf16.msra.mxu0 %v4043_v31  ;;  %2997 = vmatpush.bf16.msra.mxu1 %v4047_v32  ;;  %v1618_v36 = vpop.f32.mrf.mxu0  ;;  %v1631_v39 = vpop.f32.mrf.mxu1 }
 0x1f6   :  { %v4806_v40 = vadd.f32 %v1618_v36, %v1475_v34  ;;  %v4808_v41 = vadd.f32 %v1631_v39, %v1476_v35  ;;  %v2289_v36 = vperm.slane %v2286_v28, 1  ;;  %v2290_v39 = vperm.slane %v2286_v28, 2 }
 0x1f8   :  { %2985 = vmatmul.bf16.vlgmr.msra.gmra.mxu0 %v4716_v57  ;;  %2998 = vmatmul.bf16.vlgmr.msra.gmra.mxu1 %v4716_v57  ;;  %v1648_v46 = vsel %vm557_vm1, %v4806_v40, -inf  ;;  %v1649_v47 = vsel %vm557_vm1, %v4808_v41, -inf }
 0x1f9   :  { %v1651_v52 = vmax.f32 %v1648_v46, %v1649_v47  ;;  %v343_v46 = vlaneseq }
 0x1fb   :  { %vm5025_vm10 = vcmp.lt.s32.totalorder %v343_v46, 384 }
 0x1fd   :  { %v1620_v57 = vpop.f32.mrf.mxu0  ;;  %v1633_v51 = vpop.f32.mrf.mxu1 }
 0x1fe   :  { %v1644_v48 = vpop.f32.mrf.mxu2  ;;  %v1889_v49 = vpop.f32.mrf.mxu3 }
 0x1ff   :  { %v4814_v50 = vadd.f32 %v1644_v48, %v1477_v42  ;;  %v4818_v63 = vadd.f32 %v1889_v49, %v1746_v59  ;;  %v344_v59 = vand.u32 127, %v343_v46 }
 0x201   :  { %v1650_v53 = vsel %vm557_vm1, %v4814_v50, -inf  ;;  %v1919_v7 = vsel %vm557_vm1, %v4818_v63, -inf }
 0x202   :  { %v1652_v54 = vmax.f32 %v1651_v52, %v1650_v53 }
 0x204   :  { %1653 = vmax.xlane.f32.xlu2 %v1652_v54 }
 0x206   :  { %v1646_v55 = vpop.f32.mrf.mxu2  ;;  %v1891_v56 = vpop.f32.mrf.mxu3 }
 0x215   :  { %v1902_v1 = vpop.f32.mrf.mxu0  ;;  %v1915_v2 = vpop.f32.mrf.mxu1 }
 0x216   :  { %v4820_v3 = vadd.f32 %v1902_v1, %v1747_v60  ;;  %v4822_v4 = vadd.f32 %v1915_v2, %v1748_v61 }
 0x218   :  { %v1920_v8 = vsel %vm557_vm1, %v4820_v3, -inf  ;;  %v1921_v10 = vsel %vm557_vm1, %v4822_v4, -inf }
 0x219   :  { %v1922_v9 = vmax.f32 %v1919_v7, %v1920_v8  ;;  %v4858_v8 = vadd.s32 256, %v344_v59 }
 0x21b   :  { %v1923_v11 = vmax.f32 %v1922_v9, %v1921_v10  ;;  %vm349_vm2 = vcmp.lt.s32.totalorder %v4858_v8, 301 }
 0x21d   :  { %v1904_v14 = vpop.f32.mrf.mxu0  ;;  %v1917_v15 = vpop.f32.mrf.mxu1  ;;  %1924 = vmax.xlane.f32.xlu2 %v1923_v11 }
 0x21e   :  { %v2160_v12 = vpop.f32.mrf.mxu2  ;;  %v2173_v13 = vpop.f32.mrf.mxu3 }
 0x21f   :  { %v4830_v21 = vadd.f32 %v2160_v12, %v2017_v19  ;;  %v4832_v22 = vadd.f32 %v2173_v13, %v2018_v20 }
 0x221   :  { %v2190_v26 = vsel %vm557_vm1, %v4830_v21, -inf  ;;  %v2191_v27 = vsel %vm557_vm1, %v4832_v22, -inf }
 0x222   :  { %v2193_v34 = vmax.f32 %v2190_v26, %v2191_v27  ;;  %v2557_v27 = vld [vmem:[#allocation10 + $0x18] sm:$0x7] }
 0x226   :  { %v2162_v16 = vpop.f32.mrf.mxu2  ;;  %v2175_v17 = vpop.f32.mrf.mxu3 }
 0x235   :  { %v2186_v29 = vpop.f32.mrf.mxu0  ;;  %v2431_v31 = vpop.f32.mrf.mxu1 }
 0x236   :  { %v4838_v32 = vadd.f32 %v2186_v29, %v2019_v23  ;;  %v4842_v47 = vadd.f32 %v2431_v31, %v2288_v33  ;;  %v564_v48 = vpop.xlane.xlu0 %563  ;;  %v2559_v31 = vperm.slane %v2557_v27, 0  ;;  %v2560_v33 = vperm.slane %v2557_v27, 1 }
 0x237   :  { %v565_v51 = vsub.f32 %v4746_v37, %v564_v48  ;;  %v566_v52 = vsub.f32 %v4748_v38, %v564_v48  ;;  %v567_v53 = vsub.f32 %v4757_v0, %v564_v48 }
 0x238   :  { %v2192_v35 = vsel %vm557_vm1, %v4838_v32, -inf  ;;  %v2461_v2 = vsel %vm557_vm1, %v4842_v47, -inf }
 0x239   :  { %v2194_v42 = vmax.f32 %v2193_v34, %v2192_v35  ;;  %v568_v60 = vmul.f32 1.442695, %v565_v51  ;;  %v570_v61 = vmul.f32 1.442695, %v566_v52  ;;  %v572_v1 = vmul.f32 1.442695, %v567_v53 }
 0x23b   :  { %2195 = vmax.xlane.f32.xlu0 %v2194_v42  ;;  %4409 = vpow2.f32 %v568_v60 }
 0x23c   :  { %4411 = vpow2.f32 %v570_v61 }
 0x23d   :  { %v2188_v56 = vpop.f32.mrf.mxu0  ;;  %v2433_v58 = vpop.f32.mrf.mxu1  ;;  %4413 = vpow2.f32 %v572_v1 }
 0x23e   :  { %v2444_v49 = vpop.f32.mrf.mxu2  ;;  %v2457_v57 = vpop.f32.mrf.mxu3 }
 0x23f   :  { %v4847_v54 = vadd.f32 %v2444_v49, %v2289_v36  ;;  %v4849_v55 = vadd.f32 %v2457_v57, %v2290_v39  ;;  %v841_v15 = vpop.xlane.xlu0 %840 }
 0x240   :  { %v842_v20 = vsub.f32 %v4764_v30, %v841_v15  ;;  %v843_v26 = vsub.f32 %v4766_v43, %v841_v15  ;;  %v844_v28 = vsub.f32 %v4768_v44, %v841_v15  ;;  %v2561_v43 = vperm.slane %v2557_v27, 2 }
 0x241   :  { %v2462_v37 = vsel %vm557_vm1, %v4847_v54, -inf  ;;  %v2463_v0 = vsel %vm557_vm1, %v4849_v55, -inf  ;;  %v4860_v11 = vpop.eup %4409 }
 0x242   :  { %v2464_v38 = vmax.f32 %v2461_v2, %v2462_v37  ;;  %v4863_v12 = vpop.eup %4411  ;;  %v577_v13 = vsel %vm557_vm1, %v4860_v11, 0.0  ;;  %v845_v29 = vmul.f32 1.442695, %v842_v20  ;;  %v847_v34 = vmul.f32 1.442695, %v843_v26 }
 0x243   :  { %v4414_v14 = vpop.eup %4413  ;;  %v578_v17 = vsel %vm557_vm1, %v4863_v12, 0.0  ;;  %v849_v35 = vmul.f32 1.442695, %v844_v28  ;;  %v2828_v28 = vld [vmem:[#allocation10 + $0x1b] sm:$0x7] }
 0x244   :  { %v2465_v7 = vmax.f32 %v2464_v38, %v2463_v0  ;;  %v4869_v16 = vsel %vm349_vm2, %v4414_v14, 0.0  ;;  %v579_v18 = vadd.f32 %v578_v17, %v577_v13  ;;  %4415 = vpow2.f32 %v845_v29 }
 0x245   :  { %v580_v19 = vsel %vm557_vm1, %v4869_v16, 0.0  ;;  %4417 = vpow2.f32 %v847_v34 }
 0x246   :  { %v2446_v9 = vpop.f32.mrf.mxu2  ;;  %v2459_v10 = vpop.f32.mrf.mxu3  ;;  %2466 = vmax.xlane.f32.xlu1 %v2465_v7  ;;  %v581_v23 = vadd.f32 %v580_v19, %v579_v18  ;;  %4419 = vpow2.f32 %v849_v35 }
 0x24a   :  { %v4886_v52 = vpop.eup %4415 }
 0x24b   :  { %v4890_v59 = vpop.eup %4417  ;;  %v854_v38 = vsel %vm557_vm1, %v4886_v52, 0.0 }
 0x24c   :  { %v4420_v61 = vpop.eup %4419  ;;  %v855_v10 = vsel %vm557_vm1, %v4890_v59, 0.0 }
 0x24d   :  { %v4903_v13 = vsel %vm349_vm2, %v4420_v61, 0.0  ;;  %v856_v20 = vadd.f32 %v855_v10, %v854_v38 }
 0x24e   :  { %582 = vadd.xlane.f32.xlu1 %v581_v23  ;;  %v1112_v30 = vpop.xlane.xlu1 %1111 }
 0x24f   :  { %v1114_v23 = vsub.f32 %v4780_v25, %v1112_v30  ;;  %v1115_v26 = vsub.f32 %v4788_v45, %v1112_v30 }
 0x251   :  { %v1118_v35 = vmul.f32 1.442695, %v1114_v23 }
 0x255   :  { %v2702_v36 = vpop.f32.mrf.mxu0  ;;  %v2715_v39 = vpop.f32.mrf.mxu1 }
 0x256   :  { %v4878_v42 = vadd.f32 %v2702_v36, %v2559_v31  ;;  %v4880_v48 = vadd.f32 %v2715_v39, %v2560_v33  ;;  %v2830_v36 = vperm.slane %v2828_v28, 0  ;;  %v1120_v39 = vmul.f32 1.442695, %v1115_v26 }
 0x258   :  { %v2732_v44 = vsel %vm557_vm1, %v4878_v42, -inf  ;;  %v2733_v49 = vsel %vm557_vm1, %v4880_v48, -inf }
 0x259   :  { %v2735_v60 = vmax.f32 %v2732_v44, %v2733_v49  ;;  %v1383_v37 = vpop.xlane.xlu1 %1382  ;;  %v2832_v44 = vperm.slane %v2828_v28, 2 }
 0x25a   :  { %v1384_v0 = vsub.f32 %v4792_v62, %v1383_v37  ;;  %v1385_v7 = vsub.f32 %v4794_v5, %v1383_v37  ;;  %v1386_v9 = vsub.f32 %v4796_v6, %v1383_v37  ;;  %v857_v62 = vsel %vm557_vm1, %v4903_v13, 0.0 }
 0x25b   :  { %v1113_v5 = vsub.f32 %v4778_v24, %v1112_v30  ;;  %v858_v6 = vadd.f32 %v857_v62, %v856_v20 }
 0x25c   :  { %v1387_v14 = vmul.f32 1.442695, %v1384_v0  ;;  %v1389_v15 = vmul.f32 1.442695, %v1385_v7  ;;  %v1391_v17 = vmul.f32 1.442695, %v1386_v9 }
 0x25d   :  { %v2728_v57 = vpop.f32.mrf.mxu2  ;;  %v2973_v51 = vpop.f32.mrf.mxu3  ;;  %v1116_v31 = vmul.f32 1.442695, %v1113_v5 }
 0x25e   :  { %v4888_v53 = vadd.f32 %v2728_v57, %v2561_v43  ;;  %v2704_v56 = vpop.f32.mrf.mxu0  ;;  %v2717_v58 = vpop.f32.mrf.mxu1  ;;  %4421 = vpow2.f32 %v1387_v14  ;;  %v2831_v43 = vperm.slane %v2828_v28, 1  ;;  %v4924_v57 = vadd.f32 %v2973_v51, %v2830_v36 }
 0x25f   :  { %4423 = vpow2.f32 %v1389_v15 }
 0x260   :  { %v2734_v1 = vsel %vm557_vm1, %v4888_v53, -inf  ;;  %4425 = vpow2.f32 %v1391_v17 }
 0x261   :  { %v2736_v2 = vmax.f32 %v2735_v60, %v2734_v1  ;;  %4427 = vpow2.f32 %v1116_v31 }
 0x262   :  { %4429 = vpow2.f32 %v1118_v35 }
 0x263   :  { %2737 = vmax.xlane.f32.xlu2 %v2736_v2  ;;  %4431 = vpow2.f32 %v1120_v39  ;;  %v3003_v2 = vsel %vm557_vm1, %v4924_v57, -inf }
 0x264   :  { %v4910_v27 = vpop.eup %4421 }
 0x265   :  { %v2730_v18 = vpop.f32.mrf.mxu2  ;;  %v2975_v19 = vpop.f32.mrf.mxu3  ;;  %v1396_v33 = vsel %vm557_vm1, %v4910_v27, 0.0 }
 0x266   :  { %v4912_v29 = vpop.eup %4423 }
 0x267   :  { %v4426_v34 = vpop.eup %4425  ;;  %v1397_v24 = vsel %vm557_vm1, %v4912_v29, 0.0 }
 0x268   :  { %v4920_v25 = vsel %vm349_vm2, %v4426_v34, 0.0  ;;  %v1398_v45 = vadd.f32 %v1397_v24, %v1396_v33  ;;  %v4930_v1 = vpop.eup %4427 }
 0x269   :  { %v1399_v30 = vsel %vm557_vm1, %v4920_v25, 0.0  ;;  %v4936_v38 = vpop.eup %4429  ;;  %v1125_v10 = vsel %vm557_vm1, %v4930_v1, 0.0 }
 0x26a   :  { %v1400_v49 = vadd.f32 %v1399_v30, %v1398_v45  ;;  %v4432_v0 = vpop.eup %4431  ;;  %v1126_v14 = vsel %vm557_vm1, %v4936_v38, 0.0 }
 0x26b   :  { %859 = vadd.xlane.f32.xlu2 %v858_v6  ;;  %v4946_v18 = vsel %vm349_vm2, %v4432_v0, 0.0  ;;  %v1127_v6 = vadd.f32 %v1126_v14, %v1125_v10 }
 0x26c   :  { %1401 = vadd.xlane.f32.xlu1 %v1400_v49  ;;  %v1128_v23 = vsel %vm557_vm1, %v4946_v18, 0.0 }
 0x26d   :  { %v1129_v33 = vadd.f32 %v1128_v23, %v1127_v6 }
 0x275   :  { %v2986_v56 = vpop.f32.mrf.mxu0  ;;  %v2999_v58 = vpop.f32.mrf.mxu1 }
 0x276   :  { %v4926_v60 = vadd.f32 %v2986_v56, %v2831_v43  ;;  %v4928_v61 = vadd.f32 %v2999_v58, %v2832_v44 }
 0x277   :  { %v1654_v19 = vpop.xlane.xlu2 %1653 }
 0x278   :  { %v3004_v37 = vsel %vm557_vm1, %v4926_v60, -inf  ;;  %v3005_v7 = vsel %vm557_vm1, %v4928_v61, -inf  ;;  %v1655_v20 = vsub.f32 %v4806_v40, %v1654_v19  ;;  %v1656_v62 = vsub.f32 %v4808_v41, %v1654_v19 }
 0x279   :  { %v3006_v51 = vmax.f32 %v3003_v2, %v3004_v37  ;;  %v1657_v5 = vsub.f32 %v4814_v50, %v1654_v19 }
 0x27a   :  { %v1658_v26 = vmul.f32 1.442695, %v1655_v20  ;;  %v1660_v28 = vmul.f32 1.442695, %v1656_v62 }
 0x27b   :  { %v3007_v9 = vmax.f32 %v3006_v51, %v3005_v7  ;;  %v1662_v31 = vmul.f32 1.442695, %v1657_v5 }
 0x27c   :  { %4433 = vpow2.f32 %v1658_v26 }
 0x27d   :  { %v2988_v15 = vpop.f32.mrf.mxu0  ;;  %v3001_v17 = vpop.f32.mrf.mxu1  ;;  %3008 = vmax.xlane.f32.xlu0 %v3007_v9  ;;  %4435 = vpow2.f32 %v1660_v28 }
 0x27e   :  { %4437 = vpow2.f32 %v1662_v31 }
 0x282   :  { %v4953_v34 = vpop.eup %4433 }
 0x283   :  { %v4955_v35 = vpop.eup %4435  ;;  %v1667_v40 = vsel %vm557_vm1, %v4953_v34, 0.0 }
 0x284   :  { %v4438_v41 = vpop.eup %4437  ;;  %v1668_v50 = vsel %vm557_vm1, %v4955_v35, 0.0 }
 0x285   :  { %1130 = vadd.xlane.f32.xlu0 %v1129_v33  ;;  %v4963_v24 = vsel %vm349_vm2, %v4438_v41, 0.0  ;;  %v1669_v36 = vadd.f32 %v1668_v50, %v1667_v40 }
 0x286   :  { %v1670_v39 = vsel %vm557_vm1, %v4963_v24, 0.0 }
 0x287   :  { %v1671_v45 = vadd.f32 %v1670_v39, %v1669_v36 }
 0x289   :  { %1672 = vadd.xlane.f32.xlu2 %v1671_v45 }
 0x290   :  { %v1925_v30 = vpop.xlane.xlu2 %1924 }
 0x291   :  { %v1926_v43 = vsub.f32 %v4818_v63, %v1925_v30  ;;  %v1927_v44 = vsub.f32 %v4820_v3, %v1925_v30  ;;  %v1928_v49 = vsub.f32 %v4822_v4, %v1925_v30 }
 0x293   :  { %v1929_v56 = vmul.f32 1.442695, %v1926_v43  ;;  %v1931_v58 = vmul.f32 1.442695, %v1927_v44  ;;  %v1933_v2 = vmul.f32 1.442695, %v1928_v49 }
 0x295   :  { %4439 = vpow2.f32 %v1929_v56 }
 0x296   :  { %4441 = vpow2.f32 %v1931_v58 }
 0x297   :  { %4443 = vpow2.f32 %v1933_v2 }
 0x29b   :  { %v4970_v37 = vpop.eup %4439 }
 0x29c   :  { %v4972_v51 = vpop.eup %4441  ;;  %v1938_v0 = vsel %vm557_vm1, %v4970_v37, 0.0 }
 0x29d   :  { %v4444_v7 = vpop.eup %4443  ;;  %v1939_v63 = vsel %vm557_vm1, %v4972_v51, 0.0 }
 0x29e   :  { %v4980_v3 = vsel %vm349_vm2, %v4444_v7, 0.0  ;;  %v1940_v4 = vadd.f32 %v1939_v63, %v1938_v0 }
 0x29f   :  { %v1941_v9 = vsel %vm557_vm1, %v4980_v3, 0.0 }
 0x2a0   :  { %v1942_v10 = vadd.f32 %v1941_v9, %v1940_v4 }
 0x2a2   :  { %1943 = vadd.xlane.f32.xlu0 %v1942_v10 }
 0x2ae   :  { %v2196_v14 = vpop.xlane.xlu0 %2195 }
 0x2af   :  { %v2197_v15 = vsub.f32 %v4830_v21, %v2196_v14  ;;  %v2198_v17 = vsub.f32 %v4832_v22, %v2196_v14  ;;  %v2199_v19 = vsub.f32 %v4838_v32, %v2196_v14 }
 0x2b1   :  { %v2200_v20 = vmul.f32 1.442695, %v2197_v15  ;;  %v2202_v62 = vmul.f32 1.442695, %v2198_v17  ;;  %v2204_v5 = vmul.f32 1.442695, %v2199_v19 }
 0x2b3   :  { %4445 = vpow2.f32 %v2200_v20 }
 0x2b4   :  { %4447 = vpow2.f32 %v2202_v62 }
 0x2b5   :  { %4449 = vpow2.f32 %v2204_v5 }
 0x2b9   :  { %v2467_v6 = vpop.xlane.xlu1 %2466  ;;  %v4990_v31 = vpop.eup %4445 }
 0x2ba   :  { %v2468_v23 = vsub.f32 %v4842_v47, %v2467_v6  ;;  %v2469_v26 = vsub.f32 %v4847_v54, %v2467_v6  ;;  %v2470_v28 = vsub.f32 %v4849_v55, %v2467_v6  ;;  %v4992_v21 = vpop.eup %4447  ;;  %v2209_v41 = vsel %vm557_vm1, %v4990_v31, 0.0 }
 0x2bb   :  { %v4450_v40 = vpop.eup %4449  ;;  %v2210_v50 = vsel %vm557_vm1, %v4992_v21, 0.0 }
 0x2bc   :  { %v2471_v22 = vmul.f32 1.442695, %v2468_v23  ;;  %v2473_v33 = vmul.f32 1.442695, %v2469_v26  ;;  %v2475_v32 = vmul.f32 1.442695, %v2470_v28  ;;  %v2211_v54 = vadd.f32 %v2210_v50, %v2209_v41 }
 0x2bd   :  { %v5000_v47 = vsel %vm349_vm2, %v4450_v40, 0.0 }
 0x2be   :  { %4451 = vpow2.f32 %v2471_v22  ;;  %v2212_v55 = vsel %vm557_vm1, %v5000_v47, 0.0 }
 0x2bf   :  { %4453 = vpow2.f32 %v2473_v33  ;;  %v2213_v36 = vadd.f32 %v2212_v55, %v2211_v54 }
 0x2c0   :  { %4455 = vpow2.f32 %v2475_v32 }
 0x2c1   :  { %2214 = vadd.xlane.f32.xlu1 %v2213_v36  ;;  %v583_v39 = vpop.xlane.xlu1 %582 }
 0x2c2   :  { %4457 = vrcp.f32 %v583_v39  ;;  %v595_v9 = vand.u32 2147483648, %v583_v39  ;;  %v593_v14 = vand.u32 2147483647, %v583_v39  ;;  %vm589_vm4 = vweird.f32 %v583_v39 }
 0x2c4   :  { %v5004_v45 = vpop.eup %4451  ;;  %v596_v17 = vor.u32 1.1754944e-38, %v595_v9  ;;  %vm594_vm6 = vcmp.eq.f32.partialorder %v593_v14, 8.507059e+37 }
 0x2c5   :  { %v5006_v30 = vpop.eup %4453  ;;  %v2480_v43 = vsel %vm557_vm1, %v5004_v45, 0.0 }
 0x2c6   :  { %v4456_v44 = vpop.eup %4455  ;;  %v2481_v49 = vsel %vm557_vm1, %v5006_v30, 0.0 }
 0x2c7   :  { %v5014_v56 = vsel %vm349_vm2, %v4456_v44, 0.0  ;;  %v2482_v58 = vadd.f32 %v2481_v49, %v2480_v43 }
 0x2c8   :  { %v2483_v2 = vsel %vm557_vm1, %v5014_v56, 0.0  ;;  %v4458_v7 = vpop.eup %4457 }
 0x2c9   :  { %v2484_v0 = vadd.f32 %v2483_v2, %v2482_v58  ;;  %v585_v63 = vmul.f32 %v4458_v7, %v583_v39  ;;  %vm590_vm3 = vweird.f32 %v4458_v7 }
 0x2ca   :  { %vm591_vm5 = vmor %vm589_vm4, %vm590_vm3 }
 0x2cb   :  { %2485 = vadd.xlane.f32.xlu2 %v2484_v0  ;;  %v586_v4 = vsub.f32 1.0, %v585_v63 }
 0x2cd   :  { %v587_v10 = vmul.f32 %v4458_v7, %v586_v4 }
 0x2cf   :  { %v588_v15 = vadd.f32 %v4458_v7, %v587_v10 }
 0x2d1   :  { %v592_v19 = vsel %vm591_vm5, %v4458_v7, %v588_v15 }
 0x2d2   :  { %v597_v20 = vsel %vm594_vm6, %v596_v17, %v592_v19 }
 0x2d3   :  { %v600_v5 = vmul.f32 %v4863_v12, %v597_v20  ;;  %v601_v6 = vmul.f32 %v597_v20, %v4869_v16  ;;  %v599_v22 = vmul.f32 %v4860_v11, %v597_v20 }
 0x2d5   :  { %v605_v33 = vrot.slane %v600_v5, 7  ;;  %v606_v32 = vrot.slane %v601_v6, 6 }
 0x2d6   :  { %v2738_v62 = vpop.xlane.xlu2 %2737 }
 0x2d7   :  { %v2739_v23 = vsub.f32 %v4878_v42, %v2738_v62  ;;  %v2740_v26 = vsub.f32 %v4880_v48, %v2738_v62  ;;  %v2741_v28 = vsub.f32 %v4888_v53, %v2738_v62  ;;  %v608_v42 = vsel %vm607_vm7, %v599_v22, %v605_v33 }
 0x2d8   :  { %v611_v50 = vsel %vm610_vm8, %v599_v22, %v605_v33  ;;  %v609_v48 = vsel %vm557_vm1, %v608_v42, %v606_v32 }
 0x2d9   :  { %v2742_v40 = vmul.f32 1.442695, %v2739_v23  ;;  %v2744_v12 = vmul.f32 1.442695, %v2740_v26  ;;  %v2746_v16 = vmul.f32 1.442695, %v2741_v28  ;;  %v613_v53 = vsel %vm612_vm9, %v611_v50, %v606_v32 }
 0x2da   :  { %v614_v11 = vrot.slane %v613_v53, 1  ;;  %621 = vst.msk [vmem:[%s5235_s7] ss:$8 sm:$0x7] %vm5025_vm10, %v609_v48 }
 0x2db   :  { %4459 = vpow2.f32 %v2742_v40 }
 0x2dc   :  { %4461 = vpow2.f32 %v2744_v12  ;;  %3251 = vst.msk [vmem:[%s5235_s7 + $0x30] ss:$8 sm:$0x7] %vm5025_vm10, %v614_v11 }
 0x2dd   :  { %4463 = vpow2.f32 %v2746_v16 }
 0x2de   :  { %v860_v46 = vpop.xlane.xlu2 %859 }
 0x2df   :  { %4465 = vrcp.f32 %v860_v46  ;;  %v1402_v63 = vpop.xlane.xlu1 %1401  ;;  %v872_v9 = vand.u32 2147483648, %v860_v46  ;;  %v870_v14 = vand.u32 2147483647, %v860_v46  ;;  %vm866_vm12 = vweird.f32 %v860_v46 }
 0x2e0   :  { %4467 = vrcp.f32 %v1402_v63  ;;  %v1412_v6 = vand.u32 2147483647, %v1402_v63  ;;  %v1414_v33 = vand.u32 2147483648, %v1402_v63  ;;  %vm1408_vm0 = vweird.f32 %v1402_v63 }
 0x2e1   :  { %v5043_v54 = vpop.eup %4459  ;;  %v873_v19 = vor.u32 1.1754944e-38, %v872_v9  ;;  %vm871_vm14 = vcmp.eq.f32.partialorder %v870_v14, 8.507059e+37 }
 0x2e2   :  { %v5045_v55 = vpop.eup %4461  ;;  %v2751_v36 = vsel %vm557_vm1, %v5043_v54, 0.0  ;;  %vm1413_vm4 = vcmp.eq.f32.partialorder %v1412_v6, 8.507059e+37 }
 0x2e3   :  { %v4464_v39 = vpop.eup %4463  ;;  %v2752_v43 = vsel %vm557_vm1, %v5045_v55, 0.0 }
 0x2e4   :  { %v5053_v44 = vsel %vm349_vm2, %v4464_v39, 0.0  ;;  %v2753_v49 = vadd.f32 %v2752_v43, %v2751_v36 }
 0x2e5   :  { %v4466_v58 = vpop.eup %4465  ;;  %v2754_v2 = vsel %vm557_vm1, %v5053_v44, 0.0 }
 0x2e6   :  { %v862_v0 = vmul.f32 %v4466_v58, %v860_v46  ;;  %v2755_v7 = vadd.f32 %v2754_v2, %v2753_v49  ;;  %vm867_vm11 = vweird.f32 %v4466_v58  ;;  %v4468_v17 = vpop.eup %4467 }
 0x2e7   :  { %vm868_vm13 = vmor %vm866_vm12, %vm867_vm11  ;;  %v1404_v62 = vmul.f32 %v4468_v17, %v1402_v63  ;;  %vm1409_vm15 = vweird.f32 %v4468_v17 }
 0x2e8   :  { %v863_v4 = vsub.f32 1.0, %v862_v0  ;;  %2756 = vadd.xlane.f32.xlu0 %v2755_v7  ;;  %vm1410_vm3 = vmor %vm1408_vm0, %vm1409_vm15 }
 0x2e9   :  { %v1405_v22 = vsub.f32 1.0, %v1404_v62 }
 0x2ea   :  { %v864_v10 = vmul.f32 %v4466_v58, %v863_v4 }
 0x2eb   :  { %v1406_v48 = vmul.f32 %v4468_v17, %v1405_v22 }
 0x2ec   :  { %v865_v15 = vadd.f32 %v4466_v58, %v864_v10 }
 0x2ed   :  { %v1407_v36 = vadd.f32 %v4468_v17, %v1406_v48 }
 0x2ee   :  { %v869_v20 = vsel %vm868_vm13, %v4466_v58, %v865_v15 }
 0x2ef   :  { %v874_v5 = vsel %vm871_vm14, %v873_v19, %v869_v20  ;;  %v1411_v39 = vsel %vm1410_vm3, %v4468_v17, %v1407_v36 }
 0x2f0   :  { %v3009_v23 = vpop.xlane.xlu0 %3008  ;;  %v877_v26 = vmul.f32 %v4890_v59, %v874_v5  ;;  %v878_v28 = vmul.f32 %v874_v5, %v4903_v13  ;;  %v876_v16 = vmul.f32 %v4886_v52, %v874_v5 }
 0x2f1   :  { %v3010_v32 = vsub.f32 %v4924_v57, %v3009_v23  ;;  %v3011_v40 = vsub.f32 %v4926_v60, %v3009_v23  ;;  %v3012_v12 = vsub.f32 %v4928_v61, %v3009_v23  ;;  %v1415_v61 = vor.u32 1.1754944e-38, %v1414_v33 }
 0x2f2   :  { %v882_v42 = vrot.slane %v877_v26, 7  ;;  %v883_v50 = vrot.slane %v878_v28, 6 }
 0x2f3   :  { %v3013_v53 = vmul.f32 1.442695, %v3010_v32  ;;  %v3015_v11 = vmul.f32 1.442695, %v3011_v40  ;;  %v3017_v46 = vmul.f32 1.442695, %v3012_v12  ;;  %v1416_v43 = vsel %vm1413_vm4, %v1415_v61, %v1411_v39 }
 0x2f4   :  { %v884_v59 = vsel %vm607_vm7, %v876_v16, %v882_v42  ;;  %v886_v13 = vsel %vm610_vm8, %v876_v16, %v882_v42  ;;  %v1419_v58 = vmul.f32 %v4912_v29, %v1416_v43  ;;  %v1420_v2 = vmul.f32 %v1416_v43, %v4920_v25 }
 0x2f5   :  { %v885_v57 = vsel %vm557_vm1, %v884_v59, %v883_v50  ;;  %v887_v60 = vsel %vm612_vm9, %v886_v13, %v883_v50  ;;  %4469 = vpow2.f32 %v3013_v53  ;;  %v1418_v0 = vmul.f32 %v4910_v27, %v1416_v43 }
 0x2f6   :  { %v888_v52 = vrot.slane %v887_v60, 1  ;;  %3348 = vst.msk [vmem:[%s5235_s7 + $0x1] ss:$8 sm:$0x7] %vm5025_vm10, %v885_v57  ;;  %4471 = vpow2.f32 %v3015_v11  ;;  %v1424_v7 = vrot.slane %v1419_v58, 7  ;;  %v1425_v63 = vrot.slane %v1420_v2, 6 }
 0x2f7   :  { %4473 = vpow2.f32 %v3017_v46 }
 0x2f8   :  { %v1131_v49 = vpop.xlane.xlu0 %1130  ;;  %3349 = vst.msk [vmem:[%s5235_s7 + $0x31] ss:$8 sm:$0x7] %vm5025_vm10, %v888_v52  ;;  %v1426_v10 = vsel %vm607_vm7, %v1418_v0, %v1424_v7  ;;  %v1428_v14 = vsel %vm610_vm8, %v1418_v0, %v1424_v7 }
 0x2f9   :  { %4475 = vrcp.f32 %v1131_v49  ;;  %v1427_v29 = vsel %vm557_vm1, %v1426_v10, %v1425_v63  ;;  %v1429_v25 = vsel %vm612_vm9, %v1428_v14, %v1425_v63  ;;  %v1143_v22 = vand.u32 2147483648, %v1131_v49 }
 0x2fa   :  { %v1430_v20 = vrot.slane %v1429_v25, 1  ;;  %3544 = vst.msk [vmem:[%s5235_s7 + $0x3] ss:$8 sm:$0x7] %vm5025_vm10, %v1427_v29  ;;  %v1141_v8 = vand.u32 2147483647, %v1131_v49 }
 0x2fb   :  { %v5081_v4 = vpop.eup %4469  ;;  %v1144_v12 = vor.u32 1.1754944e-38, %v1143_v22 }
 0x2fc   :  { %v5083_v9 = vpop.eup %4471  ;;  %v3022_v15 = vsel %vm557_vm1, %v5081_v4, 0.0  ;;  %3545 = vst.msk [vmem:[%s5235_s7 + $0x33] ss:$8 sm:$0x7] %vm5025_vm10, %v1430_v20  ;;  %v1673_v33 = vpop.xlane.xlu2 %1672  ;;  %vm1142_vm11 = vcmp.eq.f32.partialorder %v1141_v8, 8.507059e+37 }
 0x2fd   :  { %v4474_v17 = vpop.eup %4473  ;;  %v3023_v27 = vsel %vm557_vm1, %v5083_v9, 0.0  ;;  %4477 = vrcp.f32 %v1673_v33  ;;  %v1683_v61 = vand.u32 2147483647, %v1673_v33  ;;  %v1685_v52 = vand.u32 2147483648, %v1673_v33 }
 0x2fe   :  { %v5100_v62 = vsel %vm349_vm2, %v4474_v17, 0.0  ;;  %v3024_v5 = vadd.f32 %v3023_v27, %v3022_v15  ;;  %vm1137_vm2 = vweird.f32 %v1131_v49  ;;  %vm1679_vm13 = vweird.f32 %v1673_v33 }
 0x2ff   :  { %v4476_v19 = vpop.eup %4475  ;;  %v3025_v23 = vsel %vm557_vm1, %v5100_v62, 0.0  ;;  %vm1684_vm15 = vcmp.eq.f32.partialorder %v1683_v61, 8.507059e+37 }
 0x300   :  { %v1133_v6 = vmul.f32 %v4476_v19, %v1131_v49  ;;  %v3026_v26 = vadd.f32 %v3025_v23, %v3024_v5  ;;  %vm1138_vm5 = vweird.f32 %v4476_v19 }
 0x301   :  { %vm1139_vm6 = vmor %vm1137_vm2, %vm1138_vm5 }
 0x302   :  { %v1134_v28 = vsub.f32 1.0, %v1133_v6  ;;  %3027 = vadd.xlane.f32.xlu1 %v3026_v26 }
 0x303   :  { %v4478_v50 = vpop.eup %4477 }
 0x304   :  { %v1135_v32 = vmul.f32 %v4476_v19, %v1134_v28  ;;  %v1675_v11 = vmul.f32 %v4478_v50, %v1673_v33  ;;  %vm1680_vm12 = vweird.f32 %v4478_v50 }
 0x305   :  { %vm1681_vm14 = vmor %vm1679_vm13, %vm1680_vm12 }
 0x306   :  { %v1136_v40 = vadd.f32 %v4476_v19, %v1135_v32  ;;  %v1676_v36 = vsub.f32 1.0, %v1675_v11 }
 0x308   :  { %v1140_v16 = vsel %vm1139_vm6, %v4476_v19, %v1136_v40  ;;  %v1677_v49 = vmul.f32 %v4478_v50, %v1676_v36 }
 0x309   :  { %v1145_v42 = vsel %vm1142_vm11, %v1144_v12, %v1140_v16 }
 0x30a   :  { %v1148_v48 = vmul.f32 %v4936_v38, %v1145_v42  ;;  %v1149_v53 = vmul.f32 %v1145_v42, %v4946_v18  ;;  %v1147_v46 = vmul.f32 %v4930_v1, %v1145_v42  ;;  %v1678_v1 = vadd.f32 %v4478_v50, %v1677_v49 }
 0x30b   :  { %v1686_v18 = vor.u32 1.1754944e-38, %v1685_v52 }
 0x30c   :  { %v1153_v59 = vrot.slane %v1148_v48, 7  ;;  %v1154_v13 = vrot.slane %v1149_v53, 6  ;;  %v1682_v58 = vsel %vm1681_vm14, %v4478_v50, %v1678_v1 }
 0x30d   :  { %v1687_v2 = vsel %vm1684_vm15, %v1686_v18, %v1682_v58 }
 0x30e   :  { %v1155_v57 = vsel %vm607_vm7, %v1147_v46, %v1153_v59  ;;  %v1157_v60 = vsel %vm610_vm8, %v1147_v46, %v1153_v59  ;;  %v1690_v0 = vmul.f32 %v4955_v35, %v1687_v2  ;;  %v1691_v7 = vmul.f32 %v1687_v2, %v4963_v24 }
 0x30f   :  { %v1156_v39 = vsel %vm557_vm1, %v1155_v57, %v1154_v13  ;;  %v1158_v43 = vsel %vm612_vm9, %v1157_v60, %v1154_v13  ;;  %v1689_v63 = vmul.f32 %v4953_v34, %v1687_v2 }
 0x310   :  { %v1159_v38 = vrot.slane %v1158_v43, 1  ;;  %3446 = vst.msk [vmem:[%s5235_s7 + $0x2] ss:$8 sm:$0x7] %vm5025_vm10, %v1156_v39  ;;  %v1695_v10 = vrot.slane %v1690_v0, 7  ;;  %v1696_v14 = vrot.slane %v1691_v7, 6 }
 0x312   :  { %3447 = vst.msk [vmem:[%s5235_s7 + $0x32] ss:$8 sm:$0x7] %vm5025_vm10, %v1159_v38  ;;  %v1697_v15 = vsel %vm607_vm7, %v1689_v63, %v1695_v10  ;;  %v1699_v17 = vsel %vm610_vm8, %v1689_v63, %v1695_v10 }
 0x313   :  { %v1698_v29 = vsel %vm557_vm1, %v1697_v15, %v1696_v14  ;;  %v1700_v25 = vsel %vm612_vm9, %v1699_v17, %v1696_v14 }
 0x314   :  { %v1701_v27 = vrot.slane %v1700_v25, 1  ;;  %3642 = vst.msk [vmem:[%s5235_s7 + $0x4] ss:$8 sm:$0x7] %vm5025_vm10, %v1698_v29 }
 0x315   :  { %v1944_v35 = vpop.xlane.xlu0 %1943 }
 0x316   :  { %3643 = vst.msk [vmem:[%s5235_s7 + $0x34] ss:$8 sm:$0x7] %vm5025_vm10, %v1701_v27  ;;  %4479 = vrcp.f32 %v1944_v35  ;;  %v1956_v20 = vand.u32 2147483648, %v1944_v35  ;;  %v1954_v6 = vand.u32 2147483647, %v1944_v35  ;;  %vm1950_vm3 = vweird.f32 %v1944_v35 }
 0x318   :  { %v1957_v26 = vor.u32 1.1754944e-38, %v1956_v20  ;;  %vm1955_vm5 = vcmp.eq.f32.partialorder %v1954_v6, 8.507059e+37 }
 0x31c   :  { %v4480_v34 = vpop.eup %4479 }
 0x31d   :  { %v1946_v24 = vmul.f32 %v4480_v34, %v1944_v35  ;;  %vm1951_vm0 = vweird.f32 %v4480_v34 }
 0x31e   :  { %vm1952_vm4 = vmor %vm1950_vm3, %vm1951_vm0 }
 0x31f   :  { %v1947_v19 = vsub.f32 1.0, %v1946_v24 }
 0x321   :  { %v1948_v5 = vmul.f32 %v4480_v34, %v1947_v19 }
 0x323   :  { %v1949_v23 = vadd.f32 %v4480_v34, %v1948_v5 }
 0x325   :  { %v1953_v28 = vsel %vm1952_vm4, %v4480_v34, %v1949_v23 }
 0x326   :  { %v1958_v22 = vsel %vm1955_vm5, %v1957_v26, %v1953_v28 }
 0x327   :  { %v1961_v33 = vmul.f32 %v4972_v51, %v1958_v22  ;;  %v1962_v32 = vmul.f32 %v1958_v22, %v4980_v3  ;;  %v1960_v8 = vmul.f32 %v4970_v37, %v1958_v22 }
 0x329   :  { %v1966_v40 = vrot.slane %v1961_v33, 7  ;;  %v1967_v12 = vrot.slane %v1962_v32, 6 }
 0x32b   :  { %v1968_v16 = vsel %vm607_vm7, %v1960_v8, %v1966_v40  ;;  %v1970_v42 = vsel %vm610_vm8, %v1960_v8, %v1966_v40 }
 0x32c   :  { %v1969_v50 = vsel %vm557_vm1, %v1968_v16, %v1967_v12  ;;  %v1971_v48 = vsel %vm612_vm9, %v1970_v42, %v1967_v12 }
 0x32d   :  { %v1972_v53 = vrot.slane %v1971_v48, 1  ;;  %3740 = vst.msk [vmem:[%s5235_s7 + $0x5] ss:$8 sm:$0x7] %vm5025_vm10, %v1969_v50 }
 0x32f   :  { %3741 = vst.msk [vmem:[%s5235_s7 + $0x35] ss:$8 sm:$0x7] %vm5025_vm10, %v1972_v53 }
 0x334   :  { %v2215_v37 = vpop.xlane.xlu1 %2214 }
 0x335   :  { %4481 = vrcp.f32 %v2215_v37  ;;  %v2227_v59 = vand.u32 2147483648, %v2215_v37  ;;  %v2225_v36 = vand.u32 2147483647, %v2215_v37  ;;  %vm2221_vm6 = vweird.f32 %v2215_v37 }
 0x337   :  { %v2228_v60 = vor.u32 1.1754944e-38, %v2227_v59  ;;  %vm2226_vm12 = vcmp.eq.f32.partialorder %v2225_v36, 8.507059e+37 }
 0x33b   :  { %v4482_v51 = vpop.eup %4481 }
 0x33c   :  { %v2217_v3 = vmul.f32 %v4482_v51, %v2215_v37  ;;  %vm2222_vm2 = vweird.f32 %v4482_v51 }
 0x33d   :  { %vm2223_vm11 = vmor %vm2221_vm6, %vm2222_vm2 }
 0x33e   :  { %v2486_v11 = vpop.xlane.xlu2 %2485  ;;  %v2218_v46 = vsub.f32 1.0, %v2217_v3 }
 0x33f   :  { %4483 = vrcp.f32 %v2486_v11  ;;  %v2498_v0 = vand.u32 2147483648, %v2486_v11  ;;  %v2496_v63 = vand.u32 2147483647, %v2486_v11  ;;  %vm2492_vm14 = vweird.f32 %v2486_v11 }
 0x340   :  { %v2219_v13 = vmul.f32 %v4482_v51, %v2218_v46 }
 0x341   :  { %vm2497_vm0 = vcmp.eq.f32.partialorder %v2496_v63, 8.507059e+37 }
 0x342   :  { %v2220_v57 = vadd.f32 %v4482_v51, %v2219_v13 }
 0x344   :  { %v2224_v52 = vsel %vm2223_vm11, %v4482_v51, %v2220_v57 }
 0x345   :  { %v4484_v61 = vpop.eup %4483  ;;  %v2229_v39 = vsel %vm2226_vm12, %v2228_v60, %v2224_v52 }
 0x346   :  { %v2488_v43 = vmul.f32 %v4484_v61, %v2486_v11  ;;  %v2232_v49 = vmul.f32 %v4992_v21, %v2229_v39  ;;  %v2233_v38 = vmul.f32 %v2229_v39, %v5000_v47  ;;  %v2231_v18 = vmul.f32 %v4990_v31, %v2229_v39 }
 0x347   :  { %vm2493_vm13 = vweird.f32 %v4484_v61  ;;  %v2499_v31 = vor.u32 1.1754944e-38, %v2498_v0 }
 0x348   :  { %v2489_v1 = vsub.f32 1.0, %v2488_v43  ;;  %v2237_v58 = vrot.slane %v2232_v49, 7  ;;  %v2238_v2 = vrot.slane %v2233_v38, 6  ;;  %vm2494_vm15 = vmor %vm2492_vm14, %vm2493_vm13 }
 0x34a   :  { %v2490_v7 = vmul.f32 %v4484_v61, %v2489_v1  ;;  %v2239_v10 = vsel %vm607_vm7, %v2231_v18, %v2237_v58  ;;  %v2241_v14 = vsel %vm610_vm8, %v2231_v18, %v2237_v58 }
 0x34b   :  { %v2240_v15 = vsel %vm557_vm1, %v2239_v10, %v2238_v2  ;;  %v2242_v17 = vsel %vm612_vm9, %v2241_v14, %v2238_v2 }
 0x34c   :  { %v2491_v21 = vadd.f32 %v4484_v61, %v2490_v7  ;;  %v2243_v47 = vrot.slane %v2242_v17, 1  ;;  %3838 = vst.msk [vmem:[%s5235_s7 + $0x6] ss:$8 sm:$0x7] %vm5025_vm10, %v2240_v15 }
 0x34e   :  { %v2495_v29 = vsel %vm2494_vm15, %v4484_v61, %v2491_v21  ;;  %3839 = vst.msk [vmem:[%s5235_s7 + $0x36] ss:$8 sm:$0x7] %vm5025_vm10, %v2243_v47 }
 0x34f   :  { %v2500_v25 = vsel %vm2497_vm0, %v2499_v31, %v2495_v29 }
 0x350   :  { %v2503_v27 = vmul.f32 %v5006_v30, %v2500_v25  ;;  %v2504_v35 = vmul.f32 %v2500_v25, %v5014_v56  ;;  %v2502_v34 = vmul.f32 %v5004_v45, %v2500_v25 }
 0x352   :  { %v2508_v24 = vrot.slane %v2503_v27, 7  ;;  %v2509_v19 = vrot.slane %v2504_v35, 6 }
 0x354   :  { %v2510_v20 = vsel %vm607_vm7, %v2502_v34, %v2508_v24  ;;  %v2512_v5 = vsel %vm610_vm8, %v2502_v34, %v2508_v24 }
 0x355   :  { %v2511_v6 = vsel %vm557_vm1, %v2510_v20, %v2509_v19  ;;  %v2513_v23 = vsel %vm612_vm9, %v2512_v5, %v2509_v19 }
 0x356   :  { %v2514_v26 = vrot.slane %v2513_v23, 1  ;;  %3936 = vst.msk [vmem:[%s5235_s7 + $0x7] ss:$8 sm:$0x7] %vm5025_vm10, %v2511_v6 }
 0x358   :  { %3937 = vst.msk [vmem:[%s5235_s7 + $0x37] ss:$8 sm:$0x7] %vm5025_vm10, %v2514_v26 }
 0x35b   :  { %v2757_v45 = vpop.xlane.xlu0 %2756 }
 0x35c   :  { %4485 = vrcp.f32 %v2757_v45  ;;  %v2769_v22 = vand.u32 2147483648, %v2757_v45  ;;  %v2767_v32 = vand.u32 2147483647, %v2757_v45  ;;  %vm2763_vm4 = vweird.f32 %v2757_v45 }
 0x35e   :  { %v2770_v40 = vor.u32 1.1754944e-38, %v2769_v22  ;;  %vm2768_vm2 = vcmp.eq.f32.partialorder %v2767_v32, 8.507059e+37 }
 0x362   :  { %v4486_v30 = vpop.eup %4485 }
 0x363   :  { %v2759_v56 = vmul.f32 %v4486_v30, %v2757_v45  ;;  %vm2764_vm3 = vweird.f32 %v4486_v30 }
 0x364   :  { %vm2765_vm5 = vmor %vm2763_vm4, %vm2764_vm3 }
 0x365   :  { %v2760_v28 = vsub.f32 1.0, %v2759_v56 }
 0x367   :  { %v2761_v33 = vmul.f32 %v4486_v30, %v2760_v28 }
 0x369   :  { %v2762_v8 = vadd.f32 %v4486_v30, %v2761_v33 }
 0x36b   :  { %v2766_v12 = vsel %vm2765_vm5, %v4486_v30, %v2762_v8 }
 0x36c   :  { %v2771_v16 = vsel %vm2768_vm2, %v2770_v40, %v2766_v12 }
 0x36d   :  { %v2774_v42 = vmul.f32 %v5045_v55, %v2771_v16  ;;  %v2775_v50 = vmul.f32 %v2771_v16, %v5053_v44  ;;  %v2773_v48 = vmul.f32 %v5043_v54, %v2771_v16 }
 0x36f   :  { %v2779_v53 = vrot.slane %v2774_v42, 7  ;;  %v2780_v37 = vrot.slane %v2775_v50, 6 }
 0x371   :  { %v2781_v51 = vsel %vm607_vm7, %v2773_v48, %v2779_v53  ;;  %v2783_v3 = vsel %vm610_vm8, %v2773_v48, %v2779_v53 }
 0x372   :  { %v2782_v11 = vsel %vm557_vm1, %v2781_v51, %v2780_v37  ;;  %v2784_v46 = vsel %vm612_vm9, %v2783_v3, %v2780_v37 }
 0x373   :  { %v2785_v59 = vrot.slane %v2784_v46, 1  ;;  %4034 = vst.msk [vmem:[%s5235_s7 + $0x18] ss:$8 sm:$0x7] %vm5025_vm10, %v2782_v11 }
 0x375   :  { %4035 = vst.msk [vmem:[%s5235_s7 + $0x48] ss:$8 sm:$0x7] %vm5025_vm10, %v2785_v59  ;;  %v3028_v54 = vpop.xlane.xlu1 %3027 }
 0x376   :  { %4487 = vrcp.f32 %v3028_v54  ;;  %v3040_v36 = vand.u32 2147483648, %v3028_v54  ;;  %v3038_v60 = vand.u32 2147483647, %v3028_v54  ;;  %vm3034_vm11 = vweird.f32 %v3028_v54 }
 0x378   :  { %v3041_v52 = vor.u32 1.1754944e-38, %v3040_v36  ;;  %vm3039_vm13 = vcmp.eq.f32.partialorder %v3038_v60, 8.507059e+37 }
 0x37c   :  { %v4488_v55 = vpop.eup %4487 }
 0x37d   :  { %v3030_v44 = vmul.f32 %v4488_v55, %v3028_v54  ;;  %vm3035_vm6 = vweird.f32 %v4488_v55 }
 0x37e   :  { %vm3036_vm12 = vmor %vm3034_vm11, %vm3035_vm6 }
 0x37f   :  { %v3031_v13 = vsub.f32 1.0, %v3030_v44 }
 0x381   :  { %v3032_v57 = vmul.f32 %v4488_v55, %v3031_v13 }
 0x383   :  { %v3033_v61 = vadd.f32 %v4488_v55, %v3032_v57 }
 0x385   :  { %v3037_v39 = vsel %vm3036_vm12, %v4488_v55, %v3033_v61 }
 0x386   :  { %v3042_v43 = vsel %vm3039_vm13, %v3041_v52, %v3037_v39 }
 0x387   :  { %v3045_v49 = vmul.f32 %v5083_v9, %v3042_v43  ;;  %v3046_v38 = vmul.f32 %v3042_v43, %v5100_v62  ;;  %v3044_v1 = vmul.f32 %v5081_v4, %v3042_v43 }
 0x389   :  { %v3050_v18 = vrot.slane %v3045_v49, 7  ;;  %v3051_v58 = vrot.slane %v3046_v38, 6 }
 0x38b   :  { %v3052_v2 = vsel %vm607_vm7, %v3044_v1, %v3050_v18  ;;  %v3054_v0 = vsel %vm610_vm8, %v3044_v1, %v3050_v18 }
 0x38c   :  { %v3053_v7 = vsel %vm557_vm1, %v3052_v2, %v3051_v58  ;;  %v3055_v63 = vsel %vm612_vm9, %v3054_v0, %v3051_v58 }
 0x38d   :  { %v3056_v10 = vrot.slane %v3055_v63, 1  ;;  %4132 = vst.msk [vmem:[%s5235_s7 + $0x19] ss:$8 sm:$0x7] %vm5025_vm10, %v3053_v7 }
 0x38f   :  { %4133 = vst.msk [vmem:[%s5235_s7 + $0x49] ss:$8 sm:$0x7] %vm5025_vm10, %v3056_v10 }
 0x390   :  { %3069 = vsyncpa [#allocation3], 1 }
 0x391   :  { %3070 = vsyncpa [#allocation5], 1 }
 0x392   :  { %3071 = vsyncpa [#allocation8], 1 }
 0x393   :  { %3072 = vsyncpa [#allocation11], 1 }

</bundles_post_ra>
